<compile_context>
chip_gen: v7x
topology: tpu7x:2x2x1
jax: 0.10.0
libtpu: 0.0.40
codegen_flags: <defaults>
</compile_context>

<pallas_src>
import jax
import jax.numpy as jnp
from jax.experimental import pallas as pl
from jax.experimental.pallas import tpu as pltpu

C_REAL = 200      # torch module: GGC out_channels=200, BatchNorm(200), Linear(200, 1)
C = 256           # channel dim padded to a 128-lane multiple for the MXU / VPU
NUM_LAYERS = 3    # gated_graph_conv_args['num_layers']
BN_EPS = 1e-5
LANES = 128


# ---------------------------------------------------------------------------
# Fused kernel: GGC layers + BN(eval) + ReLU + mean-pool + Linear + sigmoid
# ---------------------------------------------------------------------------
def net_kernel(x_ref, adj_ref, w4_ref, wih3_ref, par_ref, sel_ref, invc_ref,
               wlin_ref, out_ref):
    f32, bf16 = jnp.float32, jnp.bfloat16
    N = x_ref.shape[0]

    adj = adj_ref[...]                                  # (N, N) bf16 multiplicity

    # Hoist (1, C) -> (N, C) bias broadcasts out of the layer loop.
    # par rows: [b_ir+b_hr, b_iz+b_hz, b_in, b_hn, bn_scale, bn_shift, lin_bias, 0]
    b_r = jnp.broadcast_to(par_ref[0:1, :], (N, C))
    b_z = jnp.broadcast_to(par_ref[1:2, :], (N, C))
    b_in = jnp.broadcast_to(par_ref[2:3, :], (N, C))
    b_hn = jnp.broadcast_to(par_ref[3:4, :], (N, C))
    wih3 = wih3_ref[...]                                # (C, 3C) bf16, shared per layer

    def layer(l, x):
        xb = x.astype(bf16)
        # one fused dot: [m_pre | x@Whh_r | x@Whh_z | x@Whh_n]   (N, 4C)
        gh = jnp.dot(xb, w4_ref[l], preferred_element_type=f32)
        # message aggregation (PyG add-aggregation): m[dst] = sum_src adj * m_pre[src]
        m = jnp.dot(adj, gh[:, 0:C].astype(bf16), preferred_element_type=f32)
        # one fused dot: [m@Wih_r | m@Wih_z | m@Wih_n]           (N, 3C)
        gi = jnp.dot(m.astype(bf16), wih3, preferred_element_type=f32)
        # torch.nn.GRUCell gate math (order r, z, n), all slices 128-aligned
        r = jax.nn.sigmoid(gi[:, 0:C] + gh[:, C:2 * C] + b_r)
        z = jax.nn.sigmoid(gi[:, C:2 * C] + gh[:, 2 * C:3 * C] + b_z)
        n = jnp.tanh(gi[:, 2 * C:3 * C] + b_in + r * (gh[:, 3 * C:4 * C] + b_hn))
        return (1.0 - z) * n + z * x

    x = jax.lax.fori_loop(0, NUM_LAYERS, layer, x_ref[...])

    # BatchNorm (eval, folded to scale/shift on host) -> ReLU; dropout = identity.
    xr = jnp.maximum(x * par_ref[4:5, :] + par_ref[5:6, :], 0.0)

    # Pool-then-linear head: exact 0/1 bf16 sum-pool (MXU), tiny linear with the
    # lane-replicated weight, then per-graph 1/count scaling in f32 on the VPU.
    psum = jnp.dot(sel_ref[...], xr.astype(bf16), preferred_element_type=f32)   # (G,C)
    glog = jnp.dot(psum.astype(bf16), wlin_ref[...], preferred_element_type=f32)  # (G,128)
    blin = par_ref[6:7, 0:LANES]
    out_ref[...] = jax.nn.sigmoid(glog * invc_ref[...] + blin)


# ---------------------------------------------------------------------------
# Wrapper: host-side weight repacking (pad 200->256, fuse gates) + one pallas_call
# ---------------------------------------------------------------------------
def net_forward(x, edge_index, batch, num_graphs, params):
    N, f_in = x.shape
    assert f_in <= C_REAL
    x_pad = jnp.pad(x.astype(jnp.float32), ((0, 0), (0, C - f_in)))

    # Dense adjacency with edge multiplicity: A[dst, src] += 1 (PyG add-aggregation).
    # TODO(synk): for very large graphs, stream adj row-blocks via pltpu.emit_pipeline
    # or switch to scalar-prefetched CSR offsets + in-kernel segment sums (drops the
    # O(N^2) dense matrix that hits v7x's 64 MiB VMEM first).
    src, dst = edge_index[0], edge_index[1]
    adj = jnp.zeros((N, N), jnp.float32).at[dst, src].add(1.0).astype(jnp.bfloat16)

    # Per-graph 0/1 selection matrix (exact sum-pool) + reciprocal node counts.
    g_pad = max(8, -(-num_graphs // 8) * 8)
    counts = jnp.zeros((g_pad,), jnp.float32).at[batch].add(1.0)
    sel = (jnp.zeros((g_pad, N), jnp.float32)
           .at[batch, jnp.arange(N)].set(1.0).astype(jnp.bfloat16))
    invc = jnp.broadcast_to((1.0 / jnp.maximum(counts, 1.0))[:, None],
                            (g_pad, LANES)).astype(jnp.float32)

    # ---- pad channel dim 200 -> 256 and fuse/transpose weights on the host ----
    cp = C - C_REAL
    ggc_w = jnp.pad(params["ggc_w"], ((0, 0), (0, cp), (0, cp)))               # (L,C,C)
    wih_t = jnp.pad(jnp.transpose(params["gru_wih"].reshape(3, C_REAL, C_REAL),
                                  (0, 2, 1)), ((0, 0), (0, cp), (0, cp)))      # (3,C,C)
    whh_t = jnp.pad(jnp.transpose(params["gru_whh"].reshape(3, C_REAL, C_REAL),
                                  (0, 2, 1)), ((0, 0), (0, cp), (0, cp)))      # (3,C,C)

    # Fused per-layer weight [W_l | Whh_r | Whh_z | Whh_n] and shared [Wih_r|Wih_z|Wih_n].
    w4 = jnp.stack([jnp.concatenate([ggc_w[l], whh_t[0], whh_t[1], whh_t[2]], axis=1)
                    for l in range(NUM_LAYERS)], axis=0).astype(jnp.bfloat16)  # (L,C,4C)
    wih3 = jnp.concatenate([wih_t[0], wih_t[1], wih_t[2]],
                           axis=1).astype(jnp.bfloat16)                         # (C,3C)

    bih = jnp.pad(params["gru_bih"].reshape(3, C_REAL), ((0, 0), (0, cp)))
    bhh = jnp.pad(params["gru_bhh"].reshape(3, C_REAL), ((0, 0), (0, cp)))

    # BatchNorm (eval) folded into scale/shift; pad channels stay inert (var pad = 1).
    gamma = jnp.pad(params["bn_gamma"], (0, cp))
    beta = jnp.pad(params["bn_beta"], (0, cp))
    rmean = jnp.pad(params["bn_mean"], (0, cp))
    rvar = jnp.pad(params["bn_var"], (0, cp), constant_values=1.0)
    bn_scale = gamma * jax.lax.rsqrt(rvar + BN_EPS)
    bn_shift = beta - rmean * bn_scale

    lin_w = jnp.pad(params["lin_w"], ((0, 0), (0, cp)))                         # (1,C)
    wlin = jnp.tile(lin_w.T, (1, LANES)).astype(jnp.bfloat16)                   # (C,128)
    blin_row = jnp.full((C,), params["lin_b"][0], jnp.float32)

    # All small per-channel params packed into one (8, C) ref (one DMA).
    par = jnp.stack([bih[0] + bhh[0], bih[1] + bhh[1], bih[2], bhh[2],
                     bn_scale, bn_shift, blin_row, jnp.zeros((C,), jnp.float32)],
                    axis=0).astype(jnp.float32)                                 # (8,C)

    # VMEM budget from the actual footprint (v5e's scoped default is only 16 MiB).
    def nbytes(a):
        return a.size * a.dtype.itemsize
    in_bytes = (nbytes(x_pad) + nbytes(adj) + nbytes(w4) + nbytes(wih3) + nbytes(par)
                + nbytes(sel) + nbytes(invc) + nbytes(wlin) + g_pad * LANES * 4)
    scratch_bytes = 12 * N * C * 4          # gate / activation temporaries
    vmem_limit = int(min(64 << 20, max(16 << 20, 2 * in_bytes + scratch_bytes)))

    def run(single_buffer_large):
        def spec(shape, big=False):
            nd = len(shape)
            idx = lambda i, _nd=nd: (0,) * _nd
            if big and single_buffer_large:
                # grid=(1,): nothing to pipeline -> don't double-buffer the big blocks.
                return pl.BlockSpec(shape, idx, pipeline_mode=pl.Buffered(1))
            return pl.BlockSpec(shape, idx)

        # TODO(synk): on v7x, shard disjoint graph components across the 2 TensorCores
        # with a leading "parallel" grid axis; with one batched graph we stay on 1 TC.
        return pl.pallas_call(
            net_kernel,
            grid=(1,),
            in_specs=[
                spec((N, C), big=True),             # x
                spec((N, N), big=True),             # adj
                spec((NUM_LAYERS, C, 4 * C)),       # fused per-layer weights
                spec((C, 3 * C)),                   # fused input-gate weights
                spec((8, C)),                       # packed biases / BN / lin bias
                spec((g_pad, N), big=True),         # 0/1 pool selection
                spec((g_pad, LANES)),               # 1/count
                spec((C, LANES)),                   # lane-replicated lin weight
            ],
            out_specs=spec((g_pad, LANES)),
            out_shape=jax.ShapeDtypeStruct((g_pad, LANES), jnp.float32),
            compiler_params=pltpu.CompilerParams(
                dimension_semantics=("arbitrary",),
                vmem_limit_bytes=vmem_limit,
            ),
        )(x_pad, adj, w4, wih3, par, sel, invc, wlin)

    try:
        out_full = run(True)
    except Exception:
        # pl.Buffered(1) not supported on this jax/libtpu combo -> default buffering.
        out_full = run(False)

    return out_full[:num_graphs, :1]


def init_params(key):
    ks = jax.random.split(key, 4)
    scale = 0.05
    return {
        "ggc_w":   scale * jax.random.normal(ks[0], (NUM_LAYERS, C_REAL, C_REAL), jnp.float32),
        "gru_wih": scale * jax.random.normal(ks[1], (3 * C_REAL, C_REAL), jnp.float32),
        "gru_whh": scale * jax.random.normal(ks[2], (3 * C_REAL, C_REAL), jnp.float32),
        "gru_bih": jnp.zeros((3 * C_REAL,), jnp.float32),
        "gru_bhh": jnp.zeros((3 * C_REAL,), jnp.float32),
        "bn_gamma": jnp.ones((C_REAL,), jnp.float32),
        "bn_beta":  jnp.zeros((C_REAL,), jnp.float32),
        "bn_mean":  jnp.zeros((C_REAL,), jnp.float32),   # running stats (eval mode)
        "bn_var":   jnp.ones((C_REAL,), jnp.float32),
        "lin_w":   scale * jax.random.normal(ks[3], (1, C_REAL), jnp.float32),
        "lin_b":   jnp.zeros((1,), jnp.float32),
    }
    # TODO(synk): Net.__init__ also builds self.conv (Conv submodule); it is never
    # called in Net.forward, so it is intentionally not implemented here.


if __name__ == "__main__":
    key = jax.random.PRNGKey(0)
    kx, ke, kp = jax.random.split(key, 3)

    # small graph: 16 nodes, 64 input features, 2 graphs of 8 nodes each, 40 edges
    N, F_IN, NUM_GRAPHS, NUM_EDGES = 16, 64, 2, 40
    x = jax.random.normal(kx, (N, F_IN), jnp.float32)
    edge_index = jax.random.randint(ke, (2, NUM_EDGES), 0, N, dtype=jnp.int32)
    batch = jnp.concatenate([jnp.zeros(8, jnp.int32), jnp.ones(8, jnp.int32)])

    params = init_params(kp)

    out = net_forward(x, edge_index, batch, NUM_GRAPHS, params)
    out = jax.block_until_ready(out)

    assert out.shape == (NUM_GRAPHS, 1)
    assert bool(jnp.all(jnp.isfinite(out)))
    assert bool(jnp.all((out >= 0.0) & (out <= 1.0)))
    print("KERNEL_OK")
</pallas_src>

<mosaic_0001>
module attributes {stable_mosaic.version = 11 : i64} {
  func.func @net_kernel(%arg0: i32, %arg1: memref<16x256xf32, #tpu.memory_space<vmem>>, %arg2: memref<16x16xbf16, #tpu.memory_space<vmem>>, %arg3: memref<3x256x1024xbf16, #tpu.memory_space<vmem>>, %arg4: memref<256x768xbf16, #tpu.memory_space<vmem>>, %arg5: memref<8x256xf32, #tpu.memory_space<vmem>>, %arg6: memref<8x16xbf16, #tpu.memory_space<vmem>>, %arg7: memref<8x128xf32, #tpu.memory_space<vmem>>, %arg8: memref<256x128xbf16, #tpu.memory_space<vmem>>, %arg9: memref<8x128xf32, #tpu.memory_space<vmem>>) attributes {dimension_semantics = [#tpu.dimension_semantics<arbitrary>], iteration_bounds = array<i64: 1>, scalar_prefetch = 0 : i64, scratch_operands = 0 : i64, tpu.core_type = #tpu.core_type<tc>, window_params = [{pipeline_mode = #tpu.pipeline_mode<synchronous>, transform_indices = @transform_0, window_bounds = array<i64: 16, 256>}, {pipeline_mode = #tpu.pipeline_mode<synchronous>, transform_indices = @transform_1, window_bounds = array<i64: 16, 16>}, {pipeline_mode = #tpu.pipeline_mode<synchronous>, transform_indices = @transform_2, window_bounds = array<i64: 3, 256, 1024>}, {pipeline_mode = #tpu.pipeline_mode<synchronous>, transform_indices = @transform_3, window_bounds = array<i64: 256, 768>}, {pipeline_mode = #tpu.pipeline_mode<synchronous>, transform_indices = @transform_4, window_bounds = array<i64: 8, 256>}, {pipeline_mode = #tpu.pipeline_mode<synchronous>, transform_indices = @transform_5, window_bounds = array<i64: 8, 16>}, {pipeline_mode = #tpu.pipeline_mode<synchronous>, transform_indices = @transform_6, window_bounds = array<i64: 8, 128>}, {pipeline_mode = #tpu.pipeline_mode<synchronous>, transform_indices = @transform_7, window_bounds = array<i64: 256, 128>}, {pipeline_mode = #tpu.pipeline_mode<synchronous>, transform_indices = @transform_8, window_bounds = array<i64: 8, 128>}]} {
    %c0 = arith.constant 0 : index
    %c0_0 = arith.constant 0 : index
    %0 = vector.load %arg2[%c0, %c0_0] : memref<16x16xbf16, #tpu.memory_space<vmem>>, vector<16x16xbf16>
    %c0_1 = arith.constant 0 : index
    %c0_2 = arith.constant 0 : index
    %1 = vector.load %arg5[%c0_1, %c0_2] : memref<8x256xf32, #tpu.memory_space<vmem>>, vector<1x256xf32>
    %2 = vector.shape_cast %1 : vector<1x256xf32> to vector<1x256xf32>
    %3 = vector.broadcast %2 : vector<1x256xf32> to vector<16x256xf32>
    %c1 = arith.constant 1 : index
    %c0_3 = arith.constant 0 : index
    %4 = vector.load %arg5[%c1, %c0_3] : memref<8x256xf32, #tpu.memory_space<vmem>>, vector<1x256xf32>
    %5 = vector.shape_cast %4 : vector<1x256xf32> to vector<1x256xf32>
    %6 = vector.broadcast %5 : vector<1x256xf32> to vector<16x256xf32>
    %c2 = arith.constant 2 : index
    %c0_4 = arith.constant 0 : index
    %7 = vector.load %arg5[%c2, %c0_4] : memref<8x256xf32, #tpu.memory_space<vmem>>, vector<1x256xf32>
    %8 = vector.shape_cast %7 : vector<1x256xf32> to vector<1x256xf32>
    %9 = vector.broadcast %8 : vector<1x256xf32> to vector<16x256xf32>
    %c3 = arith.constant 3 : index
    %c0_5 = arith.constant 0 : index
    %10 = vector.load %arg5[%c3, %c0_5] : memref<8x256xf32, #tpu.memory_space<vmem>>, vector<1x256xf32>
    %11 = vector.shape_cast %10 : vector<1x256xf32> to vector<1x256xf32>
    %12 = vector.broadcast %11 : vector<1x256xf32> to vector<16x256xf32>
    %c0_6 = arith.constant 0 : index
    %c0_7 = arith.constant 0 : index
    %13 = vector.load %arg4[%c0_6, %c0_7] : memref<256x768xbf16, #tpu.memory_space<vmem>>, vector<256x768xbf16>
    %c0_8 = arith.constant 0 : index
    %c0_9 = arith.constant 0 : index
    %14 = vector.load %arg1[%c0_8, %c0_9] : memref<16x256xf32, #tpu.memory_space<vmem>>, vector<16x256xf32>
    %c0_i32 = arith.constant 0 : i32
    %c3_i32 = arith.constant 3 : i32
    %15 = arith.addi %c0_i32, %c3_i32 : i32
    %c1_i32 = arith.constant 1 : i32
    %16 = scf.for %arg10 = %c0_i32 to %15 step %c1_i32 iter_args(%arg11 = %14) -> (vector<16x256xf32>)  : i32 {
      %42 = arith.truncf %arg11 : vector<16x256xf32> to vector<16x256xbf16>
      %43 = arith.index_cast %arg10 : i32 to index
      %c0_25 = arith.constant 0 : index
      %c0_26 = arith.constant 0 : index
      %44 = vector.load %arg3[%43, %c0_25, %c0_26] : memref<3x256x1024xbf16, #tpu.memory_space<vmem>>, vector<1x256x1024xbf16>
      %45 = vector.shape_cast %44 : vector<1x256x1024xbf16> to vector<256x1024xbf16>
      %cst_27 = arith.constant dense<0.000000e+00> : vector<16x1024xf32>
      %46 = tpu.matmul %42, %45, %cst_27 {dimension_numbers = #tpu.dot_dimension_numbers<[1], [0], [0], [1], [0, 0, 1, 1], [], []>} : vector<16x256xbf16>, vector<256x1024xbf16>, vector<16x1024xf32> -> vector<16x1024xf32>
      %47 = vector.extract_strided_slice %46 {offsets = [0, 0], sizes = [16, 256], strides = [1, 1]} : vector<16x1024xf32> to vector<16x256xf32>
      %48 = arith.truncf %47 : vector<16x256xf32> to vector<16x256xbf16>
      %cst_28 = arith.constant dense<0.000000e+00> : vector<16x256xf32>
      %49 = tpu.matmul %0, %48, %cst_28 {dimension_numbers = #tpu.dot_dimension_numbers<[1], [0], [0], [1], [0, 0, 1, 1], [], []>} : vector<16x16xbf16>, vector<16x256xbf16>, vector<16x256xf32> -> vector<16x256xf32>
      %50 = arith.truncf %49 : vector<16x256xf32> to vector<16x256xbf16>
      %cst_29 = arith.constant dense<0.000000e+00> : vector<16x768xf32>
      %51 = tpu.matmul %50, %13, %cst_29 {dimension_numbers = #tpu.dot_dimension_numbers<[1], [0], [0], [1], [0, 0, 1, 1], [], []>} : vector<16x256xbf16>, vector<256x768xbf16>, vector<16x768xf32> -> vector<16x768xf32>
      %52 = vector.extract_strided_slice %51 {offsets = [0, 0], sizes = [16, 256], strides = [1, 1]} : vector<16x768xf32> to vector<16x256xf32>
      %53 = vector.extract_strided_slice %46 {offsets = [0, 256], sizes = [16, 256], strides = [1, 1]} : vector<16x1024xf32> to vector<16x256xf32>
      %54 = arith.addf %52, %53 : vector<16x256xf32>
      %55 = arith.addf %54, %3 : vector<16x256xf32>
      %56 = arith.negf %55 : vector<16x256xf32>
      %57 = math.exp %56 : vector<16x256xf32>
      %cst_30 = arith.constant 1.000000e+00 : f32
      %58 = vector.broadcast %cst_30 : f32 to vector<16x256xf32>
      %59 = arith.addf %58, %57 : vector<16x256xf32>
      %60 = arith.divf %58, %59 : vector<16x256xf32>
      %61 = vector.extract_strided_slice %51 {offsets = [0, 256], sizes = [16, 256], strides = [1, 1]} : vector<16x768xf32> to vector<16x256xf32>
      %62 = vector.extract_strided_slice %46 {offsets = [0, 512], sizes = [16, 256], strides = [1, 1]} : vector<16x1024xf32> to vector<16x256xf32>
      %63 = arith.addf %61, %62 : vector<16x256xf32>
      %64 = arith.addf %63, %6 : vector<16x256xf32>
      %65 = arith.negf %64 : vector<16x256xf32>
      %66 = math.exp %65 : vector<16x256xf32>
      %cst_31 = arith.constant 1.000000e+00 : f32
      %67 = vector.broadcast %cst_31 : f32 to vector<16x256xf32>
      %68 = arith.addf %67, %66 : vector<16x256xf32>
      %69 = arith.divf %67, %68 : vector<16x256xf32>
      %70 = vector.extract_strided_slice %51 {offsets = [0, 512], sizes = [16, 256], strides = [1, 1]} : vector<16x768xf32> to vector<16x256xf32>
      %71 = arith.addf %70, %9 : vector<16x256xf32>
      %72 = vector.extract_strided_slice %46 {offsets = [0, 768], sizes = [16, 256], strides = [1, 1]} : vector<16x1024xf32> to vector<16x256xf32>
      %73 = arith.addf %72, %12 : vector<16x256xf32>
      %74 = arith.mulf %60, %73 : vector<16x256xf32>
      %75 = arith.addf %71, %74 : vector<16x256xf32>
      %76 = math.tanh %75 : vector<16x256xf32>
      %cst_32 = arith.constant 1.000000e+00 : f32
      %77 = vector.broadcast %cst_32 : f32 to vector<16x256xf32>
      %78 = arith.subf %77, %69 : vector<16x256xf32>
      %79 = arith.mulf %78, %76 : vector<16x256xf32>
      %80 = arith.mulf %69, %arg11 : vector<16x256xf32>
      %81 = arith.addf %79, %80 : vector<16x256xf32>
      scf.yield %81 : vector<16x256xf32>
    }
    %c3_i32_10 = arith.constant 3 : i32
    %c4 = arith.constant 4 : index
    %c0_11 = arith.constant 0 : index
    %17 = vector.load %arg5[%c4, %c0_11] : memref<8x256xf32, #tpu.memory_space<vmem>>, vector<1x256xf32>
    %18 = vector.broadcast %17 : vector<1x256xf32> to vector<16x256xf32>
    %19 = arith.mulf %16, %18 : vector<16x256xf32>
    %c5 = arith.constant 5 : index
    %c0_12 = arith.constant 0 : index
    %20 = vector.load %arg5[%c5, %c0_12] : memref<8x256xf32, #tpu.memory_space<vmem>>, vector<1x256xf32>
    %21 = vector.broadcast %20 : vector<1x256xf32> to vector<16x256xf32>
    %22 = arith.addf %19, %21 : vector<16x256xf32>
    %cst = arith.constant 0.000000e+00 : f32
    %23 = vector.broadcast %cst : f32 to vector<16x256xf32>
    %24 = arith.maximumf %22, %23 : vector<16x256xf32>
    %c0_13 = arith.constant 0 : index
    %c0_14 = arith.constant 0 : index
    %25 = vector.load %arg6[%c0_13, %c0_14] : memref<8x16xbf16, #tpu.memory_space<vmem>>, vector<8x16xbf16>
    %26 = arith.truncf %24 : vector<16x256xf32> to vector<16x256xbf16>
    %cst_15 = arith.constant dense<0.000000e+00> : vector<8x256xf32>
    %27 = tpu.matmul %25, %26, %cst_15 {dimension_numbers = #tpu.dot_dimension_numbers<[1], [0], [0], [1], [0, 0, 1, 1], [], []>} : vector<8x16xbf16>, vector<16x256xbf16>, vector<8x256xf32> -> vector<8x256xf32>
    %28 = arith.truncf %27 : vector<8x256xf32> to vector<8x256xbf16>
    %c0_16 = arith.constant 0 : index
    %c0_17 = arith.constant 0 : index
    %29 = vector.load %arg8[%c0_16, %c0_17] : memref<256x128xbf16, #tpu.memory_space<vmem>>, vector<256x128xbf16>
    %cst_18 = arith.constant dense<0.000000e+00> : vector<8x128xf32>
    %30 = tpu.matmul %28, %29, %cst_18 {dimension_numbers = #tpu.dot_dimension_numbers<[1], [0], [0], [1], [0, 0, 1, 1], [], []>} : vector<8x256xbf16>, vector<256x128xbf16>, vector<8x128xf32> -> vector<8x128xf32>
    %c6 = arith.constant 6 : index
    %c0_19 = arith.constant 0 : index
    %31 = vector.load %arg5[%c6, %c0_19] : memref<8x256xf32, #tpu.memory_space<vmem>>, vector<1x128xf32>
    %c0_20 = arith.constant 0 : index
    %c0_21 = arith.constant 0 : index
    %32 = vector.load %arg7[%c0_20, %c0_21] : memref<8x128xf32, #tpu.memory_space<vmem>>, vector<8x128xf32>
    %33 = arith.mulf %30, %32 : vector<8x128xf32>
    %34 = vector.broadcast %31 : vector<1x128xf32> to vector<8x128xf32>
    %35 = arith.addf %33, %34 : vector<8x128xf32>
    %36 = arith.negf %35 : vector<8x128xf32>
    %37 = math.exp %36 : vector<8x128xf32>
    %cst_22 = arith.constant 1.000000e+00 : f32
    %38 = vector.broadcast %cst_22 : f32 to vector<8x128xf32>
    %39 = arith.addf %38, %37 : vector<8x128xf32>
    %40 = arith.divf %38, %39 : vector<8x128xf32>
    %c0_23 = arith.constant 0 : index
    %c0_24 = arith.constant 0 : index
    %41 = vector.load %arg9[%c0_23, %c0_24] : memref<8x128xf32, #tpu.memory_space<vmem>>, vector<8x128xf32>
    tpu.vector_store %arg9[%c0_23, %c0_24], %40 {strides = array<i32>} : memref<8x128xf32, #tpu.memory_space<vmem>>, vector<8x128xf32>,
    return
  }
  func.func @transform_0(%arg0: i32) -> (i32, i32) {
    %c0_i32 = arith.constant 0 : i32
    %c0_i32_0 = arith.constant 0 : i32
    %c0_i32_1 = arith.constant 0 : i32
    return %c0_i32, %c0_i32_0 : i32, i32
  }
  func.func @transform_1(%arg0: i32) -> (i32, i32) {
    %c0_i32 = arith.constant 0 : i32
    %c0_i32_0 = arith.constant 0 : i32
    %c0_i32_1 = arith.constant 0 : i32
    return %c0_i32, %c0_i32_0 : i32, i32
  }
  func.func @transform_2(%arg0: i32) -> (i32, i32, i32) {
    %c0_i32 = arith.constant 0 : i32
    %c0_i32_0 = arith.constant 0 : i32
    %c0_i32_1 = arith.constant 0 : i32
    %c0_i32_2 = arith.constant 0 : i32
    return %c0_i32, %c0_i32_0, %c0_i32_1 : i32, i32, i32
  }
  func.func @transform_3(%arg0: i32) -> (i32, i32) {
    %c0_i32 = arith.constant 0 : i32
    %c0_i32_0 = arith.constant 0 : i32
    %c0_i32_1 = arith.constant 0 : i32
    return %c0_i32, %c0_i32_0 : i32, i32
  }
  func.func @transform_4(%arg0: i32) -> (i32, i32) {
    %c0_i32 = arith.constant 0 : i32
    %c0_i32_0 = arith.constant 0 : i32
    %c0_i32_1 = arith.constant 0 : i32
    return %c0_i32, %c0_i32_0 : i32, i32
  }
  func.func @transform_5(%arg0: i32) -> (i32, i32) {
    %c0_i32 = arith.constant 0 : i32
    %c0_i32_0 = arith.constant 0 : i32
    %c0_i32_1 = arith.constant 0 : i32
    return %c0_i32, %c0_i32_0 : i32, i32
  }
  func.func @transform_6(%arg0: i32) -> (i32, i32) {
    %c0_i32 = arith.constant 0 : i32
    %c0_i32_0 = arith.constant 0 : i32
    %c0_i32_1 = arith.constant 0 : i32
    return %c0_i32, %c0_i32_0 : i32, i32
  }
  func.func @transform_7(%arg0: i32) -> (i32, i32) {
    %c0_i32 = arith.constant 0 : i32
    %c0_i32_0 = arith.constant 0 : i32
    %c0_i32_1 = arith.constant 0 : i32
    return %c0_i32, %c0_i32_0 : i32, i32
  }
  func.func @transform_8(%arg0: i32) -> (i32, i32) {
    %c0_i32 = arith.constant 0 : i32
    %c0_i32_0 = arith.constant 0 : i32
    %c0_i32_1 = arith.constant 0 : i32
    return %c0_i32, %c0_i32_0 : i32, i32
  }
}

module attributes {stable_mosaic.version = 11 : i64} {
  func.func @net_kernel(%arg0: i32, %arg1: memref<16x256xf32, #tpu.memory_space<vmem>>, %arg2: memref<16x16xbf16, #tpu.memory_space<vmem>>, %arg3: memref<3x256x1024xbf16, #tpu.memory_space<vmem>>, %arg4: memref<256x768xbf16, #tpu.memory_space<vmem>>, %arg5: memref<8x256xf32, #tpu.memory_space<vmem>>, %arg6: memref<8x16xbf16, #tpu.memory_space<vmem>>, %arg7: memref<8x128xf32, #tpu.memory_space<vmem>>, %arg8: memref<256x128xbf16, #tpu.memory_space<vmem>>, %arg9: memref<8x128xf32, #tpu.memory_space<vmem>>) attributes {dimension_semantics = [#tpu.dimension_semantics<arbitrary>], iteration_bounds = array<i64: 1>, scalar_prefetch = 0 : i64, scratch_operands = 0 : i64, tpu.core_type = #tpu.core_type<tc>, window_params = [{pipeline_mode = #tpu.pipeline_mode<synchronous>, transform_indices = @transform_0, window_bounds = array<i64: 16, 256>}, {pipeline_mode = #tpu.pipeline_mode<synchronous>, transform_indices = @transform_1, window_bounds = array<i64: 16, 16>}, {pipeline_mode = #tpu.pipeline_mode<synchronous>, transform_indices = @transform_2, window_bounds = array<i64: 3, 256, 1024>}, {pipeline_mode = #tpu.pipeline_mode<synchronous>, transform_indices = @transform_3, window_bounds = array<i64: 256, 768>}, {pipeline_mode = #tpu.pipeline_mode<synchronous>, transform_indices = @transform_4, window_bounds = array<i64: 8, 256>}, {pipeline_mode = #tpu.pipeline_mode<synchronous>, transform_indices = @transform_5, window_bounds = array<i64: 8, 16>}, {pipeline_mode = #tpu.pipeline_mode<synchronous>, transform_indices = @transform_6, window_bounds = array<i64: 8, 128>}, {pipeline_mode = #tpu.pipeline_mode<synchronous>, transform_indices = @transform_7, window_bounds = array<i64: 256, 128>}, {pipeline_mode = #tpu.pipeline_mode<synchronous>, transform_indices = @transform_8, window_bounds = array<i64: 8, 128>}]} {
    %c0 = arith.constant 0 : index
    %c0_0 = arith.constant 0 : index
    %0 = vector.load %arg2[%c0, %c0_0] : memref<16x16xbf16, #tpu.memory_space<vmem>>, vector<16x16xbf16>
    %c0_1 = arith.constant 0 : index
    %c0_2 = arith.constant 0 : index
    %1 = vector.load %arg5[%c0_1, %c0_2] : memref<8x256xf32, #tpu.memory_space<vmem>>, vector<1x256xf32>
    %2 = vector.shape_cast %1 : vector<1x256xf32> to vector<1x256xf32>
    %3 = vector.broadcast %2 : vector<1x256xf32> to vector<16x256xf32>
    %c1 = arith.constant 1 : index
    %c0_3 = arith.constant 0 : index
    %4 = vector.load %arg5[%c1, %c0_3] : memref<8x256xf32, #tpu.memory_space<vmem>>, vector<1x256xf32>
    %5 = vector.shape_cast %4 : vector<1x256xf32> to vector<1x256xf32>
    %6 = vector.broadcast %5 : vector<1x256xf32> to vector<16x256xf32>
    %c2 = arith.constant 2 : index
    %c0_4 = arith.constant 0 : index
    %7 = vector.load %arg5[%c2, %c0_4] : memref<8x256xf32, #tpu.memory_space<vmem>>, vector<1x256xf32>
    %8 = vector.shape_cast %7 : vector<1x256xf32> to vector<1x256xf32>
    %9 = vector.broadcast %8 : vector<1x256xf32> to vector<16x256xf32>
    %c3 = arith.constant 3 : index
    %c0_5 = arith.constant 0 : index
    %10 = vector.load %arg5[%c3, %c0_5] : memref<8x256xf32, #tpu.memory_space<vmem>>, vector<1x256xf32>
    %11 = vector.shape_cast %10 : vector<1x256xf32> to vector<1x256xf32>
    %12 = vector.broadcast %11 : vector<1x256xf32> to vector<16x256xf32>
    %c0_6 = arith.constant 0 : index
    %c0_7 = arith.constant 0 : index
    %13 = vector.load %arg4[%c0_6, %c0_7] : memref<256x768xbf16, #tpu.memory_space<vmem>>, vector<256x768xbf16>
    %c0_8 = arith.constant 0 : index
    %c0_9 = arith.constant 0 : index
    %14 = vector.load %arg1[%c0_8, %c0_9] : memref<16x256xf32, #tpu.memory_space<vmem>>, vector<16x256xf32>
    %c0_i32 = arith.constant 0 : i32
    %c3_i32 = arith.constant 3 : i32
    %15 = arith.addi %c0_i32, %c3_i32 : i32
    %c1_i32 = arith.constant 1 : i32
    %16 = scf.for %arg10 = %c0_i32 to %15 step %c1_i32 iter_args(%arg11 = %14) -> (vector<16x256xf32>)  : i32 {
      %42 = arith.truncf %arg11 : vector<16x256xf32> to vector<16x256xbf16>
      %43 = arith.index_cast %arg10 : i32 to index
      %c0_25 = arith.constant 0 : index
      %c0_26 = arith.constant 0 : index
      %44 = vector.load %arg3[%43, %c0_25, %c0_26] : memref<3x256x1024xbf16, #tpu.memory_space<vmem>>, vector<1x256x1024xbf16>
      %45 = vector.shape_cast %44 : vector<1x256x1024xbf16> to vector<256x1024xbf16>
      %cst_27 = arith.constant dense<0.000000e+00> : vector<16x1024xf32>
      %46 = tpu.matmul %42, %45, %cst_27 {dimension_numbers = #tpu.dot_dimension_numbers<[1], [0], [0], [1], [0, 0, 1, 1], [], []>} : vector<16x256xbf16>, vector<256x1024xbf16>, vector<16x1024xf32> -> vector<16x1024xf32>
      %47 = vector.extract_strided_slice %46 {offsets = [0, 0], sizes = [16, 256], strides = [1, 1]} : vector<16x1024xf32> to vector<16x256xf32>
      %48 = arith.truncf %47 : vector<16x256xf32> to vector<16x256xbf16>
      %cst_28 = arith.constant dense<0.000000e+00> : vector<16x256xf32>
      %49 = tpu.matmul %0, %48, %cst_28 {dimension_numbers = #tpu.dot_dimension_numbers<[1], [0], [0], [1], [0, 0, 1, 1], [], []>} : vector<16x16xbf16>, vector<16x256xbf16>, vector<16x256xf32> -> vector<16x256xf32>
      %50 = arith.truncf %49 : vector<16x256xf32> to vector<16x256xbf16>
      %cst_29 = arith.constant dense<0.000000e+00> : vector<16x768xf32>
      %51 = tpu.matmul %50, %13, %cst_29 {dimension_numbers = #tpu.dot_dimension_numbers<[1], [0], [0], [1], [0, 0, 1, 1], [], []>} : vector<16x256xbf16>, vector<256x768xbf16>, vector<16x768xf32> -> vector<16x768xf32>
      %52 = vector.extract_strided_slice %51 {offsets = [0, 0], sizes = [16, 256], strides = [1, 1]} : vector<16x768xf32> to vector<16x256xf32>
      %53 = vector.extract_strided_slice %46 {offsets = [0, 256], sizes = [16, 256], strides = [1, 1]} : vector<16x1024xf32> to vector<16x256xf32>
      %54 = arith.addf %52, %53 : vector<16x256xf32>
      %55 = arith.addf %54, %3 : vector<16x256xf32>
      %56 = arith.negf %55 : vector<16x256xf32>
      %57 = math.exp %56 : vector<16x256xf32>
      %cst_30 = arith.constant 1.000000e+00 : f32
      %58 = vector.broadcast %cst_30 : f32 to vector<16x256xf32>
      %59 = arith.addf %58, %57 : vector<16x256xf32>
      %60 = arith.divf %58, %59 : vector<16x256xf32>
      %61 = vector.extract_strided_slice %51 {offsets = [0, 256], sizes = [16, 256], strides = [1, 1]} : vector<16x768xf32> to vector<16x256xf32>
      %62 = vector.extract_strided_slice %46 {offsets = [0, 512], sizes = [16, 256], strides = [1, 1]} : vector<16x1024xf32> to vector<16x256xf32>
      %63 = arith.addf %61, %62 : vector<16x256xf32>
      %64 = arith.addf %63, %6 : vector<16x256xf32>
      %65 = arith.negf %64 : vector<16x256xf32>
      %66 = math.exp %65 : vector<16x256xf32>
      %cst_31 = arith.constant 1.000000e+00 : f32
      %67 = vector.broadcast %cst_31 : f32 to vector<16x256xf32>
      %68 = arith.addf %67, %66 : vector<16x256xf32>
      %69 = arith.divf %67, %68 : vector<16x256xf32>
      %70 = vector.extract_strided_slice %51 {offsets = [0, 512], sizes = [16, 256], strides = [1, 1]} : vector<16x768xf32> to vector<16x256xf32>
      %71 = arith.addf %70, %9 : vector<16x256xf32>
      %72 = vector.extract_strided_slice %46 {offsets = [0, 768], sizes = [16, 256], strides = [1, 1]} : vector<16x1024xf32> to vector<16x256xf32>
      %73 = arith.addf %72, %12 : vector<16x256xf32>
      %74 = arith.mulf %60, %73 : vector<16x256xf32>
      %75 = arith.addf %71, %74 : vector<16x256xf32>
      %76 = math.tanh %75 : vector<16x256xf32>
      %cst_32 = arith.constant 1.000000e+00 : f32
      %77 = vector.broadcast %cst_32 : f32 to vector<16x256xf32>
      %78 = arith.subf %77, %69 : vector<16x256xf32>
      %79 = arith.mulf %78, %76 : vector<16x256xf32>
      %80 = arith.mulf %69, %arg11 : vector<16x256xf32>
      %81 = arith.addf %79, %80 : vector<16x256xf32>
      scf.yield %81 : vector<16x256xf32>
    }
    %c3_i32_10 = arith.constant 3 : i32
    %c4 = arith.constant 4 : index
    %c0_11 = arith.constant 0 : index
    %17 = vector.load %arg5[%c4, %c0_11] : memref<8x256xf32, #tpu.memory_space<vmem>>, vector<1x256xf32>
    %18 = vector.broadcast %17 : vector<1x256xf32> to vector<16x256xf32>
    %19 = arith.mulf %16, %18 : vector<16x256xf32>
    %c5 = arith.constant 5 : index
    %c0_12 = arith.constant 0 : index
    %20 = vector.load %arg5[%c5, %c0_12] : memref<8x256xf32, #tpu.memory_space<vmem>>, vector<1x256xf32>
    %21 = vector.broadcast %20 : vector<1x256xf32> to vector<16x256xf32>
    %22 = arith.addf %19, %21 : vector<16x256xf32>
    %cst = arith.constant 0.000000e+00 : f32
    %23 = vector.broadcast %cst : f32 to vector<16x256xf32>
    %24 = arith.maximumf %22, %23 : vector<16x256xf32>
    %c0_13 = arith.constant 0 : index
    %c0_14 = arith.constant 0 : index
    %25 = vector.load %arg6[%c0_13, %c0_14] : memref<8x16xbf16, #tpu.memory_space<vmem>>, vector<8x16xbf16>
    %26 = arith.truncf %24 : vector<16x256xf32> to vector<16x256xbf16>
    %cst_15 = arith.constant dense<0.000000e+00> : vector<8x256xf32>
    %27 = tpu.matmul %25, %26, %cst_15 {dimension_numbers = #tpu.dot_dimension_numbers<[1], [0], [0], [1], [0, 0, 1, 1], [], []>} : vector<8x16xbf16>, vector<16x256xbf16>, vector<8x256xf32> -> vector<8x256xf32>
    %28 = arith.truncf %27 : vector<8x256xf32> to vector<8x256xbf16>
    %c0_16 = arith.constant 0 : index
    %c0_17 = arith.constant 0 : index
    %29 = vector.load %arg8[%c0_16, %c0_17] : memref<256x128xbf16, #tpu.memory_space<vmem>>, vector<256x128xbf16>
    %cst_18 = arith.constant dense<0.000000e+00> : vector<8x128xf32>
    %30 = tpu.matmul %28, %29, %cst_18 {dimension_numbers = #tpu.dot_dimension_numbers<[1], [0], [0], [1], [0, 0, 1, 1], [], []>} : vector<8x256xbf16>, vector<256x128xbf16>, vector<8x128xf32> -> vector<8x128xf32>
    %c6 = arith.constant 6 : index
    %c0_19 = arith.constant 0 : index
    %31 = vector.load %arg5[%c6, %c0_19] : memref<8x256xf32, #tpu.memory_space<vmem>>, vector<1x128xf32>
    %c0_20 = arith.constant 0 : index
    %c0_21 = arith.constant 0 : index
    %32 = vector.load %arg7[%c0_20, %c0_21] : memref<8x128xf32, #tpu.memory_space<vmem>>, vector<8x128xf32>
    %33 = arith.mulf %30, %32 : vector<8x128xf32>
    %34 = vector.broadcast %31 : vector<1x128xf32> to vector<8x128xf32>
    %35 = arith.addf %33, %34 : vector<8x128xf32>
    %36 = arith.negf %35 : vector<8x128xf32>
    %37 = math.exp %36 : vector<8x128xf32>
    %cst_22 = arith.constant 1.000000e+00 : f32
    %38 = vector.broadcast %cst_22 : f32 to vector<8x128xf32>
    %39 = arith.addf %38, %37 : vector<8x128xf32>
    %40 = arith.divf %38, %39 : vector<8x128xf32>
    %c0_23 = arith.constant 0 : index
    %c0_24 = arith.constant 0 : index
    %41 = vector.load %arg9[%c0_23, %c0_24] : memref<8x128xf32, #tpu.memory_space<vmem>>, vector<8x128xf32>
    tpu.vector_store %arg9[%c0_23, %c0_24], %40 {strides = array<i32>} : memref<8x128xf32, #tpu.memory_space<vmem>>, vector<8x128xf32>,
    return
  }
  func.func @transform_0(%arg0: i32) -> (i32, i32) {
    %c0_i32 = arith.constant 0 : i32
    %c0_i32_0 = arith.constant 0 : i32
    %c0_i32_1 = arith.constant 0 : i32
    return %c0_i32, %c0_i32_0 : i32, i32
  }
  func.func @transform_1(%arg0: i32) -> (i32, i32) {
    %c0_i32 = arith.constant 0 : i32
    %c0_i32_0 = arith.constant 0 : i32
    %c0_i32_1 = arith.constant 0 : i32
    return %c0_i32, %c0_i32_0 : i32, i32
  }
  func.func @transform_2(%arg0: i32) -> (i32, i32, i32) {
    %c0_i32 = arith.constant 0 : i32
    %c0_i32_0 = arith.constant 0 : i32
    %c0_i32_1 = arith.constant 0 : i32
    %c0_i32_2 = arith.constant 0 : i32
    return %c0_i32, %c0_i32_0, %c0_i32_1 : i32, i32, i32
  }
  func.func @transform_3(%arg0: i32) -> (i32, i32) {
    %c0_i32 = arith.constant 0 : i32
    %c0_i32_0 = arith.constant 0 : i32
    %c0_i32_1 = arith.constant 0 : i32
    return %c0_i32, %c0_i32_0 : i32, i32
  }
  func.func @transform_4(%arg0: i32) -> (i32, i32) {
    %c0_i32 = arith.constant 0 : i32
    %c0_i32_0 = arith.constant 0 : i32
    %c0_i32_1 = arith.constant 0 : i32
    return %c0_i32, %c0_i32_0 : i32, i32
  }
  func.func @transform_5(%arg0: i32) -> (i32, i32) {
    %c0_i32 = arith.constant 0 : i32
    %c0_i32_0 = arith.constant 0 : i32
    %c0_i32_1 = arith.constant 0 : i32
    return %c0_i32, %c0_i32_0 : i32, i32
  }
  func.func @transform_6(%arg0: i32) -> (i32, i32) {
    %c0_i32 = arith.constant 0 : i32
    %c0_i32_0 = arith.constant 0 : i32
    %c0_i32_1 = arith.constant 0 : i32
    return %c0_i32, %c0_i32_0 : i32, i32
  }
  func.func @transform_7(%arg0: i32) -> (i32, i32) {
    %c0_i32 = arith.constant 0 : i32
    %c0_i32_0 = arith.constant 0 : i32
    %c0_i32_1 = arith.constant 0 : i32
    return %c0_i32, %c0_i32_0 : i32, i32
  }
  func.func @transform_8(%arg0: i32) -> (i32, i32) {
    %c0_i32 = arith.constant 0 : i32
    %c0_i32_0 = arith.constant 0 : i32
    %c0_i32_1 = arith.constant 0 : i32
    return %c0_i32, %c0_i32_0 : i32, i32
  }
}

</mosaic_0001>

<bundles_post_ra>
// kernel: tpu_custom_call.1
= control target key start
LH: loop header
LB: loop body
LE: loop exit
PB: predicated region body
PF: predicated region fallthrough
CT: control target
= control target key end

     0   :  { %13 = vsyncpa [#allocation3], 0  ;;  %s3795_s0 = inlined_call_operand.hbm [shape: f32[16,256], index: 0, kind: input, shape index: {}]   ;;  %s3796_s1 = inlined_call_operand.hbm [shape: bf16[16,16], index: 1, kind: input, shape index: {}]   ;;  %s3797_s2 = inlined_call_operand.hbm [shape: bf16[3,256,1024], index: 2, kind: input, shape index: {}]   ;;  %s3798_s3 = inlined_call_operand.hbm [shape: bf16[256,768], index: 3, kind: input, shape index: {}]   ;;  %s3799_s4 = inlined_call_operand.hbm [shape: f32[8,256], index: 4, kind: input, shape index: {}]   ;;  %s3800_s5 = inlined_call_operand.hbm [shape: bf16[8,16], index: 5, kind: input, shape index: {}]   ;;  %s3801_s6 = inlined_call_operand.hbm [shape: f32[8,128], index: 6, kind: input, shape index: {}]   ;;  %s3802_s7 = inlined_call_operand.hbm [shape: bf16[256,128], index: 7, kind: input, shape index: {}]   ;;  %s3803_s8 = inlined_call_operand.hbm [shape: f32[8,128], index: 8, kind: output, shape index: {}]  }
   0x1   :  { %14 = vsyncpa [#allocation6], 0 }
   0x2   :  { %15 = vsyncpa [#allocation9], 0 }
   0x3   :  { %16 = vsyncpa [#allocation12], 0 }
   0x4   :  { %17 = vsyncpa [#allocation15], 0 }
   0x5   :  { %18 = vsyncpa [#allocation4], 0  ;;  %s2966_s27 = smov [#allocation5]   ;;  %s2716_s9 = scalar_lea.hbm %s3796_s1, 128 }
   0x6   :  { %s36_s28 = sshll.u32 %s2966_s27, 4  ;;  %p2717_p0 = scmp.ne.s32.totalorder %s3796_s1, %s2716_s9  ;;  %s37_s28 = int_to_ptr.vmem [resolvable:$true] %s36_s28 }
   0x7   :  { %p2720_p1 = scmp.lt.u32.totalorder %s2716_s9, %s3796_s1 }
   0x9   :  { %p2722_p2 = pnand %p2720_p1, %p2717_p0 }
   0xb   :  { %2725 = shalt.err (!%p2722_p2)
}
   0xc   :  { %s2726_s14 = scalar_lea.vmem %s37_s28, 128  ;;  %p2731_p4 = scmp.lt.s32.totalorder %s37_s28, %s37_s28 }
   0xd   :  { %p2727_p3 = scmp.ne.s32.totalorder %s37_s28, %s2726_s14  ;;  %p2732_p5 = scmp.lt.s32.totalorder %s2726_s14, %s2726_s14 }
   0xf   :  { %p2733_p6 = por %p2732_p5, %p2731_p4 }
  0x11   :  { %p2734_p7 = pnand %p2733_p6, %p2727_p3 }
  0x13   :  { %2737 = shalt.err (!%p2734_p7)
}
  0x14   :  { %s2967_s15 = smov 64   ;;  %s2968_s16 = smov 4  }
  0x15   :  { %42 = dma.hbm_to_vmem [thread:$0]  %s3796_s1, 128, %s37_s28, [#allocation6], %s2967_s15, %s2967_s15, %s2968_s16  }
  0x16   :  { %s2969_s19 = smov [#allocation8]   ;;  %s2738_s23 = scalar_lea.hbm %s3798_s3, 12288 }
  0x17   :  { %s60_s20 = sshll.u32 %s2969_s19, 4  ;;  %p2739_p8 = scmp.ne.s32.totalorder %s3798_s3, %s2738_s23  ;;  %s61_s20 = int_to_ptr.vmem [resolvable:$true] %s60_s20 }
  0x18   :  { %p2742_p9 = scmp.lt.u32.totalorder %s2738_s23, %s3798_s3 }
  0x1a   :  { %p2744_p10 = pnand %p2742_p9, %p2739_p8 }
  0x1c   :  { %2747 = shalt.err (!%p2744_p10)
}
  0x1d   :  { %s2748_s29 = scalar_lea.vmem %s61_s20, 12288  ;;  %p2753_p12 = scmp.lt.s32.totalorder %s61_s20, %s61_s20 }
  0x1e   :  { %p2749_p11 = scmp.ne.s32.totalorder %s61_s20, %s2748_s29  ;;  %p2754_p13 = scmp.lt.s32.totalorder %s2748_s29, %s2748_s29 }
  0x20   :  { %p2755_p0 = por %p2754_p13, %p2753_p12 }
  0x22   :  { %p2756_p1 = pnand %p2755_p0, %p2749_p11 }
  0x24   :  { %2759 = shalt.err (!%p2756_p1)
}
  0x25   :  { %s2970_s1 = smov 384   ;;  %s2971_s28 = smov 24  }
  0x26   :  { %66 = dma.hbm_to_vmem [thread:$0]  %s3798_s3, 12288, %s61_s20, [#allocation9], %s2970_s1, %s2970_s1, %s2971_s28  }
  0x27   :  { %s2972_s10 = smov [#allocation11]   ;;  %s2973_s12 = smov [#allocation2]  }
  0x28   :  { %s83_s11 = sshll.u32 %s2972_s10, 4  ;;  %s24_s13 = sshll.u32 %s2973_s12, 4  ;;  %s84_s11 = int_to_ptr.vmem [resolvable:$true] %s83_s11  ;;  %s3057_s13 = int_to_ptr.vmem [resolvable:$true] %s24_s13 }
  0x29   :  { %s2760_s18 = scalar_lea.hbm %s3800_s5, 64 }
  0x2a   :  { %p2761_p2 = scmp.ne.s32.totalorder %s3800_s5, %s2760_s18  ;;  %p2764_p3 = scmp.lt.u32.totalorder %s2760_s18, %s3800_s5 }
  0x2c   :  { %p2766_p4 = pnand %p2764_p3, %p2761_p2 }
  0x2e   :  { %2769 = shalt.err (!%p2766_p4)
}
  0x2f   :  { %s2770_s3 = scalar_lea.vmem %s84_s11, 64  ;;  %p2775_p6 = scmp.lt.s32.totalorder %s84_s11, %s84_s11 }
  0x30   :  { %p2771_p5 = scmp.ne.s32.totalorder %s84_s11, %s2770_s3  ;;  %p2776_p7 = scmp.lt.s32.totalorder %s2770_s3, %s2770_s3 }
  0x32   :  { %p2777_p8 = por %p2776_p7, %p2775_p6 }
  0x34   :  { %p2778_p9 = pnand %p2777_p8, %p2771_p5 }
  0x36   :  { %2781 = shalt.err (!%p2778_p9)
}
  0x37   :  { %86 = dma.hbm_to_vmem [thread:$0]  %s3800_s5, 64, %s84_s11, [#allocation12]  }
  0x38   :  { %s2782_s27 = scalar_lea.hbm %s3795_s0, 512 }
  0x39   :  { %p2783_p10 = scmp.ne.s32.totalorder %s3795_s0, %s2782_s27  ;;  %p2786_p11 = scmp.lt.u32.totalorder %s2782_s27, %s3795_s0 }
  0x3b   :  { %p2788_p12 = pnand %p2786_p11, %p2783_p10 }
  0x3d   :  { %2791 = shalt.err (!%p2788_p12)
}
  0x3e   :  { %s2792_s9 = scalar_lea.vmem %s3057_s13, 512  ;;  %p2797_p0 = scmp.lt.s32.totalorder %s3057_s13, %s3057_s13 }
  0x3f   :  { %p2793_p13 = scmp.ne.s32.totalorder %s3057_s13, %s2792_s9  ;;  %p2798_p1 = scmp.lt.s32.totalorder %s2792_s9, %s2792_s9 }
  0x41   :  { %p2799_p2 = por %p2798_p1, %p2797_p0 }
  0x43   :  { %p2800_p3 = pnand %p2799_p2, %p2793_p13 }
  0x45   :  { %2803 = shalt.err (!%p2800_p3)
}
  0x46   :  { %s2974_s5 = smov 256   ;;  %s2975_s10 = smov 16  }
  0x47   :  { %30 = dma.hbm_to_vmem [thread:$0]  %s3795_s0, 512, %s3057_s13, [#allocation3], %s2974_s5, %s2974_s5, %s2975_s10  }
  0x48   :  { %s2976_s14 = smov [#allocation7]   ;;  %s2804_s21 = scalar_lea.hbm %s3797_s2, 49152 }
  0x49   :  { %s48_s17 = sshll.u32 %s2976_s14, 4  ;;  %p2805_p4 = scmp.ne.s32.totalorder %s3797_s2, %s2804_s21  ;;  %s49_s17 = int_to_ptr.vmem [resolvable:$true] %s48_s17 }
  0x4a   :  { %p2808_p5 = scmp.lt.u32.totalorder %s2804_s21, %s3797_s2 }
  0x4c   :  { %p2810_p6 = pnand %p2808_p5, %p2805_p4 }
  0x4e   :  { %2813 = shalt.err (!%p2810_p6)
}
  0x4f   :  { %s2814_s24 = scalar_lea.vmem %s49_s17, 49152  ;;  %p2819_p8 = scmp.lt.s32.totalorder %s49_s17, %s49_s17 }
  0x50   :  { %p2815_p7 = scmp.ne.s32.totalorder %s49_s17, %s2814_s24  ;;  %p2820_p9 = scmp.lt.s32.totalorder %s2814_s24, %s2814_s24 }
  0x52   :  { %p2821_p10 = por %p2820_p9, %p2819_p8 }
  0x54   :  { %p2822_p11 = pnand %p2821_p10, %p2815_p7 }
  0x56   :  { %2825 = shalt.err (!%p2822_p11)
}
  0x57   :  { %s2977_s0 = smov 512   ;;  %s2978_s13 = smov 32  }
  0x58   :  { %54 = dma.hbm_to_vmem [thread:$0]  %s3797_s2, 49152, %s49_s17, [#allocation6], %s2977_s0, %s2977_s0, %s2978_s13  }
  0x59   :  { %s2979_s27 = smov [#allocation10]   ;;  %s2980_s1 = smov [#allocation13]  }
  0x5a   :  { %s73_s29 = sshll.u32 %s2979_s27, 4  ;;  %s93_s28 = sshll.u32 %s2980_s1, 4  ;;  %s74_s29 = int_to_ptr.vmem [resolvable:$true] %s73_s29  ;;  %s94_s28 = int_to_ptr.vmem [resolvable:$true] %s93_s28 }
  0x5b   :  { %s2826_s5 = scalar_lea.hbm %s3799_s4, 256 }
  0x5c   :  { %p2827_p12 = scmp.ne.s32.totalorder %s3799_s4, %s2826_s5  ;;  %p2830_p13 = scmp.lt.u32.totalorder %s2826_s5, %s3799_s4 }
  0x5e   :  { %p2832_p0 = pnand %p2830_p13, %p2827_p12 }
  0x60   :  { %2835 = shalt.err (!%p2832_p0)
}
  0x61   :  { %s2836_s2 = scalar_lea.vmem %s74_s29, 256  ;;  %p2841_p2 = scmp.lt.s32.totalorder %s74_s29, %s74_s29 }
  0x62   :  { %p2837_p1 = scmp.ne.s32.totalorder %s74_s29, %s2836_s2  ;;  %p2842_p3 = scmp.lt.s32.totalorder %s2836_s2, %s2836_s2 }
  0x64   :  { %p2843_p4 = por %p2842_p3, %p2841_p2 }
  0x66   :  { %p2844_p5 = pnand %p2843_p4, %p2837_p1 }
  0x68   :  { %2847 = shalt.err (!%p2844_p5)
}
  0x69   :  { %76 = dma.hbm_to_vmem [thread:$0]  %s3799_s4, 256, %s74_s29, [#allocation9]  }
  0x6a   :  { %s2848_s22 = scalar_lea.hbm %s3801_s6, 128 }
  0x6b   :  { %p2849_p6 = scmp.ne.s32.totalorder %s3801_s6, %s2848_s22  ;;  %p2852_p7 = scmp.lt.u32.totalorder %s2848_s22, %s3801_s6 }
  0x6d   :  { %p2854_p8 = pnand %p2852_p7, %p2849_p6 }
  0x6f   :  { %2857 = shalt.err (!%p2854_p8)
}
  0x70   :  { %s2858_s0 = scalar_lea.vmem %s94_s28, 128  ;;  %p2863_p10 = scmp.lt.s32.totalorder %s94_s28, %s94_s28 }
  0x71   :  { %p2859_p9 = scmp.ne.s32.totalorder %s94_s28, %s2858_s0  ;;  %p2864_p11 = scmp.lt.s32.totalorder %s2858_s0, %s2858_s0 }
  0x73   :  { %p2865_p12 = por %p2864_p11, %p2863_p10 }
  0x75   :  { %p2866_p13 = pnand %p2865_p12, %p2859_p9 }
  0x77   :  { %2869 = shalt.err (!%p2866_p13)
}
  0x78   :  { %96 = dma.hbm_to_vmem [thread:$0]  %s3801_s6, 128, %s94_s28, [#allocation12]  }
  0x79   :  { %s2981_s25 = smov [#allocation14]   ;;  %s2870_s1 = scalar_lea.hbm %s3802_s7, 2048 }
  0x7a   :  { %s102_s26 = sshll.u32 %s2981_s25, 4  ;;  %p2871_p0 = scmp.ne.s32.totalorder %s3802_s7, %s2870_s1  ;;  %s103_s26 = int_to_ptr.vmem [resolvable:$true] %s102_s26 }
  0x7b   :  { %p2874_p1 = scmp.lt.u32.totalorder %s2870_s1, %s3802_s7 }
  0x7d   :  { %p2876_p2 = pnand %p2874_p1, %p2871_p0 }
  0x7f   :  { %2879 = shalt.err (!%p2876_p2)
}
  0x80   :  { %s2880_s11 = scalar_lea.vmem %s103_s26, 2048  ;;  %p2885_p4 = scmp.lt.s32.totalorder %s103_s26, %s103_s26 }
  0x81   :  { %p2881_p3 = scmp.ne.s32.totalorder %s103_s26, %s2880_s11  ;;  %p2886_p5 = scmp.lt.s32.totalorder %s2880_s11, %s2880_s11 }
  0x83   :  { %p2887_p6 = por %p2886_p5, %p2885_p4 }
  0x85   :  { %p2888_p7 = pnand %p2887_p6, %p2881_p3 }
  0x87   :  { %2891 = shalt.err (!%p2888_p7)
}
  0x88   :  { %108 = dma.hbm_to_vmem [thread:$0]  %s3802_s7, 2048, %s103_s26, [#allocation15], %s2967_s15, %s2967_s15, %s2968_s16  }
  0x89   :  { %2934 = dma.done.wait [#allocation3], 512  }
  0x8a   :  { %2935 = vsyncadd [#allocation3], 4294966784 }
  0x8b   :  { %2936 = dma.done.wait [#allocation6], 49280  }
  0x8c   :  { %2937 = vsyncadd [#allocation6], 4294918016 }
  0x8d   :  { %2938 = dma.done.wait [#allocation9], 12544  }
  0x8e   :  { %2939 = vsyncadd [#allocation9], 4294954752 }
  0x8f   :  { %2940 = dma.done.wait [#allocation12], 192  }
  0x90   :  { %2941 = vsyncadd [#allocation12], 4294967104 }
  0x91   :  { %2942 = dma.done.wait [#allocation15], 2048  }
  0x92   :  { %2943 = vsyncadd [#allocation15], 4294965248  ;;  %v138_v0 = vlaneseq  ;;  %v3143_v4 = vld [vmem:[#allocation5] sm:$0xf]  ;;  %v3145_v5 = vld [vmem:[#allocation5 + $0x4] sm:$0xf] }
  0x93   :  { %3945 = vst [vmem:[#allocation25_spill] sm:$0xff] %v3143_v4  ;;  %3946 = vst [vmem:[#allocation26_spill] sm:$0xff] %v3145_v5  ;;  %v3147_v6 = vld [vmem:[#allocation8] sm:$0xff]  ;;  %v3173_v19 = vld [vmem:[#allocation8 + $0x8] sm:$0xff]  ;;  %s3371_s7 = smov 0  }
  0x94   :  { %v139_v1 = vshrl.u32 %v138_v0, 7  ;;  %3947 = vst [vmem:[#allocation27_spill] sm:$0xff] %v3147_v6  ;;  %v136_v7 = vld [vmem:[#allocation10] ss:$8 sm:$0x3]  ;;  %3956 = vst [vmem:[#allocation36_spill] sm:$0xff] %v3173_v19 }
  0x95   :  { %v149_v8 = vld [vmem:[#allocation10 + $0x1] ss:$8 sm:$0x3]  ;;  %v162_v13 = vld [vmem:[#allocation10 + $0x2] ss:$8 sm:$0x3] }
  0x96   :  { %v3139_v2 = vsub.s32 0, %v139_v1  ;;  %v3141_v3 = vsub.s32 1, %v139_v1  ;;  %v175_v14 = vld [vmem:[#allocation10 + $0x3] ss:$8 sm:$0x3]  ;;  %v3175_v20 = vld [vmem:[#allocation8 + $0x10] sm:$0xff] }
  0x97   :  { %3957 = vst [vmem:[#allocation37_spill] sm:$0xff] %v3175_v20  ;;  %v3177_v21 = vld [vmem:[#allocation8 + $0x18] sm:$0xff]  ;;  %v3179_v22 = vld [vmem:[#allocation8 + $0x20] sm:$0xff]  ;;  %v3181_v23 = vld [vmem:[#allocation8 + $0x28] sm:$0xff] }
  0x98   :  { %3943 = vst [vmem:[#allocation23_spill] sm:$0xff] %v3139_v2  ;;  %3944 = vst [vmem:[#allocation24_spill] sm:$0xff] %v3141_v3  ;;  %v3150_v9 = vrot.slane %v136_v7, %v3139_v2  ;;  %v3153_v10 = vrot.slane %v136_v7, %v3141_v3  ;;  %v3156_v11 = vrot.slane %v149_v8, %v3139_v2  ;;  %v3183_v24 = vld [vmem:[#allocation8 + $0x30] sm:$0xff]  ;;  %v3185_v25 = vld [vmem:[#allocation8 + $0x38] sm:$0xff] }
  0x99   :  { %v3159_v12 = vrot.slane %v149_v8, %v3141_v3  ;;  %v3162_v15 = vrot.slane %v162_v13, %v3139_v2  ;;  %v3165_v16 = vrot.slane %v162_v13, %v3141_v3  ;;  %v3168_v17 = vrot.slane %v175_v14, %v3139_v2  ;;  %3958 = vst [vmem:[#allocation38_spill] sm:$0xff] %v3177_v21  ;;  %v3187_v26 = vld [vmem:[#allocation8 + $0x40] sm:$0xff]  ;;  %v3189_v27 = vld [vmem:[#allocation8 + $0x48] sm:$0xff]  ;;  %v3191_v28 = vld [vmem:[#allocation8 + $0x50] sm:$0xff] }
  0x9a   :  { %3948 = vst [vmem:[#allocation28_spill] sm:$0xff] %v3150_v9  ;;  %3949 = vst [vmem:[#allocation29_spill] sm:$0xff] %v3153_v10  ;;  %v3171_v18 = vrot.slane %v175_v14, %v3141_v3  ;;  %v3193_v29 = vld [vmem:[#allocation8 + $0x58] sm:$0xff]  ;;  %v3195_v30 = vld [vmem:[#allocation8 + $0x60] sm:$0xff] }
  0x9b   :  { %3950 = vst [vmem:[#allocation30_spill] sm:$0xff] %v3156_v11  ;;  %3951 = vst [vmem:[#allocation31_spill] sm:$0xff] %v3159_v12  ;;  %v3197_v31 = vld [vmem:[#allocation8 + $0x68] sm:$0xff]  ;;  %v3199_v32 = vld [vmem:[#allocation8 + $0x70] sm:$0xff] }
  0x9c   :  { %3952 = vst [vmem:[#allocation32_spill] sm:$0xff] %v3162_v15  ;;  %3953 = vst [vmem:[#allocation33_spill] sm:$0xff] %v3165_v16  ;;  %v3201_v33 = vld [vmem:[#allocation8 + $0x78] sm:$0xff]  ;;  %v3203_v34 = vld [vmem:[#allocation8 + $0x80] sm:$0xff] }
  0x9d   :  { %3954 = vst [vmem:[#allocation34_spill] sm:$0xff] %v3168_v17  ;;  %3955 = vst [vmem:[#allocation35_spill] sm:$0xff] %v3171_v18  ;;  %v3205_v35 = vld [vmem:[#allocation8 + $0x88] sm:$0xff]  ;;  %v3207_v36 = vld [vmem:[#allocation8 + $0x90] sm:$0xff] }
  0x9e   :  { %3959 = vst [vmem:[#allocation39_spill] sm:$0xff] %v3179_v22  ;;  %3960 = vst [vmem:[#allocation40_spill] sm:$0xff] %v3181_v23  ;;  %v3209_v37 = vld [vmem:[#allocation8 + $0x98] sm:$0xff]  ;;  %v3211_v38 = vld [vmem:[#allocation8 + $0xa0] sm:$0xff] }
  0x9f   :  { %3961 = vst [vmem:[#allocation41_spill] sm:$0xff] %v3183_v24  ;;  %3962 = vst [vmem:[#allocation42_spill] sm:$0xff] %v3187_v26  ;;  %v3213_v39 = vld [vmem:[#allocation8 + $0xa8] sm:$0xff]  ;;  %v3215_v40 = vld [vmem:[#allocation8 + $0xb0] sm:$0xff] }
  0xa0   :  { %3963 = vst [vmem:[#allocation43_spill] sm:$0xff] %v3193_v29  ;;  %3964 = vst [vmem:[#allocation44_spill] sm:$0xff] %v3199_v32  ;;  %v3217_v41 = vld [vmem:[#allocation8 + $0xb8] sm:$0xff]  ;;  %v3219_v42 = vld [vmem:[#allocation8 + $0xc0] sm:$0xff] }
  0xa1   :  { %3965 = vst [vmem:[#allocation45_spill] sm:$0xff] %v3205_v35  ;;  %3966 = vst [vmem:[#allocation46_spill] sm:$0xff] %v3211_v38  ;;  %v3221_v43 = vld [vmem:[#allocation8 + $0xc8] sm:$0xff]  ;;  %v3223_v44 = vld [vmem:[#allocation8 + $0xd0] sm:$0xff] }
  0xa2   :  { %3967 = vst [vmem:[#allocation47_spill] sm:$0xff] %v3217_v41  ;;  %3968 = vst [vmem:[#allocation48_spill] sm:$0xff] %v3223_v44  ;;  %v3225_v45 = vld [vmem:[#allocation8 + $0xd8] sm:$0xff]  ;;  %v3227_v46 = vld [vmem:[#allocation8 + $0xe0] sm:$0xff] }
  0xa3   :  { %v3229_v47 = vld [vmem:[#allocation8 + $0xe8] sm:$0xff]  ;;  %v3231_v48 = vld [vmem:[#allocation8 + $0xf0] sm:$0xff]  ;;  %v3233_v49 = vld [vmem:[#allocation8 + $0xf8] sm:$0xff] }
  0xa4   :  { %3969 = vst [vmem:[#allocation49_spill] sm:$0xff] %v3229_v47  ;;  %v3235_v50 = vld [vmem:[#allocation8 + $0x100] sm:$0xff]  ;;  %v3237_v51 = vld [vmem:[#allocation8 + $0x108] sm:$0xff]  ;;  %v3239_v52 = vld [vmem:[#allocation8 + $0x110] sm:$0xff] }
  0xa5   :  { %3970 = vst [vmem:[#allocation50_spill] sm:$0xff] %v3235_v50  ;;  %v3241_v53 = vld [vmem:[#allocation8 + $0x118] sm:$0xff]  ;;  %v3243_v54 = vld [vmem:[#allocation8 + $0x120] sm:$0xff]  ;;  %v3245_v55 = vld [vmem:[#allocation8 + $0x128] sm:$0xff] }
  0xa6   :  { %3971 = vst [vmem:[#allocation51_spill] sm:$0xff] %v3241_v53  ;;  %v3247_v56 = vld [vmem:[#allocation8 + $0x130] sm:$0xff]  ;;  %v3249_v57 = vld [vmem:[#allocation8 + $0x138] sm:$0xff]  ;;  %v3251_v58 = vld [vmem:[#allocation8 + $0x140] sm:$0xff] }
  0xa7   :  { %3972 = vst [vmem:[#allocation52_spill] sm:$0xff] %v3247_v56  ;;  %v3253_v59 = vld [vmem:[#allocation8 + $0x148] sm:$0xff]  ;;  %v3255_v60 = vld [vmem:[#allocation8 + $0x150] sm:$0xff]  ;;  %v3257_v61 = vld [vmem:[#allocation8 + $0x158] sm:$0xff] }
  0xa8   :  { %3973 = vst [vmem:[#allocation53_spill] sm:$0xff] %v3253_v59  ;;  %v3259_v62 = vld [vmem:[#allocation8 + $0x160] sm:$0xff]  ;;  %v3261_v63 = vld [vmem:[#allocation8 + $0x168] sm:$0xff]  ;;  %v3263_v0 = vld [vmem:[#allocation8 + $0x170] sm:$0xff] }
  0xa9   :  { %3974 = vst [vmem:[#allocation54_spill] sm:$0xff] %v3259_v62  ;;  %3975 = vst [vmem:[#allocation55_spill] sm:$0xff] %v3263_v0  ;;  %v3265_v1 = vld [vmem:[#allocation8 + $0x178] sm:$0xff]  ;;  %v3267_v7 = vld [vmem:[#allocation8 + $0x180] sm:$0xff] }
  0xaa   :  { %3976 = vst [vmem:[#allocation56_spill] sm:$0xff] %v3265_v1  ;;  %3977 = vst [vmem:[#allocation57_spill] sm:$0xff] %v3267_v7  ;;  %v3269_v8 = vld [vmem:[#allocation8 + $0x188] sm:$0xff]  ;;  %v3271_v13 = vld [vmem:[#allocation8 + $0x190] sm:$0xff] }
  0xab   :  { %3978 = vst [vmem:[#allocation58_spill] sm:$0xff] %v3269_v8  ;;  %3979 = vst [vmem:[#allocation59_spill] sm:$0xff] %v3271_v13  ;;  %v3273_v14 = vld [vmem:[#allocation8 + $0x198] sm:$0xff]  ;;  %v3275_v2 = vld [vmem:[#allocation8 + $0x1a0] sm:$0xff] }
  0xac   :  { %3980 = vst [vmem:[#allocation60_spill] sm:$0xff] %v3273_v14  ;;  %3981 = vst [vmem:[#allocation61_spill] sm:$0xff] %v3275_v2  ;;  %v3277_v3 = vld [vmem:[#allocation8 + $0x1a8] sm:$0xff]  ;;  %v3279_v16 = vld [vmem:[#allocation8 + $0x1b0] sm:$0xff] }
  0xad   :  { %3982 = vst [vmem:[#allocation62_spill] sm:$0xff] %v3277_v3  ;;  %3983 = vst [vmem:[#allocation63_spill] sm:$0xff] %v3279_v16  ;;  %v3281_v15 = vld [vmem:[#allocation8 + $0x1b8] sm:$0xff]  ;;  %v3283_v12 = vld [vmem:[#allocation8 + $0x1c0] sm:$0xff] }
  0xae   :  { %3984 = vst [vmem:[#allocation64_spill] sm:$0xff] %v3281_v15  ;;  %3985 = vst [vmem:[#allocation65_spill] sm:$0xff] %v3283_v12  ;;  %v3285_v11 = vld [vmem:[#allocation8 + $0x1c8] sm:$0xff]  ;;  %v3287_v18 = vld [vmem:[#allocation8 + $0x1d0] sm:$0xff] }
  0xaf   :  { %3986 = vst [vmem:[#allocation66_spill] sm:$0xff] %v3285_v11  ;;  %3987 = vst [vmem:[#allocation67_spill] sm:$0xff] %v3287_v18  ;;  %v3289_v17 = vld [vmem:[#allocation8 + $0x1d8] sm:$0xff]  ;;  %v3291_v10 = vld [vmem:[#allocation8 + $0x1e0] sm:$0xff] }
  0xb0   :  { %3988 = vst [vmem:[#allocation68_spill] sm:$0xff] %v3289_v17  ;;  %3989 = vst [vmem:[#allocation69_spill] sm:$0xff] %v3291_v10  ;;  %v3293_v9 = vld [vmem:[#allocation8 + $0x1e8] sm:$0xff]  ;;  %v3295_v13 = vld [vmem:[#allocation8 + $0x1f0] sm:$0xff] }
  0xb1   :  { %3990 = vst [vmem:[#allocation70_spill] sm:$0xff] %v3293_v9  ;;  %3991 = vst [vmem:[#allocation71_spill] sm:$0xff] %v3295_v13  ;;  %v3297_v62 = vld [vmem:[#allocation8 + $0x1f8] sm:$0xff]  ;;  %v3299_v3 = vld [vmem:[#allocation8 + $0x200] sm:$0xff] }
  0xb2   :  { %3992 = vst [vmem:[#allocation72_spill] sm:$0xff] %v3297_v62  ;;  %3993 = vst [vmem:[#allocation73_spill] sm:$0xff] %v3299_v3  ;;  %v3301_v1 = vld [vmem:[#allocation8 + $0x208] sm:$0xff]  ;;  %v3303_v56 = vld [vmem:[#allocation8 + $0x210] sm:$0xff] }
  0xb3   :  { %3994 = vst [vmem:[#allocation74_spill] sm:$0xff] %v3301_v1  ;;  %3995 = vst [vmem:[#allocation75_spill] sm:$0xff] %v3303_v56  ;;  %v3305_v12 = vld [vmem:[#allocation8 + $0x218] sm:$0xff]  ;;  %v3307_v59 = vld [vmem:[#allocation8 + $0x220] sm:$0xff] }
  0xb4   :  { %3996 = vst [vmem:[#allocation76_spill] sm:$0xff] %v3305_v12  ;;  %3997 = vst [vmem:[#allocation77_spill] sm:$0xff] %v3307_v59  ;;  %v3309_v50 = vld [vmem:[#allocation8 + $0x228] sm:$0xff]  ;;  %v3311_v17 = vld [vmem:[#allocation8 + $0x230] sm:$0xff] }
  0xb5   :  { %3998 = vst [vmem:[#allocation78_spill] sm:$0xff] %v3309_v50  ;;  %3999 = vst [vmem:[#allocation79_spill] sm:$0xff] %v3311_v17  ;;  %v3313_v53 = vld [vmem:[#allocation8 + $0x238] sm:$0xff]  ;;  %v3315_v44 = vld [vmem:[#allocation8 + $0x240] sm:$0xff] }
  0xb6   :  { %4000 = vst [vmem:[#allocation80_spill] sm:$0xff] %v3313_v53  ;;  %4001 = vst [vmem:[#allocation81_spill] sm:$0xff] %v3315_v44  ;;  %v3317_v13 = vld [vmem:[#allocation8 + $0x248] sm:$0xff]  ;;  %v3319_v47 = vld [vmem:[#allocation8 + $0x250] sm:$0xff] }
  0xb7   :  { %4002 = vst [vmem:[#allocation82_spill] sm:$0xff] %v3317_v13  ;;  %4003 = vst [vmem:[#allocation83_spill] sm:$0xff] %v3319_v47  ;;  %v3321_v38 = vld [vmem:[#allocation8 + $0x258] sm:$0xff]  ;;  %v3323_v1 = vld [vmem:[#allocation8 + $0x260] sm:$0xff] }
  0xb8   :  { %4004 = vst [vmem:[#allocation84_spill] sm:$0xff] %v3321_v38  ;;  %4005 = vst [vmem:[#allocation85_spill] sm:$0xff] %v3323_v1  ;;  %v3325_v41 = vld [vmem:[#allocation8 + $0x268] sm:$0xff]  ;;  %v3327_v32 = vld [vmem:[#allocation8 + $0x270] sm:$0xff] }
  0xb9   :  { %4006 = vst [vmem:[#allocation86_spill] sm:$0xff] %v3325_v41  ;;  %4007 = vst [vmem:[#allocation87_spill] sm:$0xff] %v3327_v32  ;;  %v3329_v59 = vld [vmem:[#allocation8 + $0x278] sm:$0xff]  ;;  %v3331_v35 = vld [vmem:[#allocation8 + $0x280] sm:$0xff] }
  0xba   :  { %4008 = vst [vmem:[#allocation88_spill] sm:$0xff] %v3329_v59  ;;  %4009 = vst [vmem:[#allocation89_spill] sm:$0xff] %v3331_v35  ;;  %v3333_v26 = vld [vmem:[#allocation8 + $0x288] sm:$0xff]  ;;  %v3335_v53 = vld [vmem:[#allocation8 + $0x290] sm:$0xff] }
  0xbb   :  { %4010 = vst [vmem:[#allocation90_spill] sm:$0xff] %v3333_v26  ;;  %4011 = vst [vmem:[#allocation91_spill] sm:$0xff] %v3335_v53  ;;  %v3337_v29 = vld [vmem:[#allocation8 + $0x298] sm:$0xff]  ;;  %v3339_v20 = vld [vmem:[#allocation8 + $0x2a0] sm:$0xff] }
  0xbc   :  { %4012 = vst [vmem:[#allocation92_spill] sm:$0xff] %v3337_v29  ;;  %4013 = vst [vmem:[#allocation93_spill] sm:$0xff] %v3339_v20  ;;  %v3341_v47 = vld [vmem:[#allocation8 + $0x2a8] sm:$0xff]  ;;  %v3343_v23 = vld [vmem:[#allocation8 + $0x2b0] sm:$0xff] }
  0xbd   :  { %4014 = vst [vmem:[#allocation94_spill] sm:$0xff] %v3341_v47  ;;  %4015 = vst [vmem:[#allocation95_spill] sm:$0xff] %v3343_v23  ;;  %v3345_v44 = vld [vmem:[#allocation8 + $0x2b8] sm:$0xff]  ;;  %v3347_v41 = vld [vmem:[#allocation8 + $0x2c0] sm:$0xff] }
  0xbe   :  { %4016 = vst [vmem:[#allocation96_spill] sm:$0xff] %v3345_v44  ;;  %4017 = vst [vmem:[#allocation97_spill] sm:$0xff] %v3347_v41  ;;  %v3349_v32 = vld [vmem:[#allocation8 + $0x2c8] sm:$0xff]  ;;  %v3351_v59 = vld [vmem:[#allocation8 + $0x2d0] sm:$0xff] }
  0xbf   :  { %4018 = vst [vmem:[#allocation98_spill] sm:$0xff] %v3349_v32  ;;  %4019 = vst [vmem:[#allocation99_spill] sm:$0xff] %v3351_v59  ;;  %v3353_v35 = vld [vmem:[#allocation8 + $0x2d8] sm:$0xff]  ;;  %v3355_v26 = vld [vmem:[#allocation8 + $0x2e0] sm:$0xff] }
  0xc0   :  { %4020 = vst [vmem:[#allocation100_spill] sm:$0xff] %v3353_v35  ;;  %4021 = vst [vmem:[#allocation101_spill] sm:$0xff] %v3355_v26  ;;  %v3357_v53 = vld [vmem:[#allocation8 + $0x2e8] sm:$0xff]  ;;  %v3359_v29 = vld [vmem:[#allocation8 + $0x2f0] sm:$0xff] }
  0xc1   :  { %4022 = vst [vmem:[#allocation102_spill] sm:$0xff] %v3357_v53  ;;  %4023 = vst [vmem:[#allocation103_spill] sm:$0xff] %v3359_v29  ;;  %v3361_v20 = vld [vmem:[#allocation8 + $0x2f8] sm:$0xff]  ;;  %v284_v23 = vld [vmem:[#allocation2 + $0x8] sm:$0xff]  }
  0xc2   :  { %4024 = vst [vmem:[#allocation104_spill] sm:$0xff] %v3361_v20  ;;  %v283_v47 = vld [vmem:[#allocation2] sm:$0xff]   ;;  %v285_v38 = vld [vmem:[#allocation2 + $0x10] sm:$0xff]   ;;  %v286_v44 = vld [vmem:[#allocation2 + $0x18] sm:$0xff]  }
  0xc3 LB: > { %v4025_v24 = vld [vmem:[#allocation41_spill] sm:$0xff]  ;;  %v4026_v22 = vld [vmem:[#allocation39_spill] sm:$0xff]  ;;  %v4027_v21 = vld [vmem:[#allocation38_spill] sm:$0xff]  ;;  %4040 = vst [vmem:[#allocation105_spill] sm:$0xff] %v2948_v44  ;;  %s2566_s15 = sshll.u32 %s2964_s7, 10  ;;  %v3391_v26 = vpack.c.bf16 %v2948_v44, %v2956_v23  ;;  %vm1249_vm0 = vcmask 130048   ;;  %s2964_s7 = sphi %s3371_s7, %s292_s7   ;;  %v2960_v47 = vphi %v283_v47, %v4138_v47   ;;  %v2956_v23 = vphi %v284_v23, %v4137_v23   ;;  %v2952_v38 = vphi %v285_v38, %v4136_v38   ;;  %v2948_v44 = vphi %v286_v44, %v4135_v44  }
  0xc4   : > { %v4028_v19 = vld [vmem:[#allocation36_spill] sm:$0xff]  ;;  %v4029_v18 = vld [vmem:[#allocation67_spill] sm:$0xff]  ;;  %v4033_v11 = vld [vmem:[#allocation66_spill] sm:$0xff]  ;;  %4041 = vst [vmem:[#allocation106_spill] sm:$0xff] %v2952_v38  ;;  %s3393_s16 = scalar_lea.vmem [#allocation7], %s2566_s15  ;;  %s292_s7 = sadd.s32 1, %s2964_s7  }
  0xc5   : > { %v4030_v16 = vld [vmem:[#allocation63_spill] sm:$0xff]  ;;  %v4031_v15 = vld [vmem:[#allocation64_spill] sm:$0xff]  ;;  %v4034_v8 = vld [vmem:[#allocation58_spill] sm:$0xff]  ;;  %4042 = vst [vmem:[#allocation107_spill] sm:$0xff] %v2956_v23  ;;  %1102 = vmatprep.mubr.bf16.mxu0 %v3391_v26  ;;  %1145 = vmatprep.mubr.bf16.mxu1 %v3391_v26  ;;  %p289_p8 = scmp.ge.s32.totalorder %s292_s7, 3  }
  0xc6   : > { %v4032_v14 = vld [vmem:[#allocation60_spill] sm:$0xff]  ;;  %v4035_v7 = vld [vmem:[#allocation57_spill] sm:$0xff]  ;;  %v4036_v6 = vld [vmem:[#allocation27_spill] sm:$0xff]  ;;  %4043 = vst [vmem:[#allocation108_spill] sm:$0xff] %v2960_v47  ;;  %s2984_s12 = smov (%p289_p8), [#allocation16]  }
  0xc7   : > { %v4037_v3 = vld [vmem:[#allocation73_spill] sm:$0xff]  ;;  %v4039_v0 = vld [vmem:[#allocation55_spill] sm:$0xff]  ;;  %v4044_v5 = vld [vmem:[#allocation26_spill] sm:$0xff]  ;;  %s2280_s14 = sshll.u32 (%p289_p8), %s2984_s12, 4  ;;  %s2281_s14 = int_to_ptr.vmem [resolvable:$true] %s2280_s14 }
  0xc8   : > { %v4038_v2 = vld [vmem:[#allocation61_spill] sm:$0xff]  ;;  %s2892_s2 = scalar_lea.vmem (%p289_p8), %s2281_s14, 128  ;;  %p2897_p10 = scmp.lt.s32.totalorder (%p289_p8), %s2281_s14, %s2281_s14 }
  0xc9   : > { %v302_v20 = vld [vmem:[%s3393_s16] sm:$0xff]  ;;  %p2893_p9 = scmp.ne.s32.totalorder (%p289_p8), %s2281_s14, %s2892_s2  ;;  %p2898_p11 = scmp.lt.s32.totalorder (%p289_p8), %s2892_s2, %s2892_s2 }
  0xca   : > { %v306_v32 = vld [vmem:[%s3393_s16 + $0x20] sm:$0xff] }
  0xcb   : > { %v310_v35 = vld [vmem:[%s3393_s16 + $0x40] sm:$0xff]  ;;  %v2315_v29 = vcombine.high %v302_v20, %v306_v32  ;;  %v2314_v44 = vcombine.low %v302_v20, %v306_v32  ;;  %p2899_p12 = por (%p289_p8), %p2898_p11, %p2897_p10 }
  0xcc   : > { %v314_v23 = vld [vmem:[%s3393_s16 + $0x60] sm:$0xff] }
  0xcd   : > { %v2323_v59 = vcombine.high %v310_v35, %v314_v23  ;;  %v318_v53 = vld [vmem:[%s3393_s16 + $0x80] sm:$0xff]  ;;  %1070 = vmatprep.subr.bf16.mxu0 %v2315_v29  ;;  %v2322_v13 = vcombine.low %v310_v35, %v314_v23  ;;  %p2900_p13 = pnand (%p289_p8), %p2899_p12, %p2893_p9 }
  0xce   : > { %v322_v41 = vld [vmem:[%s3393_s16 + $0xa0] sm:$0xff]  ;;  %1071 = vmatpush1.bf16.msra.mxu0 %v2314_v44 }
  0xcf   : > { %1072 = vmatprep.subr.bf16.mxu0 %v2323_v59  ;;  %v2331_v1 = vcombine.high %v318_v53, %v322_v41  ;;  %v326_v56 = vld [vmem:[%s3393_s16 + $0xc0] sm:$0xff]  ;;  %v2330_v12 = vcombine.low %v318_v53, %v322_v41 }
  0xd0   : > { %v330_v50 = vld [vmem:[%s3393_s16 + $0xe0] sm:$0xff] }
  0xd1   : > { %v2339_v20 = vcombine.high %v326_v56, %v330_v50  ;;  %v334_v32 = vld [vmem:[%s3393_s16 + $0x100] sm:$0xff]  ;;  %v2338_v10 = vcombine.low %v326_v56, %v330_v50 }
  0xd2   : > { %1073 = vmatpush1.bf16.msra.mxu0 %v2322_v13  ;;  %v338_v17 = vld [vmem:[%s3393_s16 + $0x120] sm:$0xff] }
  0xd3   : > { %1074 = vmatprep.subr.bf16.mxu0 %v2331_v1  ;;  %v2347_v29 = vcombine.high %v334_v32, %v338_v17  ;;  %v342_v23 = vld [vmem:[%s3393_s16 + $0x140] sm:$0xff]  ;;  %v2346_v44 = vcombine.low %v334_v32, %v338_v17 }
  0xd4   : > { %v346_v35 = vld [vmem:[%s3393_s16 + $0x160] sm:$0xff] }
  0xd5   : > { %v2355_v59 = vcombine.high %v342_v23, %v346_v35  ;;  %v350_v41 = vld [vmem:[%s3393_s16 + $0x180] sm:$0xff]  ;;  %v2354_v1 = vcombine.low %v342_v23, %v346_v35 }
  0xd6   : > { %1075 = vmatpush1.bf16.msra.mxu0 %v2330_v12  ;;  %v354_v53 = vld [vmem:[%s3393_s16 + $0x1a0] sm:$0xff] }
  0xd7   : > { %1076 = vmatprep.subr.bf16.mxu0 %v2339_v20  ;;  %v2363_v12 = vcombine.high %v350_v41, %v354_v53  ;;  %v358_v50 = vld [vmem:[%s3393_s16 + $0x1c0] sm:$0xff]  ;;  %v2362_v13 = vcombine.low %v350_v41, %v354_v53 }
  0xd8   : > { %v362_v56 = vld [vmem:[%s3393_s16 + $0x1e0] sm:$0xff] }
  0xd9   : > { %v366_v17 = vld [vmem:[%s3393_s16 + $0x200] sm:$0xff]  ;;  %v2370_v32 = vcombine.low %v358_v50, %v362_v56 }
  0xda   : > { %1077 = vmatpush1.bf16.msra.mxu0 %v2338_v10  ;;  %v2371_v10 = vcombine.high %v358_v50, %v362_v56  ;;  %v370_v20 = vld [vmem:[%s3393_s16 + $0x220] sm:$0xff] }
  0xdb   : > { %1078 = vmatprep.subr.bf16.mxu0 %v2347_v29  ;;  %v2379_v29 = vcombine.high %v366_v17, %v370_v20  ;;  %v374_v23 = vld [vmem:[%s3393_s16 + $0x240] sm:$0xff] }
  0xdc   : > { %v378_v35 = vld [vmem:[%s3393_s16 + $0x260] sm:$0xff] }
  0xdd   : > { %v382_v41 = vld [vmem:[%s3393_s16 + $0x280] sm:$0xff] }
  0xde   : > { %1079 = vmatpush1.bf16.msra.mxu0 %v2346_v44  ;;  %v2378_v44 = vcombine.low %v366_v17, %v370_v20  ;;  %v386_v53 = vld [vmem:[%s3393_s16 + $0x2a0] sm:$0xff] }
  0xdf   : > { %1080 = vmatprep.subr.bf16.mxu0 %v2355_v59  ;;  %v2387_v59 = vcombine.high %v374_v23, %v378_v35  ;;  %v390_v50 = vld [vmem:[%s3393_s16 + $0x2c0] sm:$0xff] }
  0xe0   : > { %v394_v56 = vld [vmem:[%s3393_s16 + $0x2e0] sm:$0xff] }
  0xe1   : > { %v398_v17 = vld [vmem:[%s3393_s16 + $0x300] sm:$0xff] }
  0xe2   : > { %1081 = vmatpush1.bf16.msra.mxu0 %v2354_v1  ;;  %v2386_v1 = vcombine.low %v374_v23, %v378_v35  ;;  %v402_v20 = vld [vmem:[%s3393_s16 + $0x320] sm:$0xff] }
  0xe3   : > { %1082 = vmatprep.subr.bf16.mxu0 %v2363_v12  ;;  %v2395_v12 = vcombine.high %v382_v41, %v386_v53  ;;  %v406_v23 = vld [vmem:[%s3393_s16 + $0x340] sm:$0xff] }
  0xe4   : > { %v410_v35 = vld [vmem:[%s3393_s16 + $0x360] sm:$0xff] }
  0xe5   : > { %v4045_v4 = vld [vmem:[#allocation25_spill] sm:$0xff] }
  0xe6   : > { %1083 = vmatpush1.bf16.msra.mxu0 %v2362_v13  ;;  %v2394_v13 = vcombine.low %v382_v41, %v386_v53  ;;  %v414_v41 = vld [vmem:[%s3393_s16 + $0x380] sm:$0xff] }
  0xe7   : > { %1084 = vmatprep.subr.bf16.mxu0 %v2371_v10  ;;  %v2403_v10 = vcombine.high %v390_v50, %v394_v56  ;;  %v418_v53 = vld [vmem:[%s3393_s16 + $0x3a0] sm:$0xff] }
  0xea   : > { %1085 = vmatpush1.bf16.msra.mxu0 %v2370_v32  ;;  %v2402_v32 = vcombine.low %v390_v50, %v394_v56  ;;  %v422_v50 = vld [vmem:[%s3393_s16 + $0x3c0] sm:$0xff] }
  0xeb   : > { %1086 = vmatprep.subr.bf16.mxu0 %v2379_v29  ;;  %v2411_v29 = vcombine.high %v398_v17, %v402_v20  ;;  %v426_v56 = vld [vmem:[%s3393_s16 + $0x3e0] sm:$0xff] }
  0xee   : > { %1087 = vmatpush1.bf16.msra.mxu0 %v2378_v44  ;;  %v2410_v44 = vcombine.low %v398_v17, %v402_v20  ;;  %v304_v17 = vld [vmem:[%s3393_s16 + $0x10] sm:$0xff] }
  0xef   : > { %1088 = vmatprep.subr.bf16.mxu0 %v2387_v59  ;;  %v2419_v59 = vcombine.high %v406_v23, %v410_v35  ;;  %v308_v20 = vld [vmem:[%s3393_s16 + $0x30] sm:$0xff] }
  0xf2   : > { %1089 = vmatpush1.bf16.msra.mxu0 %v2386_v1  ;;  %v2418_v1 = vcombine.low %v406_v23, %v410_v35  ;;  %v316_v23 = vld [vmem:[%s3393_s16 + $0x70] sm:$0xff]  ;;  %v3435_v35 = vpack.c.bf16 %v2952_v38, %v2960_v47 }
  0xf3   : > { %1090 = vmatprep.subr.bf16.mxu0 %v2395_v12  ;;  %v2427_v12 = vcombine.high %v414_v41, %v418_v53  ;;  %v420_v47 = vld [vmem:[%s3393_s16 + $0x3b0] sm:$0xff] }
  0xf6   : > { %1091 = vmatpush1.bf16.msra.mxu0 %v2394_v13  ;;  %v2426_v13 = vcombine.low %v414_v41, %v418_v53  ;;  %v320_v53 = vld [vmem:[%s3393_s16 + $0x90] sm:$0xff] }
  0xf7   : > { %1092 = vmatprep.subr.bf16.mxu0 %v2403_v10  ;;  %v2435_v10 = vcombine.high %v422_v50, %v426_v56 }
  0xfa   : > { %1093 = vmatpush1.bf16.msra.mxu0 %v2402_v32  ;;  %v2434_v32 = vcombine.low %v422_v50, %v426_v56  ;;  %v328_v56 = vld [vmem:[%s3393_s16 + $0xd0] sm:$0xff] }
  0xfb   : > { %1094 = vmatprep.subr.bf16.mxu0 %v2411_v29  ;;  %v2319_v29 = vcombine.high %v304_v17, %v308_v20 }
  0xfe   : > { %1095 = vmatpush1.bf16.msra.mxu0 %v2410_v44  ;;  %v312_v44 = vld [vmem:[%s3393_s16 + $0x50] sm:$0xff] }
  0xff   : > { %1096 = vmatprep.subr.bf16.mxu0 %v2419_v59  ;;  %v2318_v59 = vcombine.low %v304_v17, %v308_v20  ;;  %v2327_v41 = vcombine.high %v312_v44, %v316_v23  ;;  %v336_v20 = vld [vmem:[%s3393_s16 + $0x110] sm:$0xff] }
 0x102   : > { %1097 = vmatpush1.bf16.msra.mxu0 %v2418_v1  ;;  %v324_v1 = vld [vmem:[%s3393_s16 + $0xb0] sm:$0xff] }
 0x103   : > { %1098 = vmatprep.subr.bf16.mxu0 %v2427_v12  ;;  %v2326_v12 = vcombine.low %v312_v44, %v316_v23  ;;  %v2335_v50 = vcombine.high %v320_v53, %v324_v1  ;;  %v344_v23 = vld [vmem:[%s3393_s16 + $0x150] sm:$0xff] }
 0x106   : > { %1099 = vmatpush1.bf16.msra.mxu0 %v2426_v13  ;;  %v332_v13 = vld [vmem:[%s3393_s16 + $0xf0] sm:$0xff] }
 0x107   : > { %1100 = vmatprep.subr.bf16.mxu0 %v2435_v10  ;;  %v2334_v10 = vcombine.low %v320_v53, %v324_v1  ;;  %v2343_v17 = vcombine.high %v328_v56, %v332_v13  ;;  %v352_v53 = vld [vmem:[%s3393_s16 + $0x190] sm:$0xff] }
 0x108   : > { %v356_v1 = vld [vmem:[%s3393_s16 + $0x1b0] sm:$0xff] }
 0x10a   : > { %1101 = vmatpush1.bf16.msra.mxu0 %v2434_v32  ;;  %v340_v32 = vld [vmem:[%s3393_s16 + $0x130] sm:$0xff] }
 0x10b   : > { %1156 = vmatprep.subr.bf16.mxu0 %v2319_v29  ;;  %v2342_v29 = vcombine.low %v328_v56, %v332_v13  ;;  %v2351_v44 = vcombine.high %v336_v20, %v340_v32  ;;  %v360_v56 = vld [vmem:[%s3393_s16 + $0x1d0] sm:$0xff] }
 0x10c   : > { %v364_v13 = vld [vmem:[%s3393_s16 + $0x1f0] sm:$0xff] }
 0x10d   : > { %1103 = vmatmul.mubr.bf16.vlgmr.msra.gmra.mrb[0].mxu0 %v3435_v35 }
 0x10e   : > { %1157 = vmatpush1.bf16.msra.mxu0 %v2318_v59  ;;  %1188 = vmatprep.mubr.bf16.mxu0 %v3391_v26  ;;  %v348_v59 = vld [vmem:[%s3393_s16 + $0x170] sm:$0xff] }
 0x10f   : > { %1158 = vmatprep.subr.bf16.mxu0 %v2327_v41  ;;  %v2350_v41 = vcombine.low %v336_v20, %v340_v32  ;;  %v368_v20 = vld [vmem:[%s3393_s16 + $0x210] sm:$0xff] }
 0x110   : > { %v372_v32 = vld [vmem:[%s3393_s16 + $0x230] sm:$0xff] }
 0x112   : > { %1159 = vmatpush1.bf16.msra.mxu0 %v2326_v12  ;;  %v2359_v12 = vcombine.high %v344_v23, %v348_v59 }
 0x113   : > { %1160 = vmatprep.subr.bf16.mxu0 %v2335_v50  ;;  %v2358_v50 = vcombine.low %v344_v23, %v348_v59  ;;  %v376_v23 = vld [vmem:[%s3393_s16 + $0x250] sm:$0xff] }
 0x114   : > { %v380_v59 = vld [vmem:[%s3393_s16 + $0x270] sm:$0xff] }
 0x116   : > { %1161 = vmatpush1.bf16.msra.mxu0 %v2334_v10  ;;  %v2367_v10 = vcombine.high %v352_v53, %v356_v1 }
 0x117   : > { %1162 = vmatprep.subr.bf16.mxu0 %v2343_v17  ;;  %v2366_v17 = vcombine.low %v352_v53, %v356_v1  ;;  %v384_v53 = vld [vmem:[%s3393_s16 + $0x290] sm:$0xff] }
 0x118   : > { %v388_v1 = vld [vmem:[%s3393_s16 + $0x2b0] sm:$0xff] }
 0x11a   : > { %1163 = vmatpush1.bf16.msra.mxu0 %v2342_v29  ;;  %v2375_v29 = vcombine.high %v360_v56, %v364_v13 }
 0x11b   : > { %1164 = vmatprep.subr.bf16.mxu0 %v2351_v44  ;;  %v2374_v44 = vcombine.low %v360_v56, %v364_v13  ;;  %v392_v56 = vld [vmem:[%s3393_s16 + $0x2d0] sm:$0xff] }
 0x11c   : > { %v396_v13 = vld [vmem:[%s3393_s16 + $0x2f0] sm:$0xff] }
 0x11e   : > { %1165 = vmatpush1.bf16.msra.mxu0 %v2350_v41  ;;  %v2383_v41 = vcombine.high %v368_v20, %v372_v32 }
 0x11f   : > { %1166 = vmatprep.subr.bf16.mxu0 %v2359_v12  ;;  %v2382_v12 = vcombine.low %v368_v20, %v372_v32  ;;  %v400_v20 = vld [vmem:[%s3393_s16 + $0x310] sm:$0xff] }
 0x120   : > { %v404_v32 = vld [vmem:[%s3393_s16 + $0x330] sm:$0xff] }
 0x122   : > { %1167 = vmatpush1.bf16.msra.mxu0 %v2358_v50  ;;  %v2391_v50 = vcombine.high %v376_v23, %v380_v59 }
 0x123   : > { %1168 = vmatprep.subr.bf16.mxu0 %v2367_v10  ;;  %v2390_v10 = vcombine.low %v376_v23, %v380_v59  ;;  %v408_v23 = vld [vmem:[%s3393_s16 + $0x350] sm:$0xff] }
 0x124   : > { %v412_v59 = vld [vmem:[%s3393_s16 + $0x370] sm:$0xff] }
 0x125   : > { %v2423_v38 = vcombine.high %v408_v23, %v412_v59 }
 0x126   : > { %1169 = vmatpush1.bf16.msra.mxu0 %v2366_v17  ;;  %v2399_v17 = vcombine.high %v384_v53, %v388_v1 }
 0x127   : > { %1170 = vmatprep.subr.bf16.mxu0 %v2375_v29  ;;  %v2398_v29 = vcombine.low %v384_v53, %v388_v1  ;;  %v2422_v53 = vcombine.low %v408_v23, %v412_v59 }
 0x12a   : > { %1171 = vmatpush1.bf16.msra.mxu0 %v2374_v44  ;;  %v2407_v44 = vcombine.high %v392_v56, %v396_v13 }
 0x12b   : > { %1172 = vmatprep.subr.bf16.mxu0 %v2383_v41  ;;  %v2406_v41 = vcombine.low %v392_v56, %v396_v13  ;;  %v428_v56 = vld [vmem:[%s3393_s16 + $0x3f0] sm:$0xff] }
 0x12e   : > { %1173 = vmatpush1.bf16.msra.mxu0 %v2382_v12  ;;  %v2415_v12 = vcombine.high %v400_v20, %v404_v32 }
 0x12f   : > { %1174 = vmatprep.subr.bf16.mxu0 %v2391_v50  ;;  %v2414_v50 = vcombine.low %v400_v20, %v404_v32  ;;  %v2982_v20 = vmov 0   ;;  %v307_v32 = vld [vmem:[%s3393_s16 + $0x28] sm:$0xff] }
 0x132   : > { %1175 = vmatpush1.bf16.msra.mxu0 %v2390_v10  ;;  %v416_v10 = vld [vmem:[%s3393_s16 + $0x390] sm:$0xff] }
 0x133   : > { %1176 = vmatprep.subr.bf16.mxu0 %v2399_v17  ;;  %v2431_v1 = vcombine.high %v416_v10, %v420_v47  ;;  %v424_v17 = vld [vmem:[%s3393_s16 + $0x3d0] sm:$0xff]  ;;  %v2430_v13 = vcombine.low %v416_v10, %v420_v47  ;;  %v315_v47 = vld [vmem:[%s3393_s16 + $0x68] sm:$0xff] }
 0x134   : > { %v323_v10 = vld [vmem:[%s3393_s16 + $0xa8] sm:$0xff] }
 0x136   : > { %1177 = vmatpush1.bf16.msra.mxu0 %v2398_v29  ;;  %v2439_v29 = vcombine.high %v424_v17, %v428_v56 }
 0x137   : > { %1178 = vmatprep.subr.bf16.mxu0 %v2407_v44  ;;  %v2438_v44 = vcombine.low %v424_v17, %v428_v56  ;;  %v327_v17 = vld [vmem:[%s3393_s16 + $0xc8] sm:$0xff] }
 0x138   : > { %v331_v56 = vld [vmem:[%s3393_s16 + $0xe8] sm:$0xff] }
 0x13a   : > { %1179 = vmatpush1.bf16.msra.mxu0 %v2406_v41  ;;  %v311_v41 = vld [vmem:[%s3393_s16 + $0x48] sm:$0xff] }
 0x13b   : > { %1180 = vmatprep.subr.bf16.mxu0 %v2415_v12  ;;  %v2325_v59 = vcombine.high %v311_v41, %v315_v47 }
 0x13e   : > { %1181 = vmatpush1.bf16.msra.mxu0 %v2414_v50  ;;  %v319_v50 = vld [vmem:[%s3393_s16 + $0x88] sm:$0xff] }
 0x13f   : > { %1182 = vmatprep.subr.bf16.mxu0 %v2423_v38  ;;  %v303_v38 = vld [vmem:[%s3393_s16 + $0x8] sm:$0xff] }
 0x140   : > { %v2317_v12 = vcombine.high %v303_v38, %v307_v32  ;;  %v2316_v23 = vcombine.low %v303_v38, %v307_v32  ;;  %v2340_v38 = vcombine.low %v327_v17, %v331_v56 }
 0x142   : > { %1183 = vmatpush1.bf16.msra.mxu0 %v2422_v53  ;;  %1113 = vmatprep.subr.bf16.mxu1 %v2317_v12  ;;  %v2324_v53 = vcombine.low %v311_v41, %v315_v47  ;;  %v343_v41 = vld [vmem:[%s3393_s16 + $0x148] sm:$0xff] }
 0x143   : > { %1184 = vmatprep.subr.bf16.mxu0 %v2431_v1  ;;  %1114 = vmatpush1.bf16.msra.mxu1 %v2316_v23  ;;  %v2333_v1 = vcombine.high %v319_v50, %v323_v10  ;;  %v347_v12 = vld [vmem:[%s3393_s16 + $0x168] sm:$0xff] }
 0x144   : > { %1115 = vmatprep.subr.bf16.mxu1 %v2325_v59  ;;  %v2357_v47 = vcombine.high %v343_v41, %v347_v12  ;;  %v351_v59 = vld [vmem:[%s3393_s16 + $0x188] sm:$0xff] }
 0x146   : > { %1185 = vmatpush1.bf16.msra.mxu0 %v2430_v13  ;;  %v2332_v13 = vcombine.low %v319_v50, %v323_v10  ;;  %v355_v50 = vld [vmem:[%s3393_s16 + $0x1a8] sm:$0xff]  ;;  %v2356_v10 = vcombine.low %v343_v41, %v347_v12 }
 0x147   : > { %1186 = vmatprep.subr.bf16.mxu0 %v2439_v29  ;;  %1116 = vmatpush1.bf16.msra.mxu1 %v2324_v53  ;;  %v2341_v29 = vcombine.high %v327_v17, %v331_v56  ;;  %v2365_v53 = vcombine.high %v351_v59, %v355_v50  ;;  %v363_v17 = vld [vmem:[%s3393_s16 + $0x1e8] sm:$0xff]  ;;  %v2364_v56 = vcombine.low %v351_v59, %v355_v50 }
 0x148   : > { %1117 = vmatprep.subr.bf16.mxu1 %v2333_v1  ;;  %v359_v1 = vld [vmem:[%s3393_s16 + $0x1c8] sm:$0xff] }
 0x149   : > { %v379_v41 = vld [vmem:[%s3393_s16 + $0x268] sm:$0xff] }
 0x14a   : > { %1187 = vmatpush1.bf16.msra.mxu0 %v2438_v44  ;;  %v335_v44 = vld [vmem:[%s3393_s16 + $0x108] sm:$0xff] }
 0x14b   : > { %1118 = vmatpush1.bf16.msra.mxu1 %v2332_v13  ;;  %v2373_v13 = vcombine.high %v359_v1, %v363_v17  ;;  %v387_v59 = vld [vmem:[%s3393_s16 + $0x2a8] sm:$0xff] }
 0x14c   : > { %1119 = vmatprep.subr.bf16.mxu1 %v2341_v29  ;;  %v367_v29 = vld [vmem:[%s3393_s16 + $0x208] sm:$0xff] }
 0x14d   : > { %1189 = vmatmul.mubr.bf16.vlgmr.msra.gmra.mrb[4].mxu0 %v3435_v35 }
 0x14e   : > { %1285 = vmatprep.mubr.bf16.mxu0 %v2982_v20  ;;  %v339_v20 = vld [vmem:[%s3393_s16 + $0x128] sm:$0xff] }
 0x14f   : > { %v2349_v32 = vcombine.high %v335_v44, %v339_v20  ;;  %1120 = vmatpush1.bf16.msra.mxu1 %v2340_v38  ;;  %v2348_v23 = vcombine.low %v335_v44, %v339_v20  ;;  %v371_v44 = vld [vmem:[%s3393_s16 + $0x228] sm:$0xff]  ;;  %v2372_v20 = vcombine.low %v359_v1, %v363_v17 }
 0x150   : > { %v2381_v38 = vcombine.high %v367_v29, %v371_v44  ;;  %v2380_v12 = vcombine.low %v367_v29, %v371_v44  ;;  %v395_v1 = vld [vmem:[%s3393_s16 + $0x2e8] sm:$0xff] }
 0x151   : > { %1121 = vmatprep.subr.bf16.mxu1 %v2349_v32  ;;  %v375_v32 = vld [vmem:[%s3393_s16 + $0x248] sm:$0xff] }
 0x152   : > { %v2388_v50 = vcombine.low %v375_v32, %v379_v41  ;;  %v403_v29 = vld [vmem:[%s3393_s16 + $0x328] sm:$0xff] }
 0x153   : > { %1122 = vmatpush1.bf16.msra.mxu1 %v2348_v23  ;;  %v2389_v23 = vcombine.high %v375_v32, %v379_v41  ;;  %v411_v32 = vld [vmem:[%s3393_s16 + $0x368] sm:$0xff] }
 0x154   : > { %1123 = vmatprep.subr.bf16.mxu1 %v2357_v47  ;;  %v383_v47 = vld [vmem:[%s3393_s16 + $0x288] sm:$0xff] }
 0x155   : > { %v2396_v17 = vcombine.low %v383_v47, %v387_v59 }
 0x157   : > { %1124 = vmatpush1.bf16.msra.mxu1 %v2356_v10  ;;  %v2397_v10 = vcombine.high %v383_v47, %v387_v59  ;;  %v419_v47 = vld [vmem:[%s3393_s16 + $0x3a8] sm:$0xff] }
 0x158   : > { %1125 = vmatprep.subr.bf16.mxu1 %v2365_v53  ;;  %v391_v53 = vld [vmem:[%s3393_s16 + $0x2c8] sm:$0xff] }
 0x159   : > { %v2404_v44 = vcombine.low %v391_v53, %v395_v1 }
 0x15b   : > { %1126 = vmatpush1.bf16.msra.mxu1 %v2364_v56  ;;  %v2405_v56 = vcombine.high %v391_v53, %v395_v1  ;;  %v427_v53 = vld [vmem:[%s3393_s16 + $0x3e8] sm:$0xff] }
 0x15c   : > { %1127 = vmatprep.subr.bf16.mxu1 %v2373_v13  ;;  %v399_v13 = vld [vmem:[%s3393_s16 + $0x308] sm:$0xff] }
 0x15d   : > { %v2412_v41 = vcombine.low %v399_v13, %v403_v29 }
 0x15f   : > { %1128 = vmatpush1.bf16.msra.mxu1 %v2372_v20  ;;  %v2413_v20 = vcombine.high %v399_v13, %v403_v29  ;;  %v309_v13 = vld [vmem:[%s3393_s16 + $0x38] sm:$0xff] }
 0x160   : > { %1129 = vmatprep.subr.bf16.mxu1 %v2381_v38  ;;  %v407_v38 = vld [vmem:[%s3393_s16 + $0x348] sm:$0xff] }
 0x161   : > { %v2420_v59 = vcombine.low %v407_v38, %v411_v32 }
 0x163   : > { %1130 = vmatpush1.bf16.msra.mxu1 %v2380_v12  ;;  %v2421_v12 = vcombine.high %v407_v38, %v411_v32  ;;  %v317_v38 = vld [vmem:[%s3393_s16 + $0x78] sm:$0xff] }
 0x164   : > { %1131 = vmatprep.subr.bf16.mxu1 %v2389_v23  ;;  %v415_v23 = vld [vmem:[%s3393_s16 + $0x388] sm:$0xff] }
 0x165   : > { %v2428_v1 = vcombine.low %v415_v23, %v419_v47 }
 0x167   : > { %1132 = vmatpush1.bf16.msra.mxu1 %v2388_v50  ;;  %v2429_v50 = vcombine.high %v415_v23, %v419_v47  ;;  %v325_v23 = vld [vmem:[%s3393_s16 + $0xb8] sm:$0xff] }
 0x168   : > { %1133 = vmatprep.subr.bf16.mxu1 %v2397_v10  ;;  %v423_v10 = vld [vmem:[%s3393_s16 + $0x3c8] sm:$0xff] }
 0x169   : > { %v2436_v29 = vcombine.low %v423_v10, %v427_v53 }
 0x16b   : > { %1134 = vmatpush1.bf16.msra.mxu1 %v2396_v17  ;;  %v2437_v17 = vcombine.high %v423_v10, %v427_v53  ;;  %v333_v10 = vld [vmem:[%s3393_s16 + $0xf8] sm:$0xff] }
 0x16c   : > { %1135 = vmatprep.subr.bf16.mxu1 %v2405_v56  ;;  %v305_v56 = vld [vmem:[%s3393_s16 + $0x18] sm:$0xff] }
 0x16d   : > { %v2320_v32 = vcombine.low %v305_v56, %v309_v13 }
 0x16f   : > { %1136 = vmatpush1.bf16.msra.mxu1 %v2404_v44  ;;  %v2321_v44 = vcombine.high %v305_v56, %v309_v13  ;;  %v341_v56 = vld [vmem:[%s3393_s16 + $0x138] sm:$0xff] }
 0x170   : > { %1137 = vmatprep.subr.bf16.mxu1 %v2413_v20  ;;  %v313_v20 = vld [vmem:[%s3393_s16 + $0x58] sm:$0xff] }
 0x171   : > { %v2328_v47 = vcombine.low %v313_v20, %v317_v38 }
 0x173   : > { %1138 = vmatpush1.bf16.msra.mxu1 %v2412_v41  ;;  %v2329_v41 = vcombine.high %v313_v20, %v317_v38 }
 0x174   : > { %1139 = vmatprep.subr.bf16.mxu1 %v2421_v12  ;;  %v321_v12 = vld [vmem:[%s3393_s16 + $0x98] sm:$0xff] }
 0x175   : > { %v2336_v53 = vcombine.low %v321_v12, %v325_v23 }
 0x177   : > { %1140 = vmatpush1.bf16.msra.mxu1 %v2420_v59  ;;  %v2337_v59 = vcombine.high %v321_v12, %v325_v23 }
 0x178   : > { %1141 = vmatprep.subr.bf16.mxu1 %v2429_v50  ;;  %v329_v50 = vld [vmem:[%s3393_s16 + $0xd8] sm:$0xff] }
 0x179   : > { %v2344_v13 = vcombine.low %v329_v50, %v333_v10 }
 0x17b   : > { %1142 = vmatpush1.bf16.msra.mxu1 %v2428_v1  ;;  %v2345_v1 = vcombine.high %v329_v50, %v333_v10 }
 0x17c   : > { %1143 = vmatprep.subr.bf16.mxu1 %v2437_v17  ;;  %v337_v17 = vld [vmem:[%s3393_s16 + $0x118] sm:$0xff] }
 0x17d   : > { %v2352_v20 = vcombine.low %v337_v17, %v341_v56 }
 0x17f   : > { %1144 = vmatpush1.bf16.msra.mxu1 %v2436_v29  ;;  %v2353_v29 = vcombine.high %v337_v17, %v341_v56 }
 0x180   : > { %1199 = vmatprep.subr.bf16.mxu1 %v2321_v44  ;;  %v349_v44 = vld [vmem:[%s3393_s16 + $0x178] sm:$0xff] }
 0x182   : > { %1146 = vmatmul.mubr.bf16.vlgmr.msra.gmra.mrb[0].mxu1 %v3435_v35 }
 0x183   : > { %1200 = vmatpush1.bf16.msra.mxu1 %v2320_v32  ;;  %1231 = vmatprep.mubr.bf16.mxu1 %v3391_v26  ;;  %v345_v26 = vld [vmem:[%s3393_s16 + $0x158] sm:$0xff] }
 0x184   : > { %1201 = vmatprep.subr.bf16.mxu1 %v2329_v41  ;;  %v2361_v38 = vcombine.high %v345_v26, %v349_v44  ;;  %v353_v32 = vld [vmem:[%s3393_s16 + $0x198] sm:$0xff]  ;;  %v2360_v12 = vcombine.low %v345_v26, %v349_v44 }
 0x185   : > { %v357_v41 = vld [vmem:[%s3393_s16 + $0x1b8] sm:$0xff] }
 0x186   : > { %v2369_v23 = vcombine.high %v353_v32, %v357_v41  ;;  %v2368_v50 = vcombine.low %v353_v32, %v357_v41 }
 0x187   : > { %1202 = vmatpush1.bf16.msra.mxu1 %v2328_v47  ;;  %v361_v47 = vld [vmem:[%s3393_s16 + $0x1d8] sm:$0xff] }
 0x188   : > { %1203 = vmatprep.subr.bf16.mxu1 %v2337_v59  ;;  %v365_v59 = vld [vmem:[%s3393_s16 + $0x1f8] sm:$0xff] }
 0x189   : > { %v2377_v10 = vcombine.high %v361_v47, %v365_v59  ;;  %v2376_v17 = vcombine.low %v361_v47, %v365_v59 }
 0x18b   : > { %1204 = vmatpush1.bf16.msra.mxu1 %v2336_v53  ;;  %v369_v53 = vld [vmem:[%s3393_s16 + $0x218] sm:$0xff] }
 0x18c   : > { %1205 = vmatprep.subr.bf16.mxu1 %v2345_v1  ;;  %v373_v1 = vld [vmem:[%s3393_s16 + $0x238] sm:$0xff] }
 0x18d   : > { %v2385_v56 = vcombine.high %v369_v53, %v373_v1  ;;  %v2384_v26 = vcombine.low %v369_v53, %v373_v1 }
 0x18f   : > { %1206 = vmatpush1.bf16.msra.mxu1 %v2344_v13  ;;  %v377_v13 = vld [vmem:[%s3393_s16 + $0x258] sm:$0xff] }
 0x190   : > { %1207 = vmatprep.subr.bf16.mxu1 %v2353_v29  ;;  %v381_v29 = vld [vmem:[%s3393_s16 + $0x278] sm:$0xff] }
 0x191   : > { %v2393_v44 = vcombine.high %v377_v13, %v381_v29  ;;  %v2392_v32 = vcombine.low %v377_v13, %v381_v29 }
 0x193   : > { %1208 = vmatpush1.bf16.msra.mxu1 %v2352_v20  ;;  %v385_v20 = vld [vmem:[%s3393_s16 + $0x298] sm:$0xff] }
 0x194   : > { %1209 = vmatprep.subr.bf16.mxu1 %v2361_v38  ;;  %v389_v38 = vld [vmem:[%s3393_s16 + $0x2b8] sm:$0xff] }
 0x195   : > { %v2401_v41 = vcombine.high %v385_v20, %v389_v38  ;;  %v2400_v47 = vcombine.low %v385_v20, %v389_v38 }
 0x197   : > { %1210 = vmatpush1.bf16.msra.mxu1 %v2360_v12  ;;  %v393_v12 = vld [vmem:[%s3393_s16 + $0x2d8] sm:$0xff] }
 0x198   : > { %1211 = vmatprep.subr.bf16.mxu1 %v2369_v23  ;;  %v397_v23 = vld [vmem:[%s3393_s16 + $0x2f8] sm:$0xff] }
 0x199   : > { %v2409_v59 = vcombine.high %v393_v12, %v397_v23  ;;  %v2408_v53 = vcombine.low %v393_v12, %v397_v23 }
 0x19b   : > { %1212 = vmatpush1.bf16.msra.mxu1 %v2368_v50  ;;  %v401_v50 = vld [vmem:[%s3393_s16 + $0x318] sm:$0xff] }
 0x19c   : > { %1213 = vmatprep.subr.bf16.mxu1 %v2377_v10  ;;  %v405_v10 = vld [vmem:[%s3393_s16 + $0x338] sm:$0xff] }
 0x19d   : > { %v2417_v1 = vcombine.high %v401_v50, %v405_v10  ;;  %v2416_v13 = vcombine.low %v401_v50, %v405_v10  ;;  %v2447_v10 = vcombine.high %v4028_v19, %v4026_v22 }
 0x19f   : > { %1214 = vmatpush1.bf16.msra.mxu1 %v2376_v17  ;;  %v409_v17 = vld [vmem:[%s3393_s16 + $0x358] sm:$0xff] }
 0x1a0   : > { %1215 = vmatprep.subr.bf16.mxu1 %v2385_v56  ;;  %v413_v56 = vld [vmem:[%s3393_s16 + $0x378] sm:$0xff] }
 0x1a1   : > { %v2425_v29 = vcombine.high %v409_v17, %v413_v56  ;;  %v2424_v20 = vcombine.low %v409_v17, %v413_v56  ;;  %v2445_v56 = vcombine.high %v4036_v6, %v4027_v21 }
 0x1a3   : > { %1216 = vmatpush1.bf16.msra.mxu1 %v2384_v26  ;;  %v417_v26 = vld [vmem:[%s3393_s16 + $0x398] sm:$0xff] }
 0x1a4   : > { %1217 = vmatprep.subr.bf16.mxu1 %v2393_v44  ;;  %v421_v44 = vld [vmem:[%s3393_s16 + $0x3b8] sm:$0xff] }
 0x1a5   : > { %v2433_v38 = vcombine.high %v417_v26, %v421_v44 }
 0x1a7   : > { %1218 = vmatpush1.bf16.msra.mxu1 %v2392_v32 }
 0x1a8   : > { %1219 = vmatprep.subr.bf16.mxu1 %v2401_v41  ;;  %v425_v41 = vld [vmem:[%s3393_s16 + $0x3d8] sm:$0xff] }
 0x1ab   : > { %1220 = vmatpush1.bf16.msra.mxu1 %v2400_v47  ;;  %v429_v47 = vld [vmem:[%s3393_s16 + $0x3f8] sm:$0xff] }
 0x1ac   : > { %1221 = vmatprep.subr.bf16.mxu1 %v2409_v59  ;;  %v2432_v59 = vcombine.low %v417_v26, %v421_v44  ;;  %v2440_v17 = vcombine.low %v425_v41, %v429_v47  ;;  %v2452_v26 = vcombine.low %v3185_v25, %v3191_v28  ;;  %v2459_v44 = vcombine.high %v3197_v31, %v3203_v34 }
 0x1af   : > { %1222 = vmatpush1.bf16.msra.mxu1 %v2408_v53  ;;  %v2441_v53 = vcombine.high %v425_v41, %v429_v47  ;;  %v2465_v41 = vcombine.high %v3209_v37, %v3215_v40  ;;  %v2463_v47 = vcombine.high %v3207_v36, %v3213_v39 }
 0x1b0   : > { %1223 = vmatprep.subr.bf16.mxu1 %v2417_v1  ;;  %v2442_v1 = vcombine.low %v4045_v4, %v4044_v5 }
 0x1b3   : > { %1224 = vmatpush1.bf16.msra.mxu1 %v2416_v13  ;;  %v2446_v13 = vcombine.low %v4028_v19, %v4026_v22 }
 0x1b4   : > { %1225 = vmatprep.subr.bf16.mxu1 %v2425_v29  ;;  %v2444_v29 = vcombine.low %v4036_v6, %v4027_v21 }
 0x1b7   : > { %1226 = vmatpush1.bf16.msra.mxu1 %v2424_v20  ;;  %v2450_v20 = vcombine.low %v4025_v24, %v3189_v27 }
 0x1b8   : > { %1227 = vmatprep.subr.bf16.mxu1 %v2433_v38  ;;  %v2457_v38 = vcombine.high %v3195_v30, %v3201_v33 }
 0x1bb   : > { %1228 = vmatpush1.bf16.msra.mxu1 %v2432_v59  ;;  %v2462_v59 = vcombine.low %v3207_v36, %v3213_v39 }
 0x1bc   : > { %1229 = vmatprep.subr.bf16.mxu1 %v2441_v53  ;;  %v2469_v53 = vcombine.high %v3219_v42, %v3225_v45 }
 0x1bf   : > { %1230 = vmatpush1.bf16.msra.mxu1 %v2440_v17  ;;  %v2475_v17 = vcombine.high %v3231_v48, %v3237_v51 }
 0x1c0   : > { %1778 = vmatprep.subr.bf16.mxu1 %v2445_v56  ;;  %v2476_v56 = vcombine.low %v3233_v49, %v3239_v52 }
 0x1c2   : > { %1232 = vmatmul.mubr.bf16.vlgmr.msra.gmra.mrb[4].mxu1 %v3435_v35  ;;  %v2456_v35 = vcombine.low %v3195_v30, %v3201_v33  ;;  %v2700_v33 = vld [vmem:[#allocation14 + $0x50] sm:$0xff] (%p289_p8)  }
 0x1c3   : > { %1779 = vmatpush1.bf16.msra.mxu1 %v2444_v29  ;;  %v2481_v29 = vcombine.high %v3243_v54, %v3249_v57 }
 0x1e0   : > { %v1104_v32 = vpop.f32.mrb[0].mxu0 }
 0x1e1   : > { %v1106_v12 = vpop.f32.mrb[1].mxu0 }
 0x1e2   : > { %v1108_v23 = vpop.f32.mrb[2].mxu0 }
 0x1e3   : > { %v1242_v62 = vpack.c.bf16 %v1108_v23, %v1104_v32  ;;  %v1110_v9 = vpop.f32.mrb[3].mxu0  ;;  %v2458_v32 = vcombine.low %v3197_v31, %v3203_v34  ;;  %v2471_v23 = vcombine.high %v3221_v43, %v3227_v46  ;;  %v2699_v31 = vld [vmem:[#allocation14 + $0x8] sm:$0xff] (%p289_p8)  }
 0x1e4   : > { %v1243_v50 = vpack.c.bf16 %v1110_v9, %v1106_v12  ;;  %v2453_v9 = vcombine.high %v3185_v25, %v3191_v28  ;;  %v2464_v12 = vcombine.low %v3209_v37, %v3215_v40 }
 0x1e6   : > { %1253 = vmatprep.subr.bf16.mxu0 %v1243_v50  ;;  %v2470_v50 = vcombine.low %v3221_v43, %v3227_v46  ;;  %v2702_v43 = vld [vmem:[#allocation14 + $0x58] sm:$0xff] (%p289_p8)  }
 0x1e7   : > { %1254 = vmatpush1.bf16.msra.mxu0 %v1242_v62  ;;  %v2451_v62 = vcombine.high %v4025_v24, %v3189_v27  ;;  %v2703_v46 = vld [vmem:[#allocation14 + $0x18] sm:$0xff] (%p289_p8)  }
 0x1e8   : > { %1821 = vmatprep.subr.bf16.mxu0 %v2447_v10  ;;  %v2477_v10 = vcombine.high %v3233_v49, %v3239_v52  ;;  %v2705_v49 = vld [vmem:[#allocation14 + $0x20] sm:$0xff] (%p289_p8)   ;;  %v2707_v52 = vld [vmem:[#allocation14 + $0x28] sm:$0xff] (%p289_p8)  }
 0x1e9   : > { %1780 = vmatprep.subr.bf16.mxu1 %v2451_v62  ;;  %v2482_v62 = vcombine.low %v3245_v55, %v3251_v58 }
 0x1ea   : > { %2443 = vmatmul.mubr.msk.bf16.vlgmr.msra.gmra.mrb[8].mxu0 %vm1249_vm0, %v2442_v1  ;;  %1781 = vmatpush1.bf16.msra.mxu1 %v2450_v20  ;;  %v2468_v1 = vcombine.low %v3219_v42, %v3225_v45  ;;  %v2487_v20 = vcombine.high %v3255_v60, %v3261_v63  ;;  %v2701_v42 = vld [vmem:[#allocation14 + $0x10] sm:$0xff] (%p289_p8)  }
 0x1eb   : > { %1822 = vmatpush1.bf16.msra.mxu0 %v2446_v13  ;;  %1782 = vmatprep.subr.bf16.mxu1 %v2457_v38  ;;  %v2483_v13 = vcombine.high %v3245_v55, %v3251_v58  ;;  %v2488_v38 = vcombine.low %v3257_v61, %v4039_v0  ;;  %v2045_v45 = vld [vmem:[#allocation11] sm:$0xf] (%p289_p8)  ;;  %v2711_v58 = vld [vmem:[#allocation14 + $0x38] sm:$0xff] (%p289_p8)  }
 0x1ec   : > { %1823 = vmatprep.subr.bf16.mxu0 %v2453_v9  ;;  %v2474_v9 = vcombine.low %v3231_v48, %v3237_v51  ;;  %v2704_v48 = vld [vmem:[#allocation14 + $0x60] sm:$0xff] (%p289_p8)   ;;  %v2706_v51 = vld [vmem:[#allocation14 + $0x68] sm:$0xff] (%p289_p8)   ;;  %v2709_v55 = vld [vmem:[#allocation14 + $0x30] sm:$0xff] (%p289_p8)  }
 0x1ee   : > { %1783 = vmatpush1.bf16.msra.mxu1 %v2456_v35  ;;  %v2493_v35 = vcombine.high %v4035_v7, %v4032_v14 }
 0x1ef   : > { %1824 = vmatpush1.bf16.msra.mxu0 %v2452_v26  ;;  %1784 = vmatprep.subr.bf16.mxu1 %v2463_v47  ;;  %v2489_v26 = vcombine.high %v3257_v61, %v4039_v0  ;;  %v2494_v47 = vcombine.low %v4034_v8, %v4038_v2  ;;  %v4059_v0 = vld [vmem:[#allocation81_spill] sm:$0xff] }
 0x1f0   : > { %1825 = vmatprep.subr.bf16.mxu0 %v2459_v44  ;;  %v2480_v44 = vcombine.low %v3243_v54, %v3249_v57  ;;  %v2708_v54 = vld [vmem:[#allocation14 + $0x70] sm:$0xff] (%p289_p8)   ;;  %v2710_v57 = vld [vmem:[#allocation14 + $0x78] sm:$0xff] (%p289_p8)  }
 0x1f2   : > { %1785 = vmatpush1.bf16.msra.mxu1 %v2462_v59  ;;  %v2499_v59 = vcombine.high %v4030_v16, %v4033_v11 }
 0x1f3   : > { %1826 = vmatpush1.bf16.msra.mxu0 %v2458_v32  ;;  %1786 = vmatprep.subr.bf16.mxu1 %v2469_v53  ;;  %v2495_v32 = vcombine.high %v4034_v8, %v4038_v2  ;;  %v2500_v53 = vcombine.low %v4031_v15, %v4029_v18  ;;  %v4069_v8 = vld [vmem:[#allocation94_spill] sm:$0xff] }
 0x1f4   : > { %1827 = vmatprep.subr.bf16.mxu0 %v2465_v41  ;;  %v2486_v41 = vcombine.low %v3255_v60, %v3261_v63 }
 0x1f6   : > { %1787 = vmatpush1.bf16.msra.mxu1 %v2468_v1  ;;  %v2498_v1 = vcombine.low %v4030_v16, %v4033_v11  ;;  %v4095_v16 = vld [vmem:[#allocation52_spill] sm:$0xff] }
 0x1f7   : > { %1828 = vmatpush1.bf16.msra.mxu0 %v2464_v12  ;;  %1788 = vmatprep.subr.bf16.mxu1 %v2475_v17  ;;  %v2501_v12 = vcombine.high %v4031_v15, %v4029_v18  ;;  %v4047_v17 = vld [vmem:[#allocation72_spill] sm:$0xff]  ;;  %v4092_v15 = vld [vmem:[#allocation50_spill] sm:$0xff] }
 0x1f8   : > { %1829 = vmatprep.subr.bf16.mxu0 %v2471_v23  ;;  %v2492_v23 = vcombine.low %v4035_v7, %v4032_v14  ;;  %v4090_v14 = vld [vmem:[#allocation48_spill] sm:$0xff] }
 0x1fa   : > { %1789 = vmatpush1.bf16.msra.mxu1 %v2474_v9 }
 0x1fb   : > { %1830 = vmatpush1.bf16.msra.mxu0 %v2470_v50  ;;  %1790 = vmatprep.subr.bf16.mxu1 %v2481_v29  ;;  %v4046_v50 = vld [vmem:[#allocation70_spill] sm:$0xff]  ;;  %v4049_v29 = vld [vmem:[#allocation79_spill] sm:$0xff] }
 0x1fc   : > { %1831 = vmatprep.subr.bf16.mxu0 %v2477_v10  ;;  %v2507_v10 = vcombine.high %v4046_v50, %v4037_v3  ;;  %v2506_v9 = vcombine.low %v4046_v50, %v4037_v3  ;;  %v4062_v3 = vld [vmem:[#allocation88_spill] sm:$0xff] }
 0x1fe   : > { %1791 = vmatpush1.bf16.msra.mxu1 %v2480_v44 }
 0x1ff   : > { %1832 = vmatpush1.bf16.msra.mxu0 %v2476_v56  ;;  %1792 = vmatprep.subr.bf16.mxu1 %v2487_v20  ;;  %v4048_v56 = vld [vmem:[#allocation69_spill] sm:$0xff]  ;;  %v4051_v20 = vld [vmem:[#allocation78_spill] sm:$0xff] }
 0x200   : > { %1833 = vmatprep.subr.bf16.mxu0 %v2483_v13  ;;  %v2505_v13 = vcombine.high %v4048_v56, %v4047_v17  ;;  %v2504_v44 = vcombine.low %v4048_v56, %v4047_v17 }
 0x202   : > { %1793 = vmatpush1.bf16.msra.mxu1 %v2486_v41 }
 0x203   : > { %1834 = vmatpush1.bf16.msra.mxu0 %v2482_v62  ;;  %1794 = vmatprep.subr.bf16.mxu1 %v2493_v35  ;;  %v4050_v62 = vld [vmem:[#allocation76_spill] sm:$0xff] }
 0x204   : > { %1835 = vmatprep.subr.bf16.mxu0 %v2489_v26  ;;  %v2513_v26 = vcombine.high %v4050_v62, %v4049_v29  ;;  %v2512_v35 = vcombine.low %v4050_v62, %v4049_v29 }
 0x206   : > { %1795 = vmatpush1.bf16.msra.mxu1 %v2492_v23  ;;  %v4056_v23 = vld [vmem:[#allocation82_spill] sm:$0xff] }
 0x207   : > { %1836 = vmatpush1.bf16.msra.mxu0 %v2488_v38  ;;  %1796 = vmatprep.subr.bf16.mxu1 %v2499_v59  ;;  %v4052_v38 = vld [vmem:[#allocation75_spill] sm:$0xff]  ;;  %v4057_v59 = vmov %v4056_v23 }
 0x208   : > { %1837 = vmatprep.subr.bf16.mxu0 %v2495_v32  ;;  %v4053_v32 = vmov %v4052_v38  ;;  %v2511_v41 = vcombine.high %v4052_v38, %v4051_v20  ;;  %v4060_v38 = vld [vmem:[#allocation91_spill] sm:$0xff] }
 0x209   : > { %v4061_v2 = vmov %v4060_v38  ;;  %v2525_v4 = vcombine.high %v4062_v3, %v4060_v38  ;;  %v4071_v38 = vld [vmem:[#allocation93_spill] sm:$0xff] }
 0x20a   : > { %1797 = vmatpush1.bf16.msra.mxu1 %v2498_v1  ;;  %v4058_v1 = vld [vmem:[#allocation84_spill] sm:$0xff] }
 0x20b   : > { %1838 = vmatpush1.bf16.msra.mxu0 %v2494_v47  ;;  %1798 = vmatprep.subr.bf16.mxu1 %v2505_v13  ;;  %v4054_v47 = vld [vmem:[#allocation85_spill] sm:$0xff]  ;;  %v2517_v13 = vcombine.high %v4059_v0, %v4058_v1 }
 0x20c   : > { %1839 = vmatprep.subr.bf16.mxu0 %v2501_v12  ;;  %v4055_v12 = vmov %v4054_v47 }
 0x20e   : > { %1799 = vmatpush1.bf16.msra.mxu1 %v2504_v44  ;;  %v4063_v44 = vld [vmem:[#allocation90_spill] sm:$0xff] }
 0x20f   : > { %1840 = vmatpush1.bf16.msra.mxu0 %v2500_v53  ;;  %v2519_v53 = vcombine.high %v4056_v23, %v4054_v47  ;;  %1800 = vmatprep.subr.bf16.mxu1 %v2511_v41  ;;  %v4064_v5 = vmov %v4063_v44  ;;  %v4065_v47 = vld [vmem:[#allocation87_spill] sm:$0xff]  ;;  %v4067_v23 = vld [vmem:[#allocation97_spill] sm:$0xff] }
 0x210   : > { %1841 = vmatprep.subr.bf16.mxu0 %v2507_v10  ;;  %v2510_v10 = vcombine.low %v4053_v32, %v4051_v20  ;;  %v4066_v6 = vmov %v4065_v47  ;;  %v2523_v41 = vcombine.high %v4065_v47, %v4063_v44  ;;  %v4068_v7 = vmov %v4067_v23  ;;  %v4074_v44 = vld [vmem:[#allocation99_spill] sm:$0xff] }
 0x211   : > { %v2531_v11 = vcombine.high %v4069_v8, %v4067_v23  ;;  %v4077_v23 = vld [vmem:[#allocation100_spill] sm:$0xff] }
 0x212   : > { %1801 = vmatpush1.bf16.msra.mxu1 %v2510_v10  ;;  %v4070_v10 = vld [vmem:[#allocation96_spill] sm:$0xff] }
 0x213   : > { %1842 = vmatpush1.bf16.msra.mxu0 %v2506_v9  ;;  %v2518_v9 = vcombine.low %v4057_v59, %v4055_v12  ;;  %1802 = vmatprep.subr.bf16.mxu1 %v2517_v13  ;;  %v2529_v13 = vcombine.high %v4071_v38, %v4070_v10  ;;  %v2264_v59 = vld [vmem:[#allocation13] sm:$0xff] (%p289_p8) }
 0x214   : > { %1843 = vmatprep.subr.bf16.mxu0 %v2513_v26  ;;  %v2516_v26 = vcombine.low %v4059_v0, %v4058_v1  ;;  %v4072_v0 = vmov %v4071_v38  ;;  %v4075_v1 = vmov %v4074_v44 }
 0x216   : > { %1803 = vmatpush1.bf16.msra.mxu1 %v2516_v26  ;;  %v4073_v26 = vld [vmem:[#allocation102_spill] sm:$0xff] }
 0x217   : > { %1844 = vmatpush1.bf16.msra.mxu0 %v2512_v35  ;;  %v2524_v35 = vcombine.low %v4062_v3, %v4061_v2  ;;  %1804 = vmatprep.subr.bf16.mxu1 %v2523_v41  ;;  %v2535_v47 = vcombine.high %v4074_v44, %v4073_v26  ;;  %v2534_v41 = vcombine.low %v4075_v1, %v4073_v26 }
 0x218   : > { %1845 = vmatprep.subr.bf16.mxu0 %v2519_v53  ;;  %v2522_v53 = vcombine.low %v4066_v6, %v4064_v5  ;;  %v4078_v2 = vmov %v4077_v23 }
 0x21a   : > { %1805 = vmatpush1.bf16.msra.mxu1 %v2522_v53  ;;  %v4079_v53 = vld [vmem:[#allocation40_spill] sm:$0xff] }
 0x21b   : > { %1846 = vmatpush1.bf16.msra.mxu0 %v2518_v9  ;;  %v2528_v9 = vcombine.low %v4072_v0, %v4070_v10  ;;  %1806 = vmatprep.subr.bf16.mxu1 %v2529_v13  ;;  %v4080_v13 = vld [vmem:[#allocation37_spill] sm:$0xff]  ;;  %v4087_v10 = vld [vmem:[#allocation46_spill] sm:$0xff] }
 0x21c   : > { %1847 = vmatprep.subr.bf16.mxu0 %v2525_v4  ;;  %v2530_v4 = vcombine.low %v4069_v8, %v4068_v7  ;;  %v4086_v8 = vld [vmem:[#allocation47_spill] sm:$0xff] }
 0x21d   : > { %v2467_v12 = vcombine.high %v4087_v10, %v4086_v8 }
 0x21e   : > { %1807 = vmatpush1.bf16.msra.mxu1 %v2528_v9  ;;  %v2449_v9 = vcombine.high %v4080_v13, %v4079_v53 }
 0x21f   : > { %1848 = vmatpush1.bf16.msra.mxu0 %v2524_v35  ;;  %v4076_v35 = vld [vmem:[#allocation103_spill] sm:$0xff]  ;;  %1808 = vmatprep.subr.bf16.mxu1 %v2535_v47  ;;  %v2448_v47 = vcombine.low %v4080_v13, %v4079_v53 }
 0x220   : > { %1849 = vmatprep.subr.bf16.mxu0 %v2531_v11  ;;  %v2537_v38 = vcombine.high %v4077_v23, %v4076_v35  ;;  %v2536_v11 = vcombine.low %v4078_v2, %v4076_v35  ;;  %v2263_v53 = vld [vmem:[#allocation10 + $0x6] ss:$0 sm:$0xff] (%p289_p8) }
 0x222   : > { %1809 = vmatpush1.bf16.msra.mxu1 %v2534_v41  ;;  %v4081_v41 = vld [vmem:[#allocation43_spill] sm:$0xff] }
 0x223   : > { %1850 = vmatpush1.bf16.msra.mxu0 %v2530_v4  ;;  %1864 = vmatprep.subr.bf16.mxu1 %v2449_v9 }
 0x224   : > { %1851 = vmatprep.subr.bf16.mxu0 %v2537_v38  ;;  %v4082_v38 = vld [vmem:[#allocation42_spill] sm:$0xff] }
 0x225   : > { %v2455_v6 = vcombine.high %v4082_v38, %v4081_v41 }
 0x227   : > { %1852 = vmatpush1.bf16.msra.mxu0 %v2536_v11  ;;  %v4083_v11 = vmov %v4082_v38 }
 0x295   : > { %v3670_v5 = vpop.f32.mrb[4].mxu1 }
 0x296   : > { %v3674_v2 = vpop.f32.mrb[5].mxu1 }
 0x297   : > { %v3678_v7 = vpop.f32.mrb[6].mxu1 }
 0x298   : > { %v3680_v9 = vpop.f32.mrb[7].mxu1 }
 0x2bd   : > { %v1287_v4 = vpop.f32.mrb[8].mxu0 }
 0x2be   : > { %v1289_v0 = vpop.f32.mrb[9].mxu0 }
 0x2bf   : > { %v1291_v44 = vpop.f32.mrb[10].mxu0 }
 0x2c0   : > { %v3668_v3 = vpack.c.bf16 %v1291_v44, %v1287_v4  ;;  %v1293_v1 = vpop.f32.mrb[11].mxu0  ;;  %v4085_v4 = vld [vmem:[#allocation44_spill] sm:$0xff] }
 0x2c1   : > { %v1297_v23 = vpack.c.bf16 %v1293_v1, %v1289_v0  ;;  %v2454_v0 = vcombine.low %v4083_v11, %v4081_v41  ;;  %v4084_v1 = vld [vmem:[#allocation45_spill] sm:$0xff] }
 0x2c2   : > { %v2461_v44 = vcombine.high %v4085_v4, %v4084_v1  ;;  %v2460_v38 = vcombine.low %v4085_v4, %v4084_v1 }
 0x2c3   : > { %1810 = vmatprep.mubr.bf16.mxu1 %v1297_v23  ;;  %1853 = vmatprep.mubr.bf16.mxu0 %v1297_v23 }
 0x2c4   : > { %1811 = vmatmul.mubr.bf16.vlgmr.msra.gmra.mrb[0].mxu1 %v3668_v3  ;;  %1854 = vmatmul.mubr.bf16.vlgmr.msra.gmra.mrb[4].mxu0 %v3668_v3 }
 0x2c5   : > { %1865 = vmatpush1.bf16.msra.mxu1 %v2448_v47  ;;  %1896 = vmatprep.mubr.bf16.mxu1 %v1297_v23  ;;  %v2466_v47 = vcombine.low %v4087_v10, %v4086_v8  ;;  %v4088_v23 = vld [vmem:[#allocation49_spill] sm:$0xff] }
 0x2c6   : > { %1866 = vmatprep.subr.bf16.mxu1 %v2455_v6  ;;  %v4089_v13 = vmov %v4088_v23  ;;  %v2473_v11 = vcombine.high %v4090_v14, %v4088_v23  ;;  %v4098_v23 = vld [vmem:[#allocation54_spill] sm:$0xff] }
 0x2c7   : > { %v2472_v6 = vcombine.low %v4090_v14, %v4089_v13  ;;  %v4099_v17 = vmov %v4098_v23  ;;  %v4101_v14 = vld [vmem:[#allocation59_spill] sm:$0xff] }
 0x2c9   : > { %1867 = vmatpush1.bf16.msra.mxu1 %v2454_v0  ;;  %v4091_v0 = vld [vmem:[#allocation51_spill] sm:$0xff] }
 0x2ca   : > { %1868 = vmatprep.subr.bf16.mxu1 %v2461_v44  ;;  %v2479_v1 = vcombine.high %v4092_v15, %v4091_v0  ;;  %v2478_v44 = vcombine.low %v4092_v15, %v4091_v0 }
 0x2cd   : > { %1869 = vmatpush1.bf16.msra.mxu1 %v2460_v38  ;;  %v4093_v38 = vld [vmem:[#allocation53_spill] sm:$0xff] }
 0x2ce   : > { %1870 = vmatprep.subr.bf16.mxu1 %v2467_v12  ;;  %v4094_v4 = vmov %v4093_v38  ;;  %v2485_v8 = vcombine.high %v4095_v16, %v4093_v38  ;;  %v4104_v38 = vld [vmem:[#allocation65_spill] sm:$0xff] }
 0x2cf   : > { %v2484_v12 = vcombine.low %v4095_v16, %v4094_v4  ;;  %v4105_v18 = vmov %v4104_v38 }
 0x2d1   : > { %1871 = vmatpush1.bf16.msra.mxu1 %v2466_v47  ;;  %v4096_v47 = vld [vmem:[#allocation56_spill] sm:$0xff] }
 0x2d2   : > { %1872 = vmatprep.subr.bf16.mxu1 %v2473_v11  ;;  %v4097_v10 = vmov %v4096_v47  ;;  %v2491_v13 = vcombine.high %v4098_v23, %v4096_v47  ;;  %v4107_v47 = vld [vmem:[#allocation71_spill] sm:$0xff] }
 0x2d3   : > { %v2490_v11 = vcombine.low %v4099_v17, %v4097_v10  ;;  %v4108_v16 = vmov %v4107_v47  ;;  %v4110_v10 = vld [vmem:[#allocation77_spill] sm:$0xff] }
 0x2d4   : > { %v4124_v17 = vld [vmem:[#allocation29_spill] sm:$0xff] }
 0x2d5   : > { %1873 = vmatpush1.bf16.msra.mxu1 %v2472_v6  ;;  %v4100_v6 = vld [vmem:[#allocation62_spill] sm:$0xff] }
 0x2d6   : > { %1874 = vmatprep.subr.bf16.mxu1 %v2479_v1  ;;  %v2497_v0 = vcombine.high %v4101_v14, %v4100_v6  ;;  %v2496_v1 = vcombine.low %v4101_v14, %v4100_v6 }
 0x2d9   : > { %1875 = vmatpush1.bf16.msra.mxu1 %v2478_v44  ;;  %v4102_v44 = vld [vmem:[#allocation68_spill] sm:$0xff] }
 0x2da   : > { %1876 = vmatprep.subr.bf16.mxu1 %v2485_v8  ;;  %v4103_v15 = vmov %v4102_v44  ;;  %v2503_v4 = vcombine.high %v4104_v38, %v4102_v44  ;;  %v4112_v44 = vld [vmem:[#allocation83_spill] sm:$0xff] }
 0x2db   : > { %v2502_v8 = vcombine.low %v4105_v18, %v4103_v15  ;;  %v4113_v14 = vmov %v4112_v44 }
 0x2dd   : > { %1877 = vmatpush1.bf16.msra.mxu1 %v2484_v12  ;;  %v4106_v12 = vld [vmem:[#allocation74_spill] sm:$0xff] }
 0x2de   : > { %1878 = vmatprep.subr.bf16.mxu1 %v2491_v13  ;;  %v2509_v23 = vcombine.high %v4107_v47, %v4106_v12  ;;  %v2508_v13 = vcombine.low %v4108_v16, %v4106_v12  ;;  %v4115_v47 = vld [vmem:[#allocation89_spill] sm:$0xff]  ;;  %v4118_v16 = vld [vmem:[#allocation95_spill] sm:$0xff] }
 0x2df   : > { %v4116_v15 = vmov %v4115_v47 }
 0x2e1   : > { %1879 = vmatpush1.bf16.msra.mxu1 %v2490_v11  ;;  %v4109_v11 = vld [vmem:[#allocation80_spill] sm:$0xff] }
 0x2e2   : > { %1880 = vmatprep.subr.bf16.mxu1 %v2497_v0  ;;  %v2515_v6 = vcombine.high %v4110_v10, %v4109_v11  ;;  %v2514_v0 = vcombine.low %v4110_v10, %v4109_v11 }
 0x2e5   : > { %1881 = vmatpush1.bf16.msra.mxu1 %v2496_v1  ;;  %v4111_v1 = vld [vmem:[#allocation86_spill] sm:$0xff] }
 0x2e6   : > { %1882 = vmatprep.subr.bf16.mxu1 %v2503_v4  ;;  %v2521_v38 = vcombine.high %v4112_v44, %v4111_v1  ;;  %v2520_v4 = vcombine.low %v4113_v14, %v4111_v1  ;;  %v4120_v44 = vld [vmem:[#allocation101_spill] sm:$0xff] }
 0x2e7   : > { %v4121_v11 = vmov %v4120_v44 }
 0x2e9   : > { %1883 = vmatpush1.bf16.msra.mxu1 %v2502_v8  ;;  %v4114_v8 = vld [vmem:[#allocation92_spill] sm:$0xff] }
 0x2ea   : > { %1884 = vmatprep.subr.bf16.mxu1 %v2509_v23  ;;  %v2527_v12 = vcombine.high %v4115_v47, %v4114_v8  ;;  %v2526_v23 = vcombine.low %v4116_v15, %v4114_v8  ;;  %v4122_v47 = vld [vmem:[#allocation28_spill] sm:$0xff] }
 0x2eb   : > { %v4123_v8 = vmov %v4122_v47 }
 0x2ed   : > { %1885 = vmatpush1.bf16.msra.mxu1 %v2508_v13  ;;  %v4117_v13 = vld [vmem:[#allocation98_spill] sm:$0xff] }
 0x2ee   : > { %1886 = vmatprep.subr.bf16.mxu1 %v2515_v6  ;;  %v2533_v10 = vcombine.high %v4118_v16, %v4117_v13  ;;  %v2532_v6 = vcombine.low %v4118_v16, %v4117_v13 }
 0x2f1   : > { %1887 = vmatpush1.bf16.msra.mxu1 %v2514_v0  ;;  %v4119_v0 = vld [vmem:[#allocation104_spill] sm:$0xff] }
 0x2f2   : > { %1888 = vmatprep.subr.bf16.mxu1 %v2521_v38  ;;  %v2539_v1 = vcombine.high %v4120_v44, %v4119_v0  ;;  %v2538_v38 = vcombine.low %v4121_v11, %v4119_v0 }
 0x2f5   : > { %1889 = vmatpush1.bf16.msra.mxu1 %v2520_v4 }
 0x2f6   : > { %1890 = vmatprep.subr.bf16.mxu1 %v2527_v12 }
 0x2f9   : > { %1891 = vmatpush1.bf16.msra.mxu1 %v2526_v23 }
 0x2fa   : > { %1892 = vmatprep.subr.bf16.mxu1 %v2533_v10 }
 0x2fd   : > { %1893 = vmatpush1.bf16.msra.mxu1 %v2532_v6 }
 0x2fe   : > { %1894 = vmatprep.subr.bf16.mxu1 %v2539_v1 }
 0x301   : > { %1895 = vmatpush1.bf16.msra.mxu1 %v2538_v38 }
 0x304   : > { %1897 = vmatmul.mubr.bf16.vlgmr.msra.gmra.mrb[8].mxu1 %v3668_v3 }
 0x397   : > { %v1812_v12 = vpop.f32.mrb[0].mxu1  ;;  %v1855_v4 = vpop.f32.mrb[4].mxu0 }
 0x398   : > { %v1911_v14 = vadd.f32 %v1812_v12, %v4122_v47  ;;  %v1814_v23 = vpop.f32.mrb[1].mxu1  ;;  %v1857_v15 = vpop.f32.mrb[5].mxu0 }
 0x399   : > { %v1912_v13 = vadd.f32 %v1814_v23, %v4124_v17  ;;  %v1816_v10 = vpop.f32.mrb[2].mxu1  ;;  %v1859_v16 = vpop.f32.mrb[6].mxu0 }
 0x39a   : > { %v2540_v18 = vmul.f32 -1.442695, %v1911_v14  ;;  %v1913_v6 = vadd.f32 %v1816_v10, %v4123_v8  ;;  %v1818_v44 = vpop.f32.mrb[3].mxu1  ;;  %v1861_v19 = vpop.f32.mrb[7].mxu0 }
 0x39b   : > { %v2541_v0 = vmul.f32 -1.442695, %v1912_v13  ;;  %v1914_v1 = vadd.f32 %v1818_v44, %v4124_v17  ;;  %v4125_v13 = vld [vmem:[#allocation34_spill] sm:$0xff] }
 0x39c   : > { %2656 = vpow2.f32 %v2540_v18  ;;  %v2542_v3 = vmul.f32 -1.442695, %v1913_v6  ;;  %v1975_v18 = vadd.f32 %v3670_v5, %v4125_v13  ;;  %v4128_v5 = vld [vmem:[#allocation31_spill] sm:$0xff] }
 0x39d   : > { %2658 = vpow2.f32 %v2541_v0  ;;  %v2543_v38 = vmul.f32 -1.442695, %v1914_v1  ;;  %v4126_v0 = vld [vmem:[#allocation35_spill] sm:$0xff]  ;;  %v1944_v17 = vadd.f32 %v1857_v15, %v4128_v5 }
 0x39e   : > { %2660 = vpow2.f32 %v2542_v3  ;;  %v1976_v44 = vadd.f32 %v3674_v2, %v4126_v0  ;;  %v1946_v2 = vadd.f32 %v1861_v19, %v4128_v5  ;;  %v4134_v5 = vld [vmem:[#allocation105_spill] sm:$0xff] }
 0x39f   : > { %2662 = vpow2.f32 %v2543_v38  ;;  %v1977_v38 = vadd.f32 %v3678_v7, %v4125_v13 }
 0x3a0   : > { %v2547_v7 = vmul.f32 -1.442695, %v1946_v2 }
 0x3a6   : > { %v2657_v12 = vpop.eup %2656 }
 0x3a7   : > { %v1927_v47 = vadd.f32 1.0, %v2657_v12  ;;  %v2659_v11 = vpop.eup %2658 }
 0x3a8   : > { %v1928_v23 = vadd.f32 1.0, %v2659_v11  ;;  %v2661_v20 = vpop.eup %2660 }
 0x3a9   : > { %2664 = vrcp.f32 %v1927_v47  ;;  %v1929_v14 = vadd.f32 1.0, %v2661_v20  ;;  %v2663_v10 = vpop.eup %2662  ;;  %v1978_v20 = vadd.f32 %v3680_v9, %v4126_v0 }
 0x3aa   : > { %2666 = vrcp.f32 %v1928_v23  ;;  %v1930_v8 = vadd.f32 1.0, %v2663_v10 }
 0x3ab   : > { %2668 = vrcp.f32 %v1929_v14  ;;  %v4127_v14 = vld [vmem:[#allocation30_spill] sm:$0xff] }
 0x3ac   : > { %2670 = vrcp.f32 %v1930_v8  ;;  %v1943_v10 = vadd.f32 %v1855_v4, %v4127_v14  ;;  %v1945_v21 = vadd.f32 %v1859_v16, %v4127_v14  ;;  %v4129_v16 = vld [vmem:[#allocation32_spill] sm:$0xff] }
 0x3ae   : > { %v2546_v22 = vmul.f32 -1.442695, %v1945_v21  ;;  %v4130_v21 = vld [vmem:[#allocation33_spill] sm:$0xff] }
 0x3b3   : > { %v2665_v6 = vpop.eup %2664 }
 0x3b4   : > { %v1979_v1 = vmul.f32 %v2665_v6, %v1975_v18  ;;  %v2667_v3 = vpop.eup %2666  ;;  %v2544_v18 = vmul.f32 -1.442695, %v1943_v10  ;;  %v2545_v6 = vmul.f32 -1.442695, %v1944_v17 }
 0x3b5   : > { %v1980_v11 = vmul.f32 %v2667_v3, %v1976_v44  ;;  %v2669_v12 = vpop.eup %2668 }
 0x3b6   : > { %v1981_v47 = vmul.f32 %v2669_v12, %v1977_v38  ;;  %v2671_v23 = vpop.eup %2670  ;;  %2672 = vpow2.f32 %v2544_v18 }
 0x3b7   : > { %v1982_v8 = vmul.f32 %v2671_v23, %v1978_v20  ;;  %2674 = vpow2.f32 %v2545_v6 }
 0x3b8   : > { %2676 = vpow2.f32 %v2546_v22 }
 0x3b9   : > { %2678 = vpow2.f32 %v2547_v7 }
 0x3c0   : > { %v2673_v9 = vpop.eup %2672 }
 0x3c1   : > { %v2675_v44 = vpop.eup %2674  ;;  %v1959_v12 = vadd.f32 1.0, %v2673_v9 }
 0x3c2   : > { %v2677_v3 = vpop.eup %2676  ;;  %v1960_v4 = vadd.f32 1.0, %v2675_v44 }
 0x3c3   : > { %v2679_v38 = vpop.eup %2678  ;;  %v1961_v20 = vadd.f32 1.0, %v2677_v3  ;;  %2680 = vrcp.f32 %v1959_v12 }
 0x3c4   : > { %v1962_v15 = vadd.f32 1.0, %v2679_v38  ;;  %2682 = vrcp.f32 %v1960_v4 }
 0x3c5   : > { %2684 = vrcp.f32 %v1961_v20 }
 0x3c6   : > { %2686 = vrcp.f32 %v1962_v15 }
 0x3cd   : > { %v2681_v38 = vpop.eup %2680 }
 0x3ce   : > { %v2683_v12 = vpop.eup %2682 }
 0x3cf   : > { %v2685_v4 = vpop.eup %2684 }
 0x3d0   : > { %v1993_v15 = vsub.f32 1.0, %v2685_v4 }
 0x3d7   : > { %v1898_v23 = vpop.f32.mrb[8].mxu1 }
 0x3d8   : > { %v1971_v19 = vadd.f32 %v1898_v23, %v4129_v16  ;;  %v1900_v10 = vpop.f32.mrb[9].mxu1  ;;  %v2687_v23 = vpop.eup %2686 }
 0x3d9   : > { %v1972_v17 = vadd.f32 %v1900_v10, %v4130_v21  ;;  %v1902_v2 = vpop.f32.mrb[10].mxu1  ;;  %v1991_v10 = vsub.f32 1.0, %v2681_v38  ;;  %v2002_v13 = vmul.f32 %v4134_v5, %v2687_v23  ;;  %v2025_v5 = vld [vmem:[#allocation10 + $0x5] ss:$8 sm:$0x3] (%p289_p8) }
 0x3da   : > { %v1983_v22 = vadd.f32 %v1979_v1, %v1971_v19  ;;  %v1973_v18 = vadd.f32 %v1902_v2, %v4129_v16  ;;  %v1904_v6 = vpop.f32.mrb[11].mxu1  ;;  %v1992_v1 = vsub.f32 1.0, %v2683_v12  ;;  %v4131_v2 = vld [vmem:[#allocation108_spill] sm:$0xff] }
 0x3db   : > { %v1984_v7 = vadd.f32 %v1980_v11, %v1972_v17  ;;  %v1974_v9 = vadd.f32 %v1904_v6, %v4130_v21  ;;  %v1999_v0 = vmul.f32 %v4131_v2, %v2681_v38  ;;  %v4132_v6 = vld [vmem:[#allocation107_spill] sm:$0xff] }
 0x3dc   : > { %2688 = vtanh.f32 %v1983_v22  ;;  %v1985_v44 = vadd.f32 %v1981_v47, %v1973_v18  ;;  %v2000_v22 = vmul.f32 %v4132_v6, %v2683_v12  ;;  %v1994_v47 = vsub.f32 1.0, %v2687_v23  ;;  %v4139_v12 = vld [vmem:[#allocation24_spill] sm:$0xff] (%p289_p8)  ;;  %v2697_v6 = vld [vmem:[#allocation14] sm:$0xff] (%p289_p8)  }
 0x3dd   : > { %2690 = vtanh.f32 %v1984_v7  ;;  %v1986_v3 = vadd.f32 %v1982_v8, %v1974_v9  ;;  %v4133_v7 = vld [vmem:[#allocation106_spill] sm:$0xff] }
 0x3de   : > { %2692 = vtanh.f32 %v1985_v44  ;;  %v2001_v9 = vmul.f32 %v4133_v7, %v2685_v4 }
 0x3df   : > { %2694 = vtanh.f32 %v1986_v3 }
 0x3e6   : > { %v2689_v20 = vpop.eup %2688 }
 0x3e7   : > { %v2691_v19 = vpop.eup %2690  ;;  %v1995_v11 = vmul.f32 %v2689_v20, %v1991_v10 }
 0x3e8   : > { %v2693_v17 = vpop.eup %2692  ;;  %v1996_v18 = vmul.f32 %v2691_v19, %v1992_v1  ;;  %291 = sbr.rel (!%p289_p8) target bundleno = 195 (0xc3), region = 97  ;;  %v2696_v1 = vld [vmem:[#allocation14 + $0x40] sm:$0xff] (%p289_p8)  }
 0x3e9   : > { %v2695_v8 = vpop.eup %2694  ;;  %v2003_v3 = vadd.f32 %v1999_v0, %v1995_v11   ;;  %v1997_v44 = vmul.f32 %v2693_v17, %v1993_v15  ;;  %v2008_v0 = vld [vmem:[#allocation10 + $0x4] ss:$8 sm:$0x3] (%p289_p8)  ;;  %v2983_v17 = vmov (%p289_p8), 0   ;;  %2567 = vmatprep.subr.bf16.mxu1 (%p289_p8), %v2696_v1 }
 0x3ea   : > { %v2004_v14 = vadd.f32 %v2000_v22, %v1996_v18   ;;  %v1998_v16 = vmul.f32 %v2695_v8, %v1994_v47  ;;  %v2017_v4 = vrot.slane (%p289_p8), %v2008_v0, %v4139_v12  ;;  %2084 = vmatprep.mubr.bf16.mxu0 (%p289_p8), %v2983_v17  ;;  %v2698_v22 = vld [vmem:[#allocation14 + $0x48] sm:$0xff] (%p289_p8)   ;;  %2568 = vmatpush3.bf16.msra.mxu1 (%p289_p8), %v2697_v6 }
 0x3eb   : > { %v2005_v21 = vadd.f32 %v2001_v9, %v1997_v44   ;;  %v4138_v47 = vmov %v2003_v3  ;;  %2569 = vmatprep.subr.bf16.mxu1 (%p289_p8), %v2698_v22 }
 0x3ec   : > { %v2006_v24 = vadd.f32 %v2002_v13, %v1998_v16   ;;  %v4137_v23 = vmov %v2004_v14  ;;  %v2034_v13 = vrot.slane (%p289_p8), %v2025_v5, %v4139_v12  ;;  %v4140_v16 = vld [vmem:[#allocation23_spill] sm:$0xff] (%p289_p8)  ;;  %v2021_v19 = vmul.f32 (%p289_p8), %v2017_v4, %v2004_v14 }
 0x3ed   : > { %v4136_v38 = vmov %v2005_v21  ;;  %v2013_v10 = vrot.slane (%p289_p8), %v2008_v0, %v4140_v16  ;;  %v2030_v20 = vrot.slane (%p289_p8), %v2025_v5, %v4140_v16 }
 0x3ee   : > { %v4135_v44 = vmov %v2006_v24  ;;  %v2023_v2 = vmul.f32 (%p289_p8), %v2017_v4, %v2006_v24  ;;  %v2038_v25 = vadd.f32 (%p289_p8), %v2034_v13, %v2021_v19  ;;  %2570 = vmatpush3.bf16.msra.mxu1 (%p289_p8), %v2699_v31 }
 0x3ef   :  { %v2020_v15 = vmul.f32 %v2013_v10, %v2003_v3  ;;  %v2022_v11 = vmul.f32 %v2013_v10, %v2005_v21  ;;  %2571 = vmatprep.subr.bf16.mxu1 %v2700_v33 }
 0x3f0   :  { %v2040_v27 = vadd.f32 %v2034_v13, %v2023_v2  ;;  %v2042_v34 = vmax.f32 %v2038_v25, 0.0 }
 0x3f1   :  { %v2037_v28 = vadd.f32 %v2030_v20, %v2020_v15  ;;  %v2039_v30 = vadd.f32 %v2030_v20, %v2022_v11 }
 0x3f2   :  { %v2044_v36 = vmax.f32 %v2040_v27, 0.0  ;;  %2572 = vmatpush3.bf16.msra.mxu1 %v2701_v42 }
 0x3f3   :  { %v2041_v37 = vmax.f32 %v2037_v28, 0.0  ;;  %v2043_v39 = vmax.f32 %v2039_v30, 0.0  ;;  %2573 = vmatprep.subr.bf16.mxu1 %v2702_v43 }
 0x3f4   :  { %v2047_v24 = vpack.c.bf16 %v2044_v36, %v2042_v34 }
 0x3f5   :  { %v2046_v40 = vpack.c.bf16 %v2043_v39, %v2041_v37 }
 0x3f6   :  { %2052 = vmatprep.subr.bf16.mxu0 %v2047_v24  ;;  %2574 = vmatpush3.bf16.msra.mxu1 %v2703_v46 }
 0x3f7   :  { %2053 = vmatpush1.bf16.msra.mxu0 %v2046_v40  ;;  %2575 = vmatprep.subr.bf16.mxu1 %v2704_v48 }
 0x3fa   :  { %2548 = vmatmul.mubr.msk.bf16.vlgmr.msra.gmra.mrb[0].mxu0 %vm1249_vm0, %v2045_v45  ;;  %2576 = vmatpush3.bf16.msra.mxu1 %v2705_v49 }
 0x3fb   :  { %2577 = vmatprep.subr.bf16.mxu1 %v2706_v51 }
 0x3fe   :  { %2578 = vmatpush3.bf16.msra.mxu1 %v2707_v52 }
 0x3ff   :  { %2579 = vmatprep.subr.bf16.mxu1 %v2708_v54 }
 0x402   :  { %2580 = vmatpush3.bf16.msra.mxu1 %v2709_v55 }
 0x403   :  { %2581 = vmatprep.subr.bf16.mxu1 %v2710_v57 }
 0x406   :  { %2582 = vmatpush3.bf16.msra.mxu1 %v2711_v58 }
 0x4cd   :  { %v2086_v60 = vpop.f32.mrb[0].mxu0 }
 0x4ce   :  { %v2088_v61 = vpop.f32.mrb[1].mxu0  ;;  %v2093_v56 = vpack.c.bf16 %v2086_v60, %v2086_v60 }
 0x4cf   :  { %v2090_v63 = vpop.f32.mrb[2].mxu0  ;;  %v2094_v50 = vpack.c.bf16 %v2088_v61, %v2088_v61 }
 0x4d0   :  { %v2091_v29 = vpop.f32.mrb[3].mxu0 }
 0x4d1   :  { %2255 = vmatprep.mubr.bf16.mxu1 %v2094_v50 }
 0x4d2   :  { %2256 = vmatmul.mubr.bf16.vlgmr.msra.gmra.mrb[0].mxu1 %v2093_v56 }
 0x5a5   :  { %v2583_v62 = vpop.f32.mrb[0].mxu1 }
 0x5a6   :  { %v2584_v32 = vpop.f32.mrb[1].mxu1 }
 0x5a7   :  { %v2585_v26 = vadd.f32 %v2584_v32, %v2583_v62  ;;  %v2586_v35 = vpop.f32.mrb[2].mxu1 }
 0x5a8   :  { %v2587_v41 = vpop.f32.mrb[3].mxu1 }
 0x5a9   :  { %v2265_v14 = vmul.f32 %v2585_v26, %v2264_v59 }
 0x5ab   :  { %v2266_v21 = vadd.f32 %v2265_v14, %v2263_v53 }
 0x5ad   :  { %v2565_v38 = vmul.f32 -1.442695, %v2266_v21 }
 0x5af   :  { %2712 = vpow2.f32 %v2565_v38 }
 0x5b9   :  { %v2713_v23 = vpop.eup %2712 }
 0x5ba   :  { %v2270_v47 = vadd.f32 1.0, %v2713_v23 }
 0x5bc   :  { %2714 = vrcp.f32 %v2270_v47 }
 0x5c6   :  { %v2715_v18 = vpop.eup %2714 }
 0x5c7   :  { %2273 = vst [vmem:[#allocation16] sm:$0xff] %v2715_v18 }
 0x5c8   :  { %2903 = shalt.err (!%p2900_p13)
}
 0x5c9   :  { %s2904_s19 = scalar_lea.hbm %s3803_s8, 128 }
 0x5ca   :  { %p2905_p0 = scmp.ne.s32.totalorder %s3803_s8, %s2904_s19  ;;  %p2908_p1 = scmp.lt.u32.totalorder %s2904_s19, %s3803_s8 }
 0x5cc   :  { %p2910_p2 = pnand %p2908_p1, %p2905_p0 }
 0x5ce   :  { %2913 = shalt.err (!%p2910_p2)
}
 0x5cf   :  { %2283 = dma.vmem_to_hbm [thread:$0]  %s2281_s14, 128, %s3803_s8, [#allocation4]  }
 0x5d0   :  { %2944 = dma.done.wait [#allocation4], 128  }
 0x5d1   :  { %2945 = vsyncadd [#allocation4], 4294967168 }
 0x5d2   :  { %2287 = vsyncpa [#allocation3], 1 }
 0x5d3   :  { %2288 = vsyncpa [#allocation6], 1 }
 0x5d4   :  { %2289 = vsyncpa [#allocation9], 1 }
 0x5d5   :  { %2290 = vsyncpa [#allocation12], 1 }
 0x5d6   :  { %2291 = vsyncpa [#allocation15], 1 }
 0x5d7   :  { %2292 = vsyncpa [#allocation4], 1 }

// kernel: tpu_custom_call.1
= control target key start
LH: loop header
LB: loop body
LE: loop exit
PB: predicated region body
PF: predicated region fallthrough
CT: control target
= control target key end

     0   :  { %13 = vsyncpa [#allocation3], 0  ;;  %s3795_s0 = inlined_call_operand.hbm [shape: f32[16,256], index: 0, kind: input, shape index: {}]   ;;  %s3796_s1 = inlined_call_operand.hbm [shape: bf16[16,16], index: 1, kind: input, shape index: {}]   ;;  %s3797_s2 = inlined_call_operand.hbm [shape: bf16[3,256,1024], index: 2, kind: input, shape index: {}]   ;;  %s3798_s3 = inlined_call_operand.hbm [shape: bf16[256,768], index: 3, kind: input, shape index: {}]   ;;  %s3799_s4 = inlined_call_operand.hbm [shape: f32[8,256], index: 4, kind: input, shape index: {}]   ;;  %s3800_s5 = inlined_call_operand.hbm [shape: bf16[8,16], index: 5, kind: input, shape index: {}]   ;;  %s3801_s6 = inlined_call_operand.hbm [shape: f32[8,128], index: 6, kind: input, shape index: {}]   ;;  %s3802_s7 = inlined_call_operand.hbm [shape: bf16[256,128], index: 7, kind: input, shape index: {}]   ;;  %s3803_s8 = inlined_call_operand.hbm [shape: f32[8,128], index: 8, kind: output, shape index: {}]  }
   0x1   :  { %14 = vsyncpa [#allocation6], 0 }
   0x2   :  { %15 = vsyncpa [#allocation9], 0 }
   0x3   :  { %16 = vsyncpa [#allocation12], 0 }
   0x4   :  { %17 = vsyncpa [#allocation15], 0 }
   0x5   :  { %18 = vsyncpa [#allocation4], 0  ;;  %s2966_s27 = smov [#allocation5]   ;;  %s2716_s9 = scalar_lea.hbm %s3796_s1, 128 }
   0x6   :  { %s36_s28 = sshll.u32 %s2966_s27, 4  ;;  %p2717_p0 = scmp.ne.s32.totalorder %s3796_s1, %s2716_s9  ;;  %s37_s28 = int_to_ptr.vmem [resolvable:$true] %s36_s28 }
   0x7   :  { %p2720_p1 = scmp.lt.u32.totalorder %s2716_s9, %s3796_s1 }
   0x9   :  { %p2722_p2 = pnand %p2720_p1, %p2717_p0 }
   0xb   :  { %2725 = shalt.err (!%p2722_p2)
}
   0xc   :  { %s2726_s14 = scalar_lea.vmem %s37_s28, 128  ;;  %p2731_p4 = scmp.lt.s32.totalorder %s37_s28, %s37_s28 }
   0xd   :  { %p2727_p3 = scmp.ne.s32.totalorder %s37_s28, %s2726_s14  ;;  %p2732_p5 = scmp.lt.s32.totalorder %s2726_s14, %s2726_s14 }
   0xf   :  { %p2733_p6 = por %p2732_p5, %p2731_p4 }
  0x11   :  { %p2734_p7 = pnand %p2733_p6, %p2727_p3 }
  0x13   :  { %2737 = shalt.err (!%p2734_p7)
}
  0x14   :  { %s2967_s15 = smov 64   ;;  %s2968_s16 = smov 4  }
  0x15   :  { %42 = dma.hbm_to_vmem [thread:$0]  %s3796_s1, 128, %s37_s28, [#allocation6], %s2967_s15, %s2967_s15, %s2968_s16  }
  0x16   :  { %s2969_s19 = smov [#allocation8]   ;;  %s2738_s23 = scalar_lea.hbm %s3798_s3, 12288 }
  0x17   :  { %s60_s20 = sshll.u32 %s2969_s19, 4  ;;  %p2739_p8 = scmp.ne.s32.totalorder %s3798_s3, %s2738_s23  ;;  %s61_s20 = int_to_ptr.vmem [resolvable:$true] %s60_s20 }
  0x18   :  { %p2742_p9 = scmp.lt.u32.totalorder %s2738_s23, %s3798_s3 }
  0x1a   :  { %p2744_p10 = pnand %p2742_p9, %p2739_p8 }
  0x1c   :  { %2747 = shalt.err (!%p2744_p10)
}
  0x1d   :  { %s2748_s29 = scalar_lea.vmem %s61_s20, 12288  ;;  %p2753_p12 = scmp.lt.s32.totalorder %s61_s20, %s61_s20 }
  0x1e   :  { %p2749_p11 = scmp.ne.s32.totalorder %s61_s20, %s2748_s29  ;;  %p2754_p13 = scmp.lt.s32.totalorder %s2748_s29, %s2748_s29 }
  0x20   :  { %p2755_p0 = por %p2754_p13, %p2753_p12 }
  0x22   :  { %p2756_p1 = pnand %p2755_p0, %p2749_p11 }
  0x24   :  { %2759 = shalt.err (!%p2756_p1)
}
  0x25   :  { %s2970_s1 = smov 384   ;;  %s2971_s28 = smov 24  }
  0x26   :  { %66 = dma.hbm_to_vmem [thread:$0]  %s3798_s3, 12288, %s61_s20, [#allocation9], %s2970_s1, %s2970_s1, %s2971_s28  }
  0x27   :  { %s2972_s10 = smov [#allocation11]   ;;  %s2973_s12 = smov [#allocation2]  }
  0x28   :  { %s83_s11 = sshll.u32 %s2972_s10, 4  ;;  %s24_s13 = sshll.u32 %s2973_s12, 4  ;;  %s84_s11 = int_to_ptr.vmem [resolvable:$true] %s83_s11  ;;  %s3057_s13 = int_to_ptr.vmem [resolvable:$true] %s24_s13 }
  0x29   :  { %s2760_s18 = scalar_lea.hbm %s3800_s5, 64 }
  0x2a   :  { %p2761_p2 = scmp.ne.s32.totalorder %s3800_s5, %s2760_s18  ;;  %p2764_p3 = scmp.lt.u32.totalorder %s2760_s18, %s3800_s5 }
  0x2c   :  { %p2766_p4 = pnand %p2764_p3, %p2761_p2 }
  0x2e   :  { %2769 = shalt.err (!%p2766_p4)
}
  0x2f   :  { %s2770_s3 = scalar_lea.vmem %s84_s11, 64  ;;  %p2775_p6 = scmp.lt.s32.totalorder %s84_s11, %s84_s11 }
  0x30   :  { %p2771_p5 = scmp.ne.s32.totalorder %s84_s11, %s2770_s3  ;;  %p2776_p7 = scmp.lt.s32.totalorder %s2770_s3, %s2770_s3 }
  0x32   :  { %p2777_p8 = por %p2776_p7, %p2775_p6 }
  0x34   :  { %p2778_p9 = pnand %p2777_p8, %p2771_p5 }
  0x36   :  { %2781 = shalt.err (!%p2778_p9)
}
  0x37   :  { %86 = dma.hbm_to_vmem [thread:$0]  %s3800_s5, 64, %s84_s11, [#allocation12]  }
  0x38   :  { %s2782_s27 = scalar_lea.hbm %s3795_s0, 512 }
  0x39   :  { %p2783_p10 = scmp.ne.s32.totalorder %s3795_s0, %s2782_s27  ;;  %p2786_p11 = scmp.lt.u32.totalorder %s2782_s27, %s3795_s0 }
  0x3b   :  { %p2788_p12 = pnand %p2786_p11, %p2783_p10 }
  0x3d   :  { %2791 = shalt.err (!%p2788_p12)
}
  0x3e   :  { %s2792_s9 = scalar_lea.vmem %s3057_s13, 512  ;;  %p2797_p0 = scmp.lt.s32.totalorder %s3057_s13, %s3057_s13 }
  0x3f   :  { %p2793_p13 = scmp.ne.s32.totalorder %s3057_s13, %s2792_s9  ;;  %p2798_p1 = scmp.lt.s32.totalorder %s2792_s9, %s2792_s9 }
  0x41   :  { %p2799_p2 = por %p2798_p1, %p2797_p0 }
  0x43   :  { %p2800_p3 = pnand %p2799_p2, %p2793_p13 }
  0x45   :  { %2803 = shalt.err (!%p2800_p3)
}
  0x46   :  { %s2974_s5 = smov 256   ;;  %s2975_s10 = smov 16  }
  0x47   :  { %30 = dma.hbm_to_vmem [thread:$0]  %s3795_s0, 512, %s3057_s13, [#allocation3], %s2974_s5, %s2974_s5, %s2975_s10  }
  0x48   :  { %s2976_s14 = smov [#allocation7]   ;;  %s2804_s21 = scalar_lea.hbm %s3797_s2, 49152 }
  0x49   :  { %s48_s17 = sshll.u32 %s2976_s14, 4  ;;  %p2805_p4 = scmp.ne.s32.totalorder %s3797_s2, %s2804_s21  ;;  %s49_s17 = int_to_ptr.vmem [resolvable:$true] %s48_s17 }
  0x4a   :  { %p2808_p5 = scmp.lt.u32.totalorder %s2804_s21, %s3797_s2 }
  0x4c   :  { %p2810_p6 = pnand %p2808_p5, %p2805_p4 }
  0x4e   :  { %2813 = shalt.err (!%p2810_p6)
}
  0x4f   :  { %s2814_s24 = scalar_lea.vmem %s49_s17, 49152  ;;  %p2819_p8 = scmp.lt.s32.totalorder %s49_s17, %s49_s17 }
  0x50   :  { %p2815_p7 = scmp.ne.s32.totalorder %s49_s17, %s2814_s24  ;;  %p2820_p9 = scmp.lt.s32.totalorder %s2814_s24, %s2814_s24 }
  0x52   :  { %p2821_p10 = por %p2820_p9, %p2819_p8 }
  0x54   :  { %p2822_p11 = pnand %p2821_p10, %p2815_p7 }
  0x56   :  { %2825 = shalt.err (!%p2822_p11)
}
  0x57   :  { %s2977_s0 = smov 512   ;;  %s2978_s13 = smov 32  }
  0x58   :  { %54 = dma.hbm_to_vmem [thread:$0]  %s3797_s2, 49152, %s49_s17, [#allocation6], %s2977_s0, %s2977_s0, %s2978_s13  }
  0x59   :  { %s2979_s27 = smov [#allocation10]   ;;  %s2980_s1 = smov [#allocation13]  }
  0x5a   :  { %s73_s29 = sshll.u32 %s2979_s27, 4  ;;  %s93_s28 = sshll.u32 %s2980_s1, 4  ;;  %s74_s29 = int_to_ptr.vmem [resolvable:$true] %s73_s29  ;;  %s94_s28 = int_to_ptr.vmem [resolvable:$true] %s93_s28 }
  0x5b   :  { %s2826_s5 = scalar_lea.hbm %s3799_s4, 256 }
  0x5c   :  { %p2827_p12 = scmp.ne.s32.totalorder %s3799_s4, %s2826_s5  ;;  %p2830_p13 = scmp.lt.u32.totalorder %s2826_s5, %s3799_s4 }
  0x5e   :  { %p2832_p0 = pnand %p2830_p13, %p2827_p12 }
  0x60   :  { %2835 = shalt.err (!%p2832_p0)
}
  0x61   :  { %s2836_s2 = scalar_lea.vmem %s74_s29, 256  ;;  %p2841_p2 = scmp.lt.s32.totalorder %s74_s29, %s74_s29 }
  0x62   :  { %p2837_p1 = scmp.ne.s32.totalorder %s74_s29, %s2836_s2  ;;  %p2842_p3 = scmp.lt.s32.totalorder %s2836_s2, %s2836_s2 }
  0x64   :  { %p2843_p4 = por %p2842_p3, %p2841_p2 }
  0x66   :  { %p2844_p5 = pnand %p2843_p4, %p2837_p1 }
  0x68   :  { %2847 = shalt.err (!%p2844_p5)
}
  0x69   :  { %76 = dma.hbm_to_vmem [thread:$0]  %s3799_s4, 256, %s74_s29, [#allocation9]  }
  0x6a   :  { %s2848_s22 = scalar_lea.hbm %s3801_s6, 128 }
  0x6b   :  { %p2849_p6 = scmp.ne.s32.totalorder %s3801_s6, %s2848_s22  ;;  %p2852_p7 = scmp.lt.u32.totalorder %s2848_s22, %s3801_s6 }
  0x6d   :  { %p2854_p8 = pnand %p2852_p7, %p2849_p6 }
  0x6f   :  { %2857 = shalt.err (!%p2854_p8)
}
  0x70   :  { %s2858_s0 = scalar_lea.vmem %s94_s28, 128  ;;  %p2863_p10 = scmp.lt.s32.totalorder %s94_s28, %s94_s28 }
  0x71   :  { %p2859_p9 = scmp.ne.s32.totalorder %s94_s28, %s2858_s0  ;;  %p2864_p11 = scmp.lt.s32.totalorder %s2858_s0, %s2858_s0 }
  0x73   :  { %p2865_p12 = por %p2864_p11, %p2863_p10 }
  0x75   :  { %p2866_p13 = pnand %p2865_p12, %p2859_p9 }
  0x77   :  { %2869 = shalt.err (!%p2866_p13)
}
  0x78   :  { %96 = dma.hbm_to_vmem [thread:$0]  %s3801_s6, 128, %s94_s28, [#allocation12]  }
  0x79   :  { %s2981_s25 = smov [#allocation14]   ;;  %s2870_s1 = scalar_lea.hbm %s3802_s7, 2048 }
  0x7a   :  { %s102_s26 = sshll.u32 %s2981_s25, 4  ;;  %p2871_p0 = scmp.ne.s32.totalorder %s3802_s7, %s2870_s1  ;;  %s103_s26 = int_to_ptr.vmem [resolvable:$true] %s102_s26 }
  0x7b   :  { %p2874_p1 = scmp.lt.u32.totalorder %s2870_s1, %s3802_s7 }
  0x7d   :  { %p2876_p2 = pnand %p2874_p1, %p2871_p0 }
  0x7f   :  { %2879 = shalt.err (!%p2876_p2)
}
  0x80   :  { %s2880_s11 = scalar_lea.vmem %s103_s26, 2048  ;;  %p2885_p4 = scmp.lt.s32.totalorder %s103_s26, %s103_s26 }
  0x81   :  { %p2881_p3 = scmp.ne.s32.totalorder %s103_s26, %s2880_s11  ;;  %p2886_p5 = scmp.lt.s32.totalorder %s2880_s11, %s2880_s11 }
  0x83   :  { %p2887_p6 = por %p2886_p5, %p2885_p4 }
  0x85   :  { %p2888_p7 = pnand %p2887_p6, %p2881_p3 }
  0x87   :  { %2891 = shalt.err (!%p2888_p7)
}
  0x88   :  { %108 = dma.hbm_to_vmem [thread:$0]  %s3802_s7, 2048, %s103_s26, [#allocation15], %s2967_s15, %s2967_s15, %s2968_s16  }
  0x89   :  { %2934 = dma.done.wait [#allocation3], 512  }
  0x8a   :  { %2935 = vsyncadd [#allocation3], 4294966784 }
  0x8b   :  { %2936 = dma.done.wait [#allocation6], 49280  }
  0x8c   :  { %2937 = vsyncadd [#allocation6], 4294918016 }
  0x8d   :  { %2938 = dma.done.wait [#allocation9], 12544  }
  0x8e   :  { %2939 = vsyncadd [#allocation9], 4294954752 }
  0x8f   :  { %2940 = dma.done.wait [#allocation12], 192  }
  0x90   :  { %2941 = vsyncadd [#allocation12], 4294967104 }
  0x91   :  { %2942 = dma.done.wait [#allocation15], 2048  }
  0x92   :  { %2943 = vsyncadd [#allocation15], 4294965248  ;;  %v138_v0 = vlaneseq  ;;  %v3143_v4 = vld [vmem:[#allocation5] sm:$0xf]  ;;  %v3145_v5 = vld [vmem:[#allocation5 + $0x4] sm:$0xf] }
  0x93   :  { %3945 = vst [vmem:[#allocation25_spill] sm:$0xff] %v3143_v4  ;;  %3946 = vst [vmem:[#allocation26_spill] sm:$0xff] %v3145_v5  ;;  %v3147_v6 = vld [vmem:[#allocation8] sm:$0xff]  ;;  %v3173_v19 = vld [vmem:[#allocation8 + $0x8] sm:$0xff]  ;;  %s3371_s7 = smov 0  }
  0x94   :  { %v139_v1 = vshrl.u32 %v138_v0, 7  ;;  %3947 = vst [vmem:[#allocation27_spill] sm:$0xff] %v3147_v6  ;;  %v136_v7 = vld [vmem:[#allocation10] ss:$8 sm:$0x3]  ;;  %3956 = vst [vmem:[#allocation36_spill] sm:$0xff] %v3173_v19 }
  0x95   :  { %v149_v8 = vld [vmem:[#allocation10 + $0x1] ss:$8 sm:$0x3]  ;;  %v162_v13 = vld [vmem:[#allocation10 + $0x2] ss:$8 sm:$0x3] }
  0x96   :  { %v3139_v2 = vsub.s32 0, %v139_v1  ;;  %v3141_v3 = vsub.s32 1, %v139_v1  ;;  %v175_v14 = vld [vmem:[#allocation10 + $0x3] ss:$8 sm:$0x3]  ;;  %v3175_v20 = vld [vmem:[#allocation8 + $0x10] sm:$0xff] }
  0x97   :  { %3957 = vst [vmem:[#allocation37_spill] sm:$0xff] %v3175_v20  ;;  %v3177_v21 = vld [vmem:[#allocation8 + $0x18] sm:$0xff]  ;;  %v3179_v22 = vld [vmem:[#allocation8 + $0x20] sm:$0xff]  ;;  %v3181_v23 = vld [vmem:[#allocation8 + $0x28] sm:$0xff] }
  0x98   :  { %3943 = vst [vmem:[#allocation23_spill] sm:$0xff] %v3139_v2  ;;  %3944 = vst [vmem:[#allocation24_spill] sm:$0xff] %v3141_v3  ;;  %v3150_v9 = vrot.slane %v136_v7, %v3139_v2  ;;  %v3153_v10 = vrot.slane %v136_v7, %v3141_v3  ;;  %v3156_v11 = vrot.slane %v149_v8, %v3139_v2  ;;  %v3183_v24 = vld [vmem:[#allocation8 + $0x30] sm:$0xff]  ;;  %v3185_v25 = vld [vmem:[#allocation8 + $0x38] sm:$0xff] }
  0x99   :  { %v3159_v12 = vrot.slane %v149_v8, %v3141_v3  ;;  %v3162_v15 = vrot.slane %v162_v13, %v3139_v2  ;;  %v3165_v16 = vrot.slane %v162_v13, %v3141_v3  ;;  %v3168_v17 = vrot.slane %v175_v14, %v3139_v2  ;;  %3958 = vst [vmem:[#allocation38_spill] sm:$0xff] %v3177_v21  ;;  %v3187_v26 = vld [vmem:[#allocation8 + $0x40] sm:$0xff]  ;;  %v3189_v27 = vld [vmem:[#allocation8 + $0x48] sm:$0xff]  ;;  %v3191_v28 = vld [vmem:[#allocation8 + $0x50] sm:$0xff] }
  0x9a   :  { %3948 = vst [vmem:[#allocation28_spill] sm:$0xff] %v3150_v9  ;;  %3949 = vst [vmem:[#allocation29_spill] sm:$0xff] %v3153_v10  ;;  %v3171_v18 = vrot.slane %v175_v14, %v3141_v3  ;;  %v3193_v29 = vld [vmem:[#allocation8 + $0x58] sm:$0xff]  ;;  %v3195_v30 = vld [vmem:[#allocation8 + $0x60] sm:$0xff] }
  0x9b   :  { %3950 = vst [vmem:[#allocation30_spill] sm:$0xff] %v3156_v11  ;;  %3951 = vst [vmem:[#allocation31_spill] sm:$0xff] %v3159_v12  ;;  %v3197_v31 = vld [vmem:[#allocation8 + $0x68] sm:$0xff]  ;;  %v3199_v32 = vld [vmem:[#allocation8 + $0x70] sm:$0xff] }
  0x9c   :  { %3952 = vst [vmem:[#allocation32_spill] sm:$0xff] %v3162_v15  ;;  %3953 = vst [vmem:[#allocation33_spill] sm:$0xff] %v3165_v16  ;;  %v3201_v33 = vld [vmem:[#allocation8 + $0x78] sm:$0xff]  ;;  %v3203_v34 = vld [vmem:[#allocation8 + $0x80] sm:$0xff] }
  0x9d   :  { %3954 = vst [vmem:[#allocation34_spill] sm:$0xff] %v3168_v17  ;;  %3955 = vst [vmem:[#allocation35_spill] sm:$0xff] %v3171_v18  ;;  %v3205_v35 = vld [vmem:[#allocation8 + $0x88] sm:$0xff]  ;;  %v3207_v36 = vld [vmem:[#allocation8 + $0x90] sm:$0xff] }
  0x9e   :  { %3959 = vst [vmem:[#allocation39_spill] sm:$0xff] %v3179_v22  ;;  %3960 = vst [vmem:[#allocation40_spill] sm:$0xff] %v3181_v23  ;;  %v3209_v37 = vld [vmem:[#allocation8 + $0x98] sm:$0xff]  ;;  %v3211_v38 = vld [vmem:[#allocation8 + $0xa0] sm:$0xff] }
  0x9f   :  { %3961 = vst [vmem:[#allocation41_spill] sm:$0xff] %v3183_v24  ;;  %3962 = vst [vmem:[#allocation42_spill] sm:$0xff] %v3187_v26  ;;  %v3213_v39 = vld [vmem:[#allocation8 + $0xa8] sm:$0xff]  ;;  %v3215_v40 = vld [vmem:[#allocation8 + $0xb0] sm:$0xff] }
  0xa0   :  { %3963 = vst [vmem:[#allocation43_spill] sm:$0xff] %v3193_v29  ;;  %3964 = vst [vmem:[#allocation44_spill] sm:$0xff] %v3199_v32  ;;  %v3217_v41 = vld [vmem:[#allocation8 + $0xb8] sm:$0xff]  ;;  %v3219_v42 = vld [vmem:[#allocation8 + $0xc0] sm:$0xff] }
  0xa1   :  { %3965 = vst [vmem:[#allocation45_spill] sm:$0xff] %v3205_v35  ;;  %3966 = vst [vmem:[#allocation46_spill] sm:$0xff] %v3211_v38  ;;  %v3221_v43 = vld [vmem:[#allocation8 + $0xc8] sm:$0xff]  ;;  %v3223_v44 = vld [vmem:[#allocation8 + $0xd0] sm:$0xff] }
  0xa2   :  { %3967 = vst [vmem:[#allocation47_spill] sm:$0xff] %v3217_v41  ;;  %3968 = vst [vmem:[#allocation48_spill] sm:$0xff] %v3223_v44  ;;  %v3225_v45 = vld [vmem:[#allocation8 + $0xd8] sm:$0xff]  ;;  %v3227_v46 = vld [vmem:[#allocation8 + $0xe0] sm:$0xff] }
  0xa3   :  { %v3229_v47 = vld [vmem:[#allocation8 + $0xe8] sm:$0xff]  ;;  %v3231_v48 = vld [vmem:[#allocation8 + $0xf0] sm:$0xff]  ;;  %v3233_v49 = vld [vmem:[#allocation8 + $0xf8] sm:$0xff] }
  0xa4   :  { %3969 = vst [vmem:[#allocation49_spill] sm:$0xff] %v3229_v47  ;;  %v3235_v50 = vld [vmem:[#allocation8 + $0x100] sm:$0xff]  ;;  %v3237_v51 = vld [vmem:[#allocation8 + $0x108] sm:$0xff]  ;;  %v3239_v52 = vld [vmem:[#allocation8 + $0x110] sm:$0xff] }
  0xa5   :  { %3970 = vst [vmem:[#allocation50_spill] sm:$0xff] %v3235_v50  ;;  %v3241_v53 = vld [vmem:[#allocation8 + $0x118] sm:$0xff]  ;;  %v3243_v54 = vld [vmem:[#allocation8 + $0x120] sm:$0xff]  ;;  %v3245_v55 = vld [vmem:[#allocation8 + $0x128] sm:$0xff] }
  0xa6   :  { %3971 = vst [vmem:[#allocation51_spill] sm:$0xff] %v3241_v53  ;;  %v3247_v56 = vld [vmem:[#allocation8 + $0x130] sm:$0xff]  ;;  %v3249_v57 = vld [vmem:[#allocation8 + $0x138] sm:$0xff]  ;;  %v3251_v58 = vld [vmem:[#allocation8 + $0x140] sm:$0xff] }
  0xa7   :  { %3972 = vst [vmem:[#allocation52_spill] sm:$0xff] %v3247_v56  ;;  %v3253_v59 = vld [vmem:[#allocation8 + $0x148] sm:$0xff]  ;;  %v3255_v60 = vld [vmem:[#allocation8 + $0x150] sm:$0xff]  ;;  %v3257_v61 = vld [vmem:[#allocation8 + $0x158] sm:$0xff] }
  0xa8   :  { %3973 = vst [vmem:[#allocation53_spill] sm:$0xff] %v3253_v59  ;;  %v3259_v62 = vld [vmem:[#allocation8 + $0x160] sm:$0xff]  ;;  %v3261_v63 = vld [vmem:[#allocation8 + $0x168] sm:$0xff]  ;;  %v3263_v0 = vld [vmem:[#allocation8 + $0x170] sm:$0xff] }
  0xa9   :  { %3974 = vst [vmem:[#allocation54_spill] sm:$0xff] %v3259_v62  ;;  %3975 = vst [vmem:[#allocation55_spill] sm:$0xff] %v3263_v0  ;;  %v3265_v1 = vld [vmem:[#allocation8 + $0x178] sm:$0xff]  ;;  %v3267_v7 = vld [vmem:[#allocation8 + $0x180] sm:$0xff] }
  0xaa   :  { %3976 = vst [vmem:[#allocation56_spill] sm:$0xff] %v3265_v1  ;;  %3977 = vst [vmem:[#allocation57_spill] sm:$0xff] %v3267_v7  ;;  %v3269_v8 = vld [vmem:[#allocation8 + $0x188] sm:$0xff]  ;;  %v3271_v13 = vld [vmem:[#allocation8 + $0x190] sm:$0xff] }
  0xab   :  { %3978 = vst [vmem:[#allocation58_spill] sm:$0xff] %v3269_v8  ;;  %3979 = vst [vmem:[#allocation59_spill] sm:$0xff] %v3271_v13  ;;  %v3273_v14 = vld [vmem:[#allocation8 + $0x198] sm:$0xff]  ;;  %v3275_v2 = vld [vmem:[#allocation8 + $0x1a0] sm:$0xff] }
  0xac   :  { %3980 = vst [vmem:[#allocation60_spill] sm:$0xff] %v3273_v14  ;;  %3981 = vst [vmem:[#allocation61_spill] sm:$0xff] %v3275_v2  ;;  %v3277_v3 = vld [vmem:[#allocation8 + $0x1a8] sm:$0xff]  ;;  %v3279_v16 = vld [vmem:[#allocation8 + $0x1b0] sm:$0xff] }
  0xad   :  { %3982 = vst [vmem:[#allocation62_spill] sm:$0xff] %v3277_v3  ;;  %3983 = vst [vmem:[#allocation63_spill] sm:$0xff] %v3279_v16  ;;  %v3281_v15 = vld [vmem:[#allocation8 + $0x1b8] sm:$0xff]  ;;  %v3283_v12 = vld [vmem:[#allocation8 + $0x1c0] sm:$0xff] }
  0xae   :  { %3984 = vst [vmem:[#allocation64_spill] sm:$0xff] %v3281_v15  ;;  %3985 = vst [vmem:[#allocation65_spill] sm:$0xff] %v3283_v12  ;;  %v3285_v11 = vld [vmem:[#allocation8 + $0x1c8] sm:$0xff]  ;;  %v3287_v18 = vld [vmem:[#allocation8 + $0x1d0] sm:$0xff] }
  0xaf   :  { %3986 = vst [vmem:[#allocation66_spill] sm:$0xff] %v3285_v11  ;;  %3987 = vst [vmem:[#allocation67_spill] sm:$0xff] %v3287_v18  ;;  %v3289_v17 = vld [vmem:[#allocation8 + $0x1d8] sm:$0xff]  ;;  %v3291_v10 = vld [vmem:[#allocation8 + $0x1e0] sm:$0xff] }
  0xb0   :  { %3988 = vst [vmem:[#allocation68_spill] sm:$0xff] %v3289_v17  ;;  %3989 = vst [vmem:[#allocation69_spill] sm:$0xff] %v3291_v10  ;;  %v3293_v9 = vld [vmem:[#allocation8 + $0x1e8] sm:$0xff]  ;;  %v3295_v13 = vld [vmem:[#allocation8 + $0x1f0] sm:$0xff] }
  0xb1   :  { %3990 = vst [vmem:[#allocation70_spill] sm:$0xff] %v3293_v9  ;;  %3991 = vst [vmem:[#allocation71_spill] sm:$0xff] %v3295_v13  ;;  %v3297_v62 = vld [vmem:[#allocation8 + $0x1f8] sm:$0xff]  ;;  %v3299_v3 = vld [vmem:[#allocation8 + $0x200] sm:$0xff] }
  0xb2   :  { %3992 = vst [vmem:[#allocation72_spill] sm:$0xff] %v3297_v62  ;;  %3993 = vst [vmem:[#allocation73_spill] sm:$0xff] %v3299_v3  ;;  %v3301_v1 = vld [vmem:[#allocation8 + $0x208] sm:$0xff]  ;;  %v3303_v56 = vld [vmem:[#allocation8 + $0x210] sm:$0xff] }
  0xb3   :  { %3994 = vst [vmem:[#allocation74_spill] sm:$0xff] %v3301_v1  ;;  %3995 = vst [vmem:[#allocation75_spill] sm:$0xff] %v3303_v56  ;;  %v3305_v12 = vld [vmem:[#allocation8 + $0x218] sm:$0xff]  ;;  %v3307_v59 = vld [vmem:[#allocation8 + $0x220] sm:$0xff] }
  0xb4   :  { %3996 = vst [vmem:[#allocation76_spill] sm:$0xff] %v3305_v12  ;;  %3997 = vst [vmem:[#allocation77_spill] sm:$0xff] %v3307_v59  ;;  %v3309_v50 = vld [vmem:[#allocation8 + $0x228] sm:$0xff]  ;;  %v3311_v17 = vld [vmem:[#allocation8 + $0x230] sm:$0xff] }
  0xb5   :  { %3998 = vst [vmem:[#allocation78_spill] sm:$0xff] %v3309_v50  ;;  %3999 = vst [vmem:[#allocation79_spill] sm:$0xff] %v3311_v17  ;;  %v3313_v53 = vld [vmem:[#allocation8 + $0x238] sm:$0xff]  ;;  %v3315_v44 = vld [vmem:[#allocation8 + $0x240] sm:$0xff] }
  0xb6   :  { %4000 = vst [vmem:[#allocation80_spill] sm:$0xff] %v3313_v53  ;;  %4001 = vst [vmem:[#allocation81_spill] sm:$0xff] %v3315_v44  ;;  %v3317_v13 = vld [vmem:[#allocation8 + $0x248] sm:$0xff]  ;;  %v3319_v47 = vld [vmem:[#allocation8 + $0x250] sm:$0xff] }
  0xb7   :  { %4002 = vst [vmem:[#allocation82_spill] sm:$0xff] %v3317_v13  ;;  %4003 = vst [vmem:[#allocation83_spill] sm:$0xff] %v3319_v47  ;;  %v3321_v38 = vld [vmem:[#allocation8 + $0x258] sm:$0xff]  ;;  %v3323_v1 = vld [vmem:[#allocation8 + $0x260] sm:$0xff] }
  0xb8   :  { %4004 = vst [vmem:[#allocation84_spill] sm:$0xff] %v3321_v38  ;;  %4005 = vst [vmem:[#allocation85_spill] sm:$0xff] %v3323_v1  ;;  %v3325_v41 = vld [vmem:[#allocation8 + $0x268] sm:$0xff]  ;;  %v3327_v32 = vld [vmem:[#allocation8 + $0x270] sm:$0xff] }
  0xb9   :  { %4006 = vst [vmem:[#allocation86_spill] sm:$0xff] %v3325_v41  ;;  %4007 = vst [vmem:[#allocation87_spill] sm:$0xff] %v3327_v32  ;;  %v3329_v59 = vld [vmem:[#allocation8 + $0x278] sm:$0xff]  ;;  %v3331_v35 = vld [vmem:[#allocation8 + $0x280] sm:$0xff] }
  0xba   :  { %4008 = vst [vmem:[#allocation88_spill] sm:$0xff] %v3329_v59  ;;  %4009 = vst [vmem:[#allocation89_spill] sm:$0xff] %v3331_v35  ;;  %v3333_v26 = vld [vmem:[#allocation8 + $0x288] sm:$0xff]  ;;  %v3335_v53 = vld [vmem:[#allocation8 + $0x290] sm:$0xff] }
  0xbb   :  { %4010 = vst [vmem:[#allocation90_spill] sm:$0xff] %v3333_v26  ;;  %4011 = vst [vmem:[#allocation91_spill] sm:$0xff] %v3335_v53  ;;  %v3337_v29 = vld [vmem:[#allocation8 + $0x298] sm:$0xff]  ;;  %v3339_v20 = vld [vmem:[#allocation8 + $0x2a0] sm:$0xff] }
  0xbc   :  { %4012 = vst [vmem:[#allocation92_spill] sm:$0xff] %v3337_v29  ;;  %4013 = vst [vmem:[#allocation93_spill] sm:$0xff] %v3339_v20  ;;  %v3341_v47 = vld [vmem:[#allocation8 + $0x2a8] sm:$0xff]  ;;  %v3343_v23 = vld [vmem:[#allocation8 + $0x2b0] sm:$0xff] }
  0xbd   :  { %4014 = vst [vmem:[#allocation94_spill] sm:$0xff] %v3341_v47  ;;  %4015 = vst [vmem:[#allocation95_spill] sm:$0xff] %v3343_v23  ;;  %v3345_v44 = vld [vmem:[#allocation8 + $0x2b8] sm:$0xff]  ;;  %v3347_v41 = vld [vmem:[#allocation8 + $0x2c0] sm:$0xff] }
  0xbe   :  { %4016 = vst [vmem:[#allocation96_spill] sm:$0xff] %v3345_v44  ;;  %4017 = vst [vmem:[#allocation97_spill] sm:$0xff] %v3347_v41  ;;  %v3349_v32 = vld [vmem:[#allocation8 + $0x2c8] sm:$0xff]  ;;  %v3351_v59 = vld [vmem:[#allocation8 + $0x2d0] sm:$0xff] }
  0xbf   :  { %4018 = vst [vmem:[#allocation98_spill] sm:$0xff] %v3349_v32  ;;  %4019 = vst [vmem:[#allocation99_spill] sm:$0xff] %v3351_v59  ;;  %v3353_v35 = vld [vmem:[#allocation8 + $0x2d8] sm:$0xff]  ;;  %v3355_v26 = vld [vmem:[#allocation8 + $0x2e0] sm:$0xff] }
  0xc0   :  { %4020 = vst [vmem:[#allocation100_spill] sm:$0xff] %v3353_v35  ;;  %4021 = vst [vmem:[#allocation101_spill] sm:$0xff] %v3355_v26  ;;  %v3357_v53 = vld [vmem:[#allocation8 + $0x2e8] sm:$0xff]  ;;  %v3359_v29 = vld [vmem:[#allocation8 + $0x2f0] sm:$0xff] }
  0xc1   :  { %4022 = vst [vmem:[#allocation102_spill] sm:$0xff] %v3357_v53  ;;  %4023 = vst [vmem:[#allocation103_spill] sm:$0xff] %v3359_v29  ;;  %v3361_v20 = vld [vmem:[#allocation8 + $0x2f8] sm:$0xff]  ;;  %v284_v23 = vld [vmem:[#allocation2 + $0x8] sm:$0xff]  }
  0xc2   :  { %4024 = vst [vmem:[#allocation104_spill] sm:$0xff] %v3361_v20  ;;  %v283_v47 = vld [vmem:[#allocation2] sm:$0xff]   ;;  %v285_v38 = vld [vmem:[#allocation2 + $0x10] sm:$0xff]   ;;  %v286_v44 = vld [vmem:[#allocation2 + $0x18] sm:$0xff]  }
  0xc3 LB: > { %v4025_v24 = vld [vmem:[#allocation41_spill] sm:$0xff]  ;;  %v4026_v22 = vld [vmem:[#allocation39_spill] sm:$0xff]  ;;  %v4027_v21 = vld [vmem:[#allocation38_spill] sm:$0xff]  ;;  %4040 = vst [vmem:[#allocation105_spill] sm:$0xff] %v2948_v44  ;;  %s2566_s15 = sshll.u32 %s2964_s7, 10  ;;  %v3391_v26 = vpack.c.bf16 %v2948_v44, %v2956_v23  ;;  %vm1249_vm0 = vcmask 130048   ;;  %s2964_s7 = sphi %s3371_s7, %s292_s7   ;;  %v2960_v47 = vphi %v283_v47, %v4138_v47   ;;  %v2956_v23 = vphi %v284_v23, %v4137_v23   ;;  %v2952_v38 = vphi %v285_v38, %v4136_v38   ;;  %v2948_v44 = vphi %v286_v44, %v4135_v44  }
  0xc4   : > { %v4028_v19 = vld [vmem:[#allocation36_spill] sm:$0xff]  ;;  %v4029_v18 = vld [vmem:[#allocation67_spill] sm:$0xff]  ;;  %v4033_v11 = vld [vmem:[#allocation66_spill] sm:$0xff]  ;;  %4041 = vst [vmem:[#allocation106_spill] sm:$0xff] %v2952_v38  ;;  %s3393_s16 = scalar_lea.vmem [#allocation7], %s2566_s15  ;;  %s292_s7 = sadd.s32 1, %s2964_s7  }
  0xc5   : > { %v4030_v16 = vld [vmem:[#allocation63_spill] sm:$0xff]  ;;  %v4031_v15 = vld [vmem:[#allocation64_spill] sm:$0xff]  ;;  %v4034_v8 = vld [vmem:[#allocation58_spill] sm:$0xff]  ;;  %4042 = vst [vmem:[#allocation107_spill] sm:$0xff] %v2956_v23  ;;  %1102 = vmatprep.mubr.bf16.mxu0 %v3391_v26  ;;  %1145 = vmatprep.mubr.bf16.mxu1 %v3391_v26  ;;  %p289_p8 = scmp.ge.s32.totalorder %s292_s7, 3  }
  0xc6   : > { %v4032_v14 = vld [vmem:[#allocation60_spill] sm:$0xff]  ;;  %v4035_v7 = vld [vmem:[#allocation57_spill] sm:$0xff]  ;;  %v4036_v6 = vld [vmem:[#allocation27_spill] sm:$0xff]  ;;  %4043 = vst [vmem:[#allocation108_spill] sm:$0xff] %v2960_v47  ;;  %s2984_s12 = smov (%p289_p8), [#allocation16]  }
  0xc7   : > { %v4037_v3 = vld [vmem:[#allocation73_spill] sm:$0xff]  ;;  %v4039_v0 = vld [vmem:[#allocation55_spill] sm:$0xff]  ;;  %v4044_v5 = vld [vmem:[#allocation26_spill] sm:$0xff]  ;;  %s2280_s14 = sshll.u32 (%p289_p8), %s2984_s12, 4  ;;  %s2281_s14 = int_to_ptr.vmem [resolvable:$true] %s2280_s14 }
  0xc8   : > { %v4038_v2 = vld [vmem:[#allocation61_spill] sm:$0xff]  ;;  %s2892_s2 = scalar_lea.vmem (%p289_p8), %s2281_s14, 128  ;;  %p2897_p10 = scmp.lt.s32.totalorder (%p289_p8), %s2281_s14, %s2281_s14 }
  0xc9   : > { %v302_v20 = vld [vmem:[%s3393_s16] sm:$0xff]  ;;  %p2893_p9 = scmp.ne.s32.totalorder (%p289_p8), %s2281_s14, %s2892_s2  ;;  %p2898_p11 = scmp.lt.s32.totalorder (%p289_p8), %s2892_s2, %s2892_s2 }
  0xca   : > { %v306_v32 = vld [vmem:[%s3393_s16 + $0x20] sm:$0xff] }
  0xcb   : > { %v310_v35 = vld [vmem:[%s3393_s16 + $0x40] sm:$0xff]  ;;  %v2315_v29 = vcombine.high %v302_v20, %v306_v32  ;;  %v2314_v44 = vcombine.low %v302_v20, %v306_v32  ;;  %p2899_p12 = por (%p289_p8), %p2898_p11, %p2897_p10 }
  0xcc   : > { %v314_v23 = vld [vmem:[%s3393_s16 + $0x60] sm:$0xff] }
  0xcd   : > { %v2323_v59 = vcombine.high %v310_v35, %v314_v23  ;;  %v318_v53 = vld [vmem:[%s3393_s16 + $0x80] sm:$0xff]  ;;  %1070 = vmatprep.subr.bf16.mxu0 %v2315_v29  ;;  %v2322_v13 = vcombine.low %v310_v35, %v314_v23  ;;  %p2900_p13 = pnand (%p289_p8), %p2899_p12, %p2893_p9 }
  0xce   : > { %v322_v41 = vld [vmem:[%s3393_s16 + $0xa0] sm:$0xff]  ;;  %1071 = vmatpush1.bf16.msra.mxu0 %v2314_v44 }
  0xcf   : > { %1072 = vmatprep.subr.bf16.mxu0 %v2323_v59  ;;  %v2331_v1 = vcombine.high %v318_v53, %v322_v41  ;;  %v326_v56 = vld [vmem:[%s3393_s16 + $0xc0] sm:$0xff]  ;;  %v2330_v12 = vcombine.low %v318_v53, %v322_v41 }
  0xd0   : > { %v330_v50 = vld [vmem:[%s3393_s16 + $0xe0] sm:$0xff] }
  0xd1   : > { %v2339_v20 = vcombine.high %v326_v56, %v330_v50  ;;  %v334_v32 = vld [vmem:[%s3393_s16 + $0x100] sm:$0xff]  ;;  %v2338_v10 = vcombine.low %v326_v56, %v330_v50 }
  0xd2   : > { %1073 = vmatpush1.bf16.msra.mxu0 %v2322_v13  ;;  %v338_v17 = vld [vmem:[%s3393_s16 + $0x120] sm:$0xff] }
  0xd3   : > { %1074 = vmatprep.subr.bf16.mxu0 %v2331_v1  ;;  %v2347_v29 = vcombine.high %v334_v32, %v338_v17  ;;  %v342_v23 = vld [vmem:[%s3393_s16 + $0x140] sm:$0xff]  ;;  %v2346_v44 = vcombine.low %v334_v32, %v338_v17 }
  0xd4   : > { %v346_v35 = vld [vmem:[%s3393_s16 + $0x160] sm:$0xff] }
  0xd5   : > { %v2355_v59 = vcombine.high %v342_v23, %v346_v35  ;;  %v350_v41 = vld [vmem:[%s3393_s16 + $0x180] sm:$0xff]  ;;  %v2354_v1 = vcombine.low %v342_v23, %v346_v35 }
  0xd6   : > { %1075 = vmatpush1.bf16.msra.mxu0 %v2330_v12  ;;  %v354_v53 = vld [vmem:[%s3393_s16 + $0x1a0] sm:$0xff] }
  0xd7   : > { %1076 = vmatprep.subr.bf16.mxu0 %v2339_v20  ;;  %v2363_v12 = vcombine.high %v350_v41, %v354_v53  ;;  %v358_v50 = vld [vmem:[%s3393_s16 + $0x1c0] sm:$0xff]  ;;  %v2362_v13 = vcombine.low %v350_v41, %v354_v53 }
  0xd8   : > { %v362_v56 = vld [vmem:[%s3393_s16 + $0x1e0] sm:$0xff] }
  0xd9   : > { %v366_v17 = vld [vmem:[%s3393_s16 + $0x200] sm:$0xff]  ;;  %v2370_v32 = vcombine.low %v358_v50, %v362_v56 }
  0xda   : > { %1077 = vmatpush1.bf16.msra.mxu0 %v2338_v10  ;;  %v2371_v10 = vcombine.high %v358_v50, %v362_v56  ;;  %v370_v20 = vld [vmem:[%s3393_s16 + $0x220] sm:$0xff] }
  0xdb   : > { %1078 = vmatprep.subr.bf16.mxu0 %v2347_v29  ;;  %v2379_v29 = vcombine.high %v366_v17, %v370_v20  ;;  %v374_v23 = vld [vmem:[%s3393_s16 + $0x240] sm:$0xff] }
  0xdc   : > { %v378_v35 = vld [vmem:[%s3393_s16 + $0x260] sm:$0xff] }
  0xdd   : > { %v382_v41 = vld [vmem:[%s3393_s16 + $0x280] sm:$0xff] }
  0xde   : > { %1079 = vmatpush1.bf16.msra.mxu0 %v2346_v44  ;;  %v2378_v44 = vcombine.low %v366_v17, %v370_v20  ;;  %v386_v53 = vld [vmem:[%s3393_s16 + $0x2a0] sm:$0xff] }
  0xdf   : > { %1080 = vmatprep.subr.bf16.mxu0 %v2355_v59  ;;  %v2387_v59 = vcombine.high %v374_v23, %v378_v35  ;;  %v390_v50 = vld [vmem:[%s3393_s16 + $0x2c0] sm:$0xff] }
  0xe0   : > { %v394_v56 = vld [vmem:[%s3393_s16 + $0x2e0] sm:$0xff] }
  0xe1   : > { %v398_v17 = vld [vmem:[%s3393_s16 + $0x300] sm:$0xff] }
  0xe2   : > { %1081 = vmatpush1.bf16.msra.mxu0 %v2354_v1  ;;  %v2386_v1 = vcombine.low %v374_v23, %v378_v35  ;;  %v402_v20 = vld [vmem:[%s3393_s16 + $0x320] sm:$0xff] }
  0xe3   : > { %1082 = vmatprep.subr.bf16.mxu0 %v2363_v12  ;;  %v2395_v12 = vcombine.high %v382_v41, %v386_v53  ;;  %v406_v23 = vld [vmem:[%s3393_s16 + $0x340] sm:$0xff] }
  0xe4   : > { %v410_v35 = vld [vmem:[%s3393_s16 + $0x360] sm:$0xff] }
  0xe5   : > { %v4045_v4 = vld [vmem:[#allocation25_spill] sm:$0xff] }
  0xe6   : > { %1083 = vmatpush1.bf16.msra.mxu0 %v2362_v13  ;;  %v2394_v13 = vcombine.low %v382_v41, %v386_v53  ;;  %v414_v41 = vld [vmem:[%s3393_s16 + $0x380] sm:$0xff] }
  0xe7   : > { %1084 = vmatprep.subr.bf16.mxu0 %v2371_v10  ;;  %v2403_v10 = vcombine.high %v390_v50, %v394_v56  ;;  %v418_v53 = vld [vmem:[%s3393_s16 + $0x3a0] sm:$0xff] }
  0xea   : > { %1085 = vmatpush1.bf16.msra.mxu0 %v2370_v32  ;;  %v2402_v32 = vcombine.low %v390_v50, %v394_v56  ;;  %v422_v50 = vld [vmem:[%s3393_s16 + $0x3c0] sm:$0xff] }
  0xeb   : > { %1086 = vmatprep.subr.bf16.mxu0 %v2379_v29  ;;  %v2411_v29 = vcombine.high %v398_v17, %v402_v20  ;;  %v426_v56 = vld [vmem:[%s3393_s16 + $0x3e0] sm:$0xff] }
  0xee   : > { %1087 = vmatpush1.bf16.msra.mxu0 %v2378_v44  ;;  %v2410_v44 = vcombine.low %v398_v17, %v402_v20  ;;  %v304_v17 = vld [vmem:[%s3393_s16 + $0x10] sm:$0xff] }
  0xef   : > { %1088 = vmatprep.subr.bf16.mxu0 %v2387_v59  ;;  %v2419_v59 = vcombine.high %v406_v23, %v410_v35  ;;  %v308_v20 = vld [vmem:[%s3393_s16 + $0x30] sm:$0xff] }
  0xf2   : > { %1089 = vmatpush1.bf16.msra.mxu0 %v2386_v1  ;;  %v2418_v1 = vcombine.low %v406_v23, %v410_v35  ;;  %v316_v23 = vld [vmem:[%s3393_s16 + $0x70] sm:$0xff]  ;;  %v3435_v35 = vpack.c.bf16 %v2952_v38, %v2960_v47 }
  0xf3   : > { %1090 = vmatprep.subr.bf16.mxu0 %v2395_v12  ;;  %v2427_v12 = vcombine.high %v414_v41, %v418_v53  ;;  %v420_v47 = vld [vmem:[%s3393_s16 + $0x3b0] sm:$0xff] }
  0xf6   : > { %1091 = vmatpush1.bf16.msra.mxu0 %v2394_v13  ;;  %v2426_v13 = vcombine.low %v414_v41, %v418_v53  ;;  %v320_v53 = vld [vmem:[%s3393_s16 + $0x90] sm:$0xff] }
  0xf7   : > { %1092 = vmatprep.subr.bf16.mxu0 %v2403_v10  ;;  %v2435_v10 = vcombine.high %v422_v50, %v426_v56 }
  0xfa   : > { %1093 = vmatpush1.bf16.msra.mxu0 %v2402_v32  ;;  %v2434_v32 = vcombine.low %v422_v50, %v426_v56  ;;  %v328_v56 = vld [vmem:[%s3393_s16 + $0xd0] sm:$0xff] }
  0xfb   : > { %1094 = vmatprep.subr.bf16.mxu0 %v2411_v29  ;;  %v2319_v29 = vcombine.high %v304_v17, %v308_v20 }
  0xfe   : > { %1095 = vmatpush1.bf16.msra.mxu0 %v2410_v44  ;;  %v312_v44 = vld [vmem:[%s3393_s16 + $0x50] sm:$0xff] }
  0xff   : > { %1096 = vmatprep.subr.bf16.mxu0 %v2419_v59  ;;  %v2318_v59 = vcombine.low %v304_v17, %v308_v20  ;;  %v2327_v41 = vcombine.high %v312_v44, %v316_v23  ;;  %v336_v20 = vld [vmem:[%s3393_s16 + $0x110] sm:$0xff] }
 0x102   : > { %1097 = vmatpush1.bf16.msra.mxu0 %v2418_v1  ;;  %v324_v1 = vld [vmem:[%s3393_s16 + $0xb0] sm:$0xff] }
 0x103   : > { %1098 = vmatprep.subr.bf16.mxu0 %v2427_v12  ;;  %v2326_v12 = vcombine.low %v312_v44, %v316_v23  ;;  %v2335_v50 = vcombine.high %v320_v53, %v324_v1  ;;  %v344_v23 = vld [vmem:[%s3393_s16 + $0x150] sm:$0xff] }
 0x106   : > { %1099 = vmatpush1.bf16.msra.mxu0 %v2426_v13  ;;  %v332_v13 = vld [vmem:[%s3393_s16 + $0xf0] sm:$0xff] }
 0x107   : > { %1100 = vmatprep.subr.bf16.mxu0 %v2435_v10  ;;  %v2334_v10 = vcombine.low %v320_v53, %v324_v1  ;;  %v2343_v17 = vcombine.high %v328_v56, %v332_v13  ;;  %v352_v53 = vld [vmem:[%s3393_s16 + $0x190] sm:$0xff] }
 0x108   : > { %v356_v1 = vld [vmem:[%s3393_s16 + $0x1b0] sm:$0xff] }
 0x10a   : > { %1101 = vmatpush1.bf16.msra.mxu0 %v2434_v32  ;;  %v340_v32 = vld [vmem:[%s3393_s16 + $0x130] sm:$0xff] }
 0x10b   : > { %1156 = vmatprep.subr.bf16.mxu0 %v2319_v29  ;;  %v2342_v29 = vcombine.low %v328_v56, %v332_v13  ;;  %v2351_v44 = vcombine.high %v336_v20, %v340_v32  ;;  %v360_v56 = vld [vmem:[%s3393_s16 + $0x1d0] sm:$0xff] }
 0x10c   : > { %v364_v13 = vld [vmem:[%s3393_s16 + $0x1f0] sm:$0xff] }
 0x10d   : > { %1103 = vmatmul.mubr.bf16.vlgmr.msra.gmra.mrb[0].mxu0 %v3435_v35 }
 0x10e   : > { %1157 = vmatpush1.bf16.msra.mxu0 %v2318_v59  ;;  %1188 = vmatprep.mubr.bf16.mxu0 %v3391_v26  ;;  %v348_v59 = vld [vmem:[%s3393_s16 + $0x170] sm:$0xff] }
 0x10f   : > { %1158 = vmatprep.subr.bf16.mxu0 %v2327_v41  ;;  %v2350_v41 = vcombine.low %v336_v20, %v340_v32  ;;  %v368_v20 = vld [vmem:[%s3393_s16 + $0x210] sm:$0xff] }
 0x110   : > { %v372_v32 = vld [vmem:[%s3393_s16 + $0x230] sm:$0xff] }
 0x112   : > { %1159 = vmatpush1.bf16.msra.mxu0 %v2326_v12  ;;  %v2359_v12 = vcombine.high %v344_v23, %v348_v59 }
 0x113   : > { %1160 = vmatprep.subr.bf16.mxu0 %v2335_v50  ;;  %v2358_v50 = vcombine.low %v344_v23, %v348_v59  ;;  %v376_v23 = vld [vmem:[%s3393_s16 + $0x250] sm:$0xff] }
 0x114   : > { %v380_v59 = vld [vmem:[%s3393_s16 + $0x270] sm:$0xff] }
 0x116   : > { %1161 = vmatpush1.bf16.msra.mxu0 %v2334_v10  ;;  %v2367_v10 = vcombine.high %v352_v53, %v356_v1 }
 0x117   : > { %1162 = vmatprep.subr.bf16.mxu0 %v2343_v17  ;;  %v2366_v17 = vcombine.low %v352_v53, %v356_v1  ;;  %v384_v53 = vld [vmem:[%s3393_s16 + $0x290] sm:$0xff] }
 0x118   : > { %v388_v1 = vld [vmem:[%s3393_s16 + $0x2b0] sm:$0xff] }
 0x11a   : > { %1163 = vmatpush1.bf16.msra.mxu0 %v2342_v29  ;;  %v2375_v29 = vcombine.high %v360_v56, %v364_v13 }
 0x11b   : > { %1164 = vmatprep.subr.bf16.mxu0 %v2351_v44  ;;  %v2374_v44 = vcombine.low %v360_v56, %v364_v13  ;;  %v392_v56 = vld [vmem:[%s3393_s16 + $0x2d0] sm:$0xff] }
 0x11c   : > { %v396_v13 = vld [vmem:[%s3393_s16 + $0x2f0] sm:$0xff] }
 0x11e   : > { %1165 = vmatpush1.bf16.msra.mxu0 %v2350_v41  ;;  %v2383_v41 = vcombine.high %v368_v20, %v372_v32 }
 0x11f   : > { %1166 = vmatprep.subr.bf16.mxu0 %v2359_v12  ;;  %v2382_v12 = vcombine.low %v368_v20, %v372_v32  ;;  %v400_v20 = vld [vmem:[%s3393_s16 + $0x310] sm:$0xff] }
 0x120   : > { %v404_v32 = vld [vmem:[%s3393_s16 + $0x330] sm:$0xff] }
 0x122   : > { %1167 = vmatpush1.bf16.msra.mxu0 %v2358_v50  ;;  %v2391_v50 = vcombine.high %v376_v23, %v380_v59 }
 0x123   : > { %1168 = vmatprep.subr.bf16.mxu0 %v2367_v10  ;;  %v2390_v10 = vcombine.low %v376_v23, %v380_v59  ;;  %v408_v23 = vld [vmem:[%s3393_s16 + $0x350] sm:$0xff] }
 0x124   : > { %v412_v59 = vld [vmem:[%s3393_s16 + $0x370] sm:$0xff] }
 0x125   : > { %v2423_v38 = vcombine.high %v408_v23, %v412_v59 }
 0x126   : > { %1169 = vmatpush1.bf16.msra.mxu0 %v2366_v17  ;;  %v2399_v17 = vcombine.high %v384_v53, %v388_v1 }
 0x127   : > { %1170 = vmatprep.subr.bf16.mxu0 %v2375_v29  ;;  %v2398_v29 = vcombine.low %v384_v53, %v388_v1  ;;  %v2422_v53 = vcombine.low %v408_v23, %v412_v59 }
 0x12a   : > { %1171 = vmatpush1.bf16.msra.mxu0 %v2374_v44  ;;  %v2407_v44 = vcombine.high %v392_v56, %v396_v13 }
 0x12b   : > { %1172 = vmatprep.subr.bf16.mxu0 %v2383_v41  ;;  %v2406_v41 = vcombine.low %v392_v56, %v396_v13  ;;  %v428_v56 = vld [vmem:[%s3393_s16 + $0x3f0] sm:$0xff] }
 0x12e   : > { %1173 = vmatpush1.bf16.msra.mxu0 %v2382_v12  ;;  %v2415_v12 = vcombine.high %v400_v20, %v404_v32 }
 0x12f   : > { %1174 = vmatprep.subr.bf16.mxu0 %v2391_v50  ;;  %v2414_v50 = vcombine.low %v400_v20, %v404_v32  ;;  %v2982_v20 = vmov 0   ;;  %v307_v32 = vld [vmem:[%s3393_s16 + $0x28] sm:$0xff] }
 0x132   : > { %1175 = vmatpush1.bf16.msra.mxu0 %v2390_v10  ;;  %v416_v10 = vld [vmem:[%s3393_s16 + $0x390] sm:$0xff] }
 0x133   : > { %1176 = vmatprep.subr.bf16.mxu0 %v2399_v17  ;;  %v2431_v1 = vcombine.high %v416_v10, %v420_v47  ;;  %v424_v17 = vld [vmem:[%s3393_s16 + $0x3d0] sm:$0xff]  ;;  %v2430_v13 = vcombine.low %v416_v10, %v420_v47  ;;  %v315_v47 = vld [vmem:[%s3393_s16 + $0x68] sm:$0xff] }
 0x134   : > { %v323_v10 = vld [vmem:[%s3393_s16 + $0xa8] sm:$0xff] }
 0x136   : > { %1177 = vmatpush1.bf16.msra.mxu0 %v2398_v29  ;;  %v2439_v29 = vcombine.high %v424_v17, %v428_v56 }
 0x137   : > { %1178 = vmatprep.subr.bf16.mxu0 %v2407_v44  ;;  %v2438_v44 = vcombine.low %v424_v17, %v428_v56  ;;  %v327_v17 = vld [vmem:[%s3393_s16 + $0xc8] sm:$0xff] }
 0x138   : > { %v331_v56 = vld [vmem:[%s3393_s16 + $0xe8] sm:$0xff] }
 0x13a   : > { %1179 = vmatpush1.bf16.msra.mxu0 %v2406_v41  ;;  %v311_v41 = vld [vmem:[%s3393_s16 + $0x48] sm:$0xff] }
 0x13b   : > { %1180 = vmatprep.subr.bf16.mxu0 %v2415_v12  ;;  %v2325_v59 = vcombine.high %v311_v41, %v315_v47 }
 0x13e   : > { %1181 = vmatpush1.bf16.msra.mxu0 %v2414_v50  ;;  %v319_v50 = vld [vmem:[%s3393_s16 + $0x88] sm:$0xff] }
 0x13f   : > { %1182 = vmatprep.subr.bf16.mxu0 %v2423_v38  ;;  %v303_v38 = vld [vmem:[%s3393_s16 + $0x8] sm:$0xff] }
 0x140   : > { %v2317_v12 = vcombine.high %v303_v38, %v307_v32  ;;  %v2316_v23 = vcombine.low %v303_v38, %v307_v32  ;;  %v2340_v38 = vcombine.low %v327_v17, %v331_v56 }
 0x142   : > { %1183 = vmatpush1.bf16.msra.mxu0 %v2422_v53  ;;  %1113 = vmatprep.subr.bf16.mxu1 %v2317_v12  ;;  %v2324_v53 = vcombine.low %v311_v41, %v315_v47  ;;  %v343_v41 = vld [vmem:[%s3393_s16 + $0x148] sm:$0xff] }
 0x143   : > { %1184 = vmatprep.subr.bf16.mxu0 %v2431_v1  ;;  %1114 = vmatpush1.bf16.msra.mxu1 %v2316_v23  ;;  %v2333_v1 = vcombine.high %v319_v50, %v323_v10  ;;  %v347_v12 = vld [vmem:[%s3393_s16 + $0x168] sm:$0xff] }
 0x144   : > { %1115 = vmatprep.subr.bf16.mxu1 %v2325_v59  ;;  %v2357_v47 = vcombine.high %v343_v41, %v347_v12  ;;  %v351_v59 = vld [vmem:[%s3393_s16 + $0x188] sm:$0xff] }
 0x146   : > { %1185 = vmatpush1.bf16.msra.mxu0 %v2430_v13  ;;  %v2332_v13 = vcombine.low %v319_v50, %v323_v10  ;;  %v355_v50 = vld [vmem:[%s3393_s16 + $0x1a8] sm:$0xff]  ;;  %v2356_v10 = vcombine.low %v343_v41, %v347_v12 }
 0x147   : > { %1186 = vmatprep.subr.bf16.mxu0 %v2439_v29  ;;  %1116 = vmatpush1.bf16.msra.mxu1 %v2324_v53  ;;  %v2341_v29 = vcombine.high %v327_v17, %v331_v56  ;;  %v2365_v53 = vcombine.high %v351_v59, %v355_v50  ;;  %v363_v17 = vld [vmem:[%s3393_s16 + $0x1e8] sm:$0xff]  ;;  %v2364_v56 = vcombine.low %v351_v59, %v355_v50 }
 0x148   : > { %1117 = vmatprep.subr.bf16.mxu1 %v2333_v1  ;;  %v359_v1 = vld [vmem:[%s3393_s16 + $0x1c8] sm:$0xff] }
 0x149   : > { %v379_v41 = vld [vmem:[%s3393_s16 + $0x268] sm:$0xff] }
 0x14a   : > { %1187 = vmatpush1.bf16.msra.mxu0 %v2438_v44  ;;  %v335_v44 = vld [vmem:[%s3393_s16 + $0x108] sm:$0xff] }
 0x14b   : > { %1118 = vmatpush1.bf16.msra.mxu1 %v2332_v13  ;;  %v2373_v13 = vcombine.high %v359_v1, %v363_v17  ;;  %v387_v59 = vld [vmem:[%s3393_s16 + $0x2a8] sm:$0xff] }
 0x14c   : > { %1119 = vmatprep.subr.bf16.mxu1 %v2341_v29  ;;  %v367_v29 = vld [vmem:[%s3393_s16 + $0x208] sm:$0xff] }
 0x14d   : > { %1189 = vmatmul.mubr.bf16.vlgmr.msra.gmra.mrb[4].mxu0 %v3435_v35 }
 0x14e   : > { %1285 = vmatprep.mubr.bf16.mxu0 %v2982_v20  ;;  %v339_v20 = vld [vmem:[%s3393_s16 + $0x128] sm:$0xff] }
 0x14f   : > { %v2349_v32 = vcombine.high %v335_v44, %v339_v20  ;;  %1120 = vmatpush1.bf16.msra.mxu1 %v2340_v38  ;;  %v2348_v23 = vcombine.low %v335_v44, %v339_v20  ;;  %v371_v44 = vld [vmem:[%s3393_s16 + $0x228] sm:$0xff]  ;;  %v2372_v20 = vcombine.low %v359_v1, %v363_v17 }
 0x150   : > { %v2381_v38 = vcombine.high %v367_v29, %v371_v44  ;;  %v2380_v12 = vcombine.low %v367_v29, %v371_v44  ;;  %v395_v1 = vld [vmem:[%s3393_s16 + $0x2e8] sm:$0xff] }
 0x151   : > { %1121 = vmatprep.subr.bf16.mxu1 %v2349_v32  ;;  %v375_v32 = vld [vmem:[%s3393_s16 + $0x248] sm:$0xff] }
 0x152   : > { %v2388_v50 = vcombine.low %v375_v32, %v379_v41  ;;  %v403_v29 = vld [vmem:[%s3393_s16 + $0x328] sm:$0xff] }
 0x153   : > { %1122 = vmatpush1.bf16.msra.mxu1 %v2348_v23  ;;  %v2389_v23 = vcombine.high %v375_v32, %v379_v41  ;;  %v411_v32 = vld [vmem:[%s3393_s16 + $0x368] sm:$0xff] }
 0x154   : > { %1123 = vmatprep.subr.bf16.mxu1 %v2357_v47  ;;  %v383_v47 = vld [vmem:[%s3393_s16 + $0x288] sm:$0xff] }
 0x155   : > { %v2396_v17 = vcombine.low %v383_v47, %v387_v59 }
 0x157   : > { %1124 = vmatpush1.bf16.msra.mxu1 %v2356_v10  ;;  %v2397_v10 = vcombine.high %v383_v47, %v387_v59  ;;  %v419_v47 = vld [vmem:[%s3393_s16 + $0x3a8] sm:$0xff] }
 0x158   : > { %1125 = vmatprep.subr.bf16.mxu1 %v2365_v53  ;;  %v391_v53 = vld [vmem:[%s3393_s16 + $0x2c8] sm:$0xff] }
 0x159   : > { %v2404_v44 = vcombine.low %v391_v53, %v395_v1 }
 0x15b   : > { %1126 = vmatpush1.bf16.msra.mxu1 %v2364_v56  ;;  %v2405_v56 = vcombine.high %v391_v53, %v395_v1  ;;  %v427_v53 = vld [vmem:[%s3393_s16 + $0x3e8] sm:$0xff] }
 0x15c   : > { %1127 = vmatprep.subr.bf16.mxu1 %v2373_v13  ;;  %v399_v13 = vld [vmem:[%s3393_s16 + $0x308] sm:$0xff] }
 0x15d   : > { %v2412_v41 = vcombine.low %v399_v13, %v403_v29 }
 0x15f   : > { %1128 = vmatpush1.bf16.msra.mxu1 %v2372_v20  ;;  %v2413_v20 = vcombine.high %v399_v13, %v403_v29  ;;  %v309_v13 = vld [vmem:[%s3393_s16 + $0x38] sm:$0xff] }
 0x160   : > { %1129 = vmatprep.subr.bf16.mxu1 %v2381_v38  ;;  %v407_v38 = vld [vmem:[%s3393_s16 + $0x348] sm:$0xff] }
 0x161   : > { %v2420_v59 = vcombine.low %v407_v38, %v411_v32 }
 0x163   : > { %1130 = vmatpush1.bf16.msra.mxu1 %v2380_v12  ;;  %v2421_v12 = vcombine.high %v407_v38, %v411_v32  ;;  %v317_v38 = vld [vmem:[%s3393_s16 + $0x78] sm:$0xff] }
 0x164   : > { %1131 = vmatprep.subr.bf16.mxu1 %v2389_v23  ;;  %v415_v23 = vld [vmem:[%s3393_s16 + $0x388] sm:$0xff] }
 0x165   : > { %v2428_v1 = vcombine.low %v415_v23, %v419_v47 }
 0x167   : > { %1132 = vmatpush1.bf16.msra.mxu1 %v2388_v50  ;;  %v2429_v50 = vcombine.high %v415_v23, %v419_v47  ;;  %v325_v23 = vld [vmem:[%s3393_s16 + $0xb8] sm:$0xff] }
 0x168   : > { %1133 = vmatprep.subr.bf16.mxu1 %v2397_v10  ;;  %v423_v10 = vld [vmem:[%s3393_s16 + $0x3c8] sm:$0xff] }
 0x169   : > { %v2436_v29 = vcombine.low %v423_v10, %v427_v53 }
 0x16b   : > { %1134 = vmatpush1.bf16.msra.mxu1 %v2396_v17  ;;  %v2437_v17 = vcombine.high %v423_v10, %v427_v53  ;;  %v333_v10 = vld [vmem:[%s3393_s16 + $0xf8] sm:$0xff] }
 0x16c   : > { %1135 = vmatprep.subr.bf16.mxu1 %v2405_v56  ;;  %v305_v56 = vld [vmem:[%s3393_s16 + $0x18] sm:$0xff] }
 0x16d   : > { %v2320_v32 = vcombine.low %v305_v56, %v309_v13 }
 0x16f   : > { %1136 = vmatpush1.bf16.msra.mxu1 %v2404_v44  ;;  %v2321_v44 = vcombine.high %v305_v56, %v309_v13  ;;  %v341_v56 = vld [vmem:[%s3393_s16 + $0x138] sm:$0xff] }
 0x170   : > { %1137 = vmatprep.subr.bf16.mxu1 %v2413_v20  ;;  %v313_v20 = vld [vmem:[%s3393_s16 + $0x58] sm:$0xff] }
 0x171   : > { %v2328_v47 = vcombine.low %v313_v20, %v317_v38 }
 0x173   : > { %1138 = vmatpush1.bf16.msra.mxu1 %v2412_v41  ;;  %v2329_v41 = vcombine.high %v313_v20, %v317_v38 }
 0x174   : > { %1139 = vmatprep.subr.bf16.mxu1 %v2421_v12  ;;  %v321_v12 = vld [vmem:[%s3393_s16 + $0x98] sm:$0xff] }
 0x175   : > { %v2336_v53 = vcombine.low %v321_v12, %v325_v23 }
 0x177   : > { %1140 = vmatpush1.bf16.msra.mxu1 %v2420_v59  ;;  %v2337_v59 = vcombine.high %v321_v12, %v325_v23 }
 0x178   : > { %1141 = vmatprep.subr.bf16.mxu1 %v2429_v50  ;;  %v329_v50 = vld [vmem:[%s3393_s16 + $0xd8] sm:$0xff] }
 0x179   : > { %v2344_v13 = vcombine.low %v329_v50, %v333_v10 }
 0x17b   : > { %1142 = vmatpush1.bf16.msra.mxu1 %v2428_v1  ;;  %v2345_v1 = vcombine.high %v329_v50, %v333_v10 }
 0x17c   : > { %1143 = vmatprep.subr.bf16.mxu1 %v2437_v17  ;;  %v337_v17 = vld [vmem:[%s3393_s16 + $0x118] sm:$0xff] }
 0x17d   : > { %v2352_v20 = vcombine.low %v337_v17, %v341_v56 }
 0x17f   : > { %1144 = vmatpush1.bf16.msra.mxu1 %v2436_v29  ;;  %v2353_v29 = vcombine.high %v337_v17, %v341_v56 }
 0x180   : > { %1199 = vmatprep.subr.bf16.mxu1 %v2321_v44  ;;  %v349_v44 = vld [vmem:[%s3393_s16 + $0x178] sm:$0xff] }
 0x182   : > { %1146 = vmatmul.mubr.bf16.vlgmr.msra.gmra.mrb[0].mxu1 %v3435_v35 }
 0x183   : > { %1200 = vmatpush1.bf16.msra.mxu1 %v2320_v32  ;;  %1231 = vmatprep.mubr.bf16.mxu1 %v3391_v26  ;;  %v345_v26 = vld [vmem:[%s3393_s16 + $0x158] sm:$0xff] }
 0x184   : > { %1201 = vmatprep.subr.bf16.mxu1 %v2329_v41  ;;  %v2361_v38 = vcombine.high %v345_v26, %v349_v44  ;;  %v353_v32 = vld [vmem:[%s3393_s16 + $0x198] sm:$0xff]  ;;  %v2360_v12 = vcombine.low %v345_v26, %v349_v44 }
 0x185   : > { %v357_v41 = vld [vmem:[%s3393_s16 + $0x1b8] sm:$0xff] }
 0x186   : > { %v2369_v23 = vcombine.high %v353_v32, %v357_v41  ;;  %v2368_v50 = vcombine.low %v353_v32, %v357_v41 }
 0x187   : > { %1202 = vmatpush1.bf16.msra.mxu1 %v2328_v47  ;;  %v361_v47 = vld [vmem:[%s3393_s16 + $0x1d8] sm:$0xff] }
 0x188   : > { %1203 = vmatprep.subr.bf16.mxu1 %v2337_v59  ;;  %v365_v59 = vld [vmem:[%s3393_s16 + $0x1f8] sm:$0xff] }
 0x189   : > { %v2377_v10 = vcombine.high %v361_v47, %v365_v59  ;;  %v2376_v17 = vcombine.low %v361_v47, %v365_v59 }
 0x18b   : > { %1204 = vmatpush1.bf16.msra.mxu1 %v2336_v53  ;;  %v369_v53 = vld [vmem:[%s3393_s16 + $0x218] sm:$0xff] }
 0x18c   : > { %1205 = vmatprep.subr.bf16.mxu1 %v2345_v1  ;;  %v373_v1 = vld [vmem:[%s3393_s16 + $0x238] sm:$0xff] }
 0x18d   : > { %v2385_v56 = vcombine.high %v369_v53, %v373_v1  ;;  %v2384_v26 = vcombine.low %v369_v53, %v373_v1 }
 0x18f   : > { %1206 = vmatpush1.bf16.msra.mxu1 %v2344_v13  ;;  %v377_v13 = vld [vmem:[%s3393_s16 + $0x258] sm:$0xff] }
 0x190   : > { %1207 = vmatprep.subr.bf16.mxu1 %v2353_v29  ;;  %v381_v29 = vld [vmem:[%s3393_s16 + $0x278] sm:$0xff] }
 0x191   : > { %v2393_v44 = vcombine.high %v377_v13, %v381_v29  ;;  %v2392_v32 = vcombine.low %v377_v13, %v381_v29 }
 0x193   : > { %1208 = vmatpush1.bf16.msra.mxu1 %v2352_v20  ;;  %v385_v20 = vld [vmem:[%s3393_s16 + $0x298] sm:$0xff] }
 0x194   : > { %1209 = vmatprep.subr.bf16.mxu1 %v2361_v38  ;;  %v389_v38 = vld [vmem:[%s3393_s16 + $0x2b8] sm:$0xff] }
 0x195   : > { %v2401_v41 = vcombine.high %v385_v20, %v389_v38  ;;  %v2400_v47 = vcombine.low %v385_v20, %v389_v38 }
 0x197   : > { %1210 = vmatpush1.bf16.msra.mxu1 %v2360_v12  ;;  %v393_v12 = vld [vmem:[%s3393_s16 + $0x2d8] sm:$0xff] }
 0x198   : > { %1211 = vmatprep.subr.bf16.mxu1 %v2369_v23  ;;  %v397_v23 = vld [vmem:[%s3393_s16 + $0x2f8] sm:$0xff] }
 0x199   : > { %v2409_v59 = vcombine.high %v393_v12, %v397_v23  ;;  %v2408_v53 = vcombine.low %v393_v12, %v397_v23 }
 0x19b   : > { %1212 = vmatpush1.bf16.msra.mxu1 %v2368_v50  ;;  %v401_v50 = vld [vmem:[%s3393_s16 + $0x318] sm:$0xff] }
 0x19c   : > { %1213 = vmatprep.subr.bf16.mxu1 %v2377_v10  ;;  %v405_v10 = vld [vmem:[%s3393_s16 + $0x338] sm:$0xff] }
 0x19d   : > { %v2417_v1 = vcombine.high %v401_v50, %v405_v10  ;;  %v2416_v13 = vcombine.low %v401_v50, %v405_v10  ;;  %v2447_v10 = vcombine.high %v4028_v19, %v4026_v22 }
 0x19f   : > { %1214 = vmatpush1.bf16.msra.mxu1 %v2376_v17  ;;  %v409_v17 = vld [vmem:[%s3393_s16 + $0x358] sm:$0xff] }
 0x1a0   : > { %1215 = vmatprep.subr.bf16.mxu1 %v2385_v56  ;;  %v413_v56 = vld [vmem:[%s3393_s16 + $0x378] sm:$0xff] }
 0x1a1   : > { %v2425_v29 = vcombine.high %v409_v17, %v413_v56  ;;  %v2424_v20 = vcombine.low %v409_v17, %v413_v56  ;;  %v2445_v56 = vcombine.high %v4036_v6, %v4027_v21 }
 0x1a3   : > { %1216 = vmatpush1.bf16.msra.mxu1 %v2384_v26  ;;  %v417_v26 = vld [vmem:[%s3393_s16 + $0x398] sm:$0xff] }
 0x1a4   : > { %1217 = vmatprep.subr.bf16.mxu1 %v2393_v44  ;;  %v421_v44 = vld [vmem:[%s3393_s16 + $0x3b8] sm:$0xff] }
 0x1a5   : > { %v2433_v38 = vcombine.high %v417_v26, %v421_v44 }
 0x1a7   : > { %1218 = vmatpush1.bf16.msra.mxu1 %v2392_v32 }
 0x1a8   : > { %1219 = vmatprep.subr.bf16.mxu1 %v2401_v41  ;;  %v425_v41 = vld [vmem:[%s3393_s16 + $0x3d8] sm:$0xff] }
 0x1ab   : > { %1220 = vmatpush1.bf16.msra.mxu1 %v2400_v47  ;;  %v429_v47 = vld [vmem:[%s3393_s16 + $0x3f8] sm:$0xff] }
 0x1ac   : > { %1221 = vmatprep.subr.bf16.mxu1 %v2409_v59  ;;  %v2432_v59 = vcombine.low %v417_v26, %v421_v44  ;;  %v2440_v17 = vcombine.low %v425_v41, %v429_v47  ;;  %v2452_v26 = vcombine.low %v3185_v25, %v3191_v28  ;;  %v2459_v44 = vcombine.high %v3197_v31, %v3203_v34 }
 0x1af   : > { %1222 = vmatpush1.bf16.msra.mxu1 %v2408_v53  ;;  %v2441_v53 = vcombine.high %v425_v41, %v429_v47  ;;  %v2465_v41 = vcombine.high %v3209_v37, %v3215_v40  ;;  %v2463_v47 = vcombine.high %v3207_v36, %v3213_v39 }
 0x1b0   : > { %1223 = vmatprep.subr.bf16.mxu1 %v2417_v1  ;;  %v2442_v1 = vcombine.low %v4045_v4, %v4044_v5 }
 0x1b3   : > { %1224 = vmatpush1.bf16.msra.mxu1 %v2416_v13  ;;  %v2446_v13 = vcombine.low %v4028_v19, %v4026_v22 }
 0x1b4   : > { %1225 = vmatprep.subr.bf16.mxu1 %v2425_v29  ;;  %v2444_v29 = vcombine.low %v4036_v6, %v4027_v21 }
 0x1b7   : > { %1226 = vmatpush1.bf16.msra.mxu1 %v2424_v20  ;;  %v2450_v20 = vcombine.low %v4025_v24, %v3189_v27 }
 0x1b8   : > { %1227 = vmatprep.subr.bf16.mxu1 %v2433_v38  ;;  %v2457_v38 = vcombine.high %v3195_v30, %v3201_v33 }
 0x1bb   : > { %1228 = vmatpush1.bf16.msra.mxu1 %v2432_v59  ;;  %v2462_v59 = vcombine.low %v3207_v36, %v3213_v39 }
 0x1bc   : > { %1229 = vmatprep.subr.bf16.mxu1 %v2441_v53  ;;  %v2469_v53 = vcombine.high %v3219_v42, %v3225_v45 }
 0x1bf   : > { %1230 = vmatpush1.bf16.msra.mxu1 %v2440_v17  ;;  %v2475_v17 = vcombine.high %v3231_v48, %v3237_v51 }
 0x1c0   : > { %1778 = vmatprep.subr.bf16.mxu1 %v2445_v56  ;;  %v2476_v56 = vcombine.low %v3233_v49, %v3239_v52 }
 0x1c2   : > { %1232 = vmatmul.mubr.bf16.vlgmr.msra.gmra.mrb[4].mxu1 %v3435_v35  ;;  %v2456_v35 = vcombine.low %v3195_v30, %v3201_v33  ;;  %v2700_v33 = vld [vmem:[#allocation14 + $0x50] sm:$0xff] (%p289_p8)  }
 0x1c3   : > { %1779 = vmatpush1.bf16.msra.mxu1 %v2444_v29  ;;  %v2481_v29 = vcombine.high %v3243_v54, %v3249_v57 }
 0x1e0   : > { %v1104_v32 = vpop.f32.mrb[0].mxu0 }
 0x1e1   : > { %v1106_v12 = vpop.f32.mrb[1].mxu0 }
 0x1e2   : > { %v1108_v23 = vpop.f32.mrb[2].mxu0 }
 0x1e3   : > { %v1242_v62 = vpack.c.bf16 %v1108_v23, %v1104_v32  ;;  %v1110_v9 = vpop.f32.mrb[3].mxu0  ;;  %v2458_v32 = vcombine.low %v3197_v31, %v3203_v34  ;;  %v2471_v23 = vcombine.high %v3221_v43, %v3227_v46  ;;  %v2699_v31 = vld [vmem:[#allocation14 + $0x8] sm:$0xff] (%p289_p8)  }
 0x1e4   : > { %v1243_v50 = vpack.c.bf16 %v1110_v9, %v1106_v12  ;;  %v2453_v9 = vcombine.high %v3185_v25, %v3191_v28  ;;  %v2464_v12 = vcombine.low %v3209_v37, %v3215_v40 }
 0x1e6   : > { %1253 = vmatprep.subr.bf16.mxu0 %v1243_v50  ;;  %v2470_v50 = vcombine.low %v3221_v43, %v3227_v46  ;;  %v2702_v43 = vld [vmem:[#allocation14 + $0x58] sm:$0xff] (%p289_p8)  }
 0x1e7   : > { %1254 = vmatpush1.bf16.msra.mxu0 %v1242_v62  ;;  %v2451_v62 = vcombine.high %v4025_v24, %v3189_v27  ;;  %v2703_v46 = vld [vmem:[#allocation14 + $0x18] sm:$0xff] (%p289_p8)  }
 0x1e8   : > { %1821 = vmatprep.subr.bf16.mxu0 %v2447_v10  ;;  %v2477_v10 = vcombine.high %v3233_v49, %v3239_v52  ;;  %v2705_v49 = vld [vmem:[#allocation14 + $0x20] sm:$0xff] (%p289_p8)   ;;  %v2707_v52 = vld [vmem:[#allocation14 + $0x28] sm:$0xff] (%p289_p8)  }
 0x1e9   : > { %1780 = vmatprep.subr.bf16.mxu1 %v2451_v62  ;;  %v2482_v62 = vcombine.low %v3245_v55, %v3251_v58 }
 0x1ea   : > { %2443 = vmatmul.mubr.msk.bf16.vlgmr.msra.gmra.mrb[8].mxu0 %vm1249_vm0, %v2442_v1  ;;  %1781 = vmatpush1.bf16.msra.mxu1 %v2450_v20  ;;  %v2468_v1 = vcombine.low %v3219_v42, %v3225_v45  ;;  %v2487_v20 = vcombine.high %v3255_v60, %v3261_v63  ;;  %v2701_v42 = vld [vmem:[#allocation14 + $0x10] sm:$0xff] (%p289_p8)  }
 0x1eb   : > { %1822 = vmatpush1.bf16.msra.mxu0 %v2446_v13  ;;  %1782 = vmatprep.subr.bf16.mxu1 %v2457_v38  ;;  %v2483_v13 = vcombine.high %v3245_v55, %v3251_v58  ;;  %v2488_v38 = vcombine.low %v3257_v61, %v4039_v0  ;;  %v2045_v45 = vld [vmem:[#allocation11] sm:$0xf] (%p289_p8)  ;;  %v2711_v58 = vld [vmem:[#allocation14 + $0x38] sm:$0xff] (%p289_p8)  }
 0x1ec   : > { %1823 = vmatprep.subr.bf16.mxu0 %v2453_v9  ;;  %v2474_v9 = vcombine.low %v3231_v48, %v3237_v51  ;;  %v2704_v48 = vld [vmem:[#allocation14 + $0x60] sm:$0xff] (%p289_p8)   ;;  %v2706_v51 = vld [vmem:[#allocation14 + $0x68] sm:$0xff] (%p289_p8)   ;;  %v2709_v55 = vld [vmem:[#allocation14 + $0x30] sm:$0xff] (%p289_p8)  }
 0x1ee   : > { %1783 = vmatpush1.bf16.msra.mxu1 %v2456_v35  ;;  %v2493_v35 = vcombine.high %v4035_v7, %v4032_v14 }
 0x1ef   : > { %1824 = vmatpush1.bf16.msra.mxu0 %v2452_v26  ;;  %1784 = vmatprep.subr.bf16.mxu1 %v2463_v47  ;;  %v2489_v26 = vcombine.high %v3257_v61, %v4039_v0  ;;  %v2494_v47 = vcombine.low %v4034_v8, %v4038_v2  ;;  %v4059_v0 = vld [vmem:[#allocation81_spill] sm:$0xff] }
 0x1f0   : > { %1825 = vmatprep.subr.bf16.mxu0 %v2459_v44  ;;  %v2480_v44 = vcombine.low %v3243_v54, %v3249_v57  ;;  %v2708_v54 = vld [vmem:[#allocation14 + $0x70] sm:$0xff] (%p289_p8)   ;;  %v2710_v57 = vld [vmem:[#allocation14 + $0x78] sm:$0xff] (%p289_p8)  }
 0x1f2   : > { %1785 = vmatpush1.bf16.msra.mxu1 %v2462_v59  ;;  %v2499_v59 = vcombine.high %v4030_v16, %v4033_v11 }
 0x1f3   : > { %1826 = vmatpush1.bf16.msra.mxu0 %v2458_v32  ;;  %1786 = vmatprep.subr.bf16.mxu1 %v2469_v53  ;;  %v2495_v32 = vcombine.high %v4034_v8, %v4038_v2  ;;  %v2500_v53 = vcombine.low %v4031_v15, %v4029_v18  ;;  %v4069_v8 = vld [vmem:[#allocation94_spill] sm:$0xff] }
 0x1f4   : > { %1827 = vmatprep.subr.bf16.mxu0 %v2465_v41  ;;  %v2486_v41 = vcombine.low %v3255_v60, %v3261_v63 }
 0x1f6   : > { %1787 = vmatpush1.bf16.msra.mxu1 %v2468_v1  ;;  %v2498_v1 = vcombine.low %v4030_v16, %v4033_v11  ;;  %v4095_v16 = vld [vmem:[#allocation52_spill] sm:$0xff] }
 0x1f7   : > { %1828 = vmatpush1.bf16.msra.mxu0 %v2464_v12  ;;  %1788 = vmatprep.subr.bf16.mxu1 %v2475_v17  ;;  %v2501_v12 = vcombine.high %v4031_v15, %v4029_v18  ;;  %v4047_v17 = vld [vmem:[#allocation72_spill] sm:$0xff]  ;;  %v4092_v15 = vld [vmem:[#allocation50_spill] sm:$0xff] }
 0x1f8   : > { %1829 = vmatprep.subr.bf16.mxu0 %v2471_v23  ;;  %v2492_v23 = vcombine.low %v4035_v7, %v4032_v14  ;;  %v4090_v14 = vld [vmem:[#allocation48_spill] sm:$0xff] }
 0x1fa   : > { %1789 = vmatpush1.bf16.msra.mxu1 %v2474_v9 }
 0x1fb   : > { %1830 = vmatpush1.bf16.msra.mxu0 %v2470_v50  ;;  %1790 = vmatprep.subr.bf16.mxu1 %v2481_v29  ;;  %v4046_v50 = vld [vmem:[#allocation70_spill] sm:$0xff]  ;;  %v4049_v29 = vld [vmem:[#allocation79_spill] sm:$0xff] }
 0x1fc   : > { %1831 = vmatprep.subr.bf16.mxu0 %v2477_v10  ;;  %v2507_v10 = vcombine.high %v4046_v50, %v4037_v3  ;;  %v2506_v9 = vcombine.low %v4046_v50, %v4037_v3  ;;  %v4062_v3 = vld [vmem:[#allocation88_spill] sm:$0xff] }
 0x1fe   : > { %1791 = vmatpush1.bf16.msra.mxu1 %v2480_v44 }
 0x1ff   : > { %1832 = vmatpush1.bf16.msra.mxu0 %v2476_v56  ;;  %1792 = vmatprep.subr.bf16.mxu1 %v2487_v20  ;;  %v4048_v56 = vld [vmem:[#allocation69_spill] sm:$0xff]  ;;  %v4051_v20 = vld [vmem:[#allocation78_spill] sm:$0xff] }
 0x200   : > { %1833 = vmatprep.subr.bf16.mxu0 %v2483_v13  ;;  %v2505_v13 = vcombine.high %v4048_v56, %v4047_v17  ;;  %v2504_v44 = vcombine.low %v4048_v56, %v4047_v17 }
 0x202   : > { %1793 = vmatpush1.bf16.msra.mxu1 %v2486_v41 }
 0x203   : > { %1834 = vmatpush1.bf16.msra.mxu0 %v2482_v62  ;;  %1794 = vmatprep.subr.bf16.mxu1 %v2493_v35  ;;  %v4050_v62 = vld [vmem:[#allocation76_spill] sm:$0xff] }
 0x204   : > { %1835 = vmatprep.subr.bf16.mxu0 %v2489_v26  ;;  %v2513_v26 = vcombine.high %v4050_v62, %v4049_v29  ;;  %v2512_v35 = vcombine.low %v4050_v62, %v4049_v29 }
 0x206   : > { %1795 = vmatpush1.bf16.msra.mxu1 %v2492_v23  ;;  %v4056_v23 = vld [vmem:[#allocation82_spill] sm:$0xff] }
 0x207   : > { %1836 = vmatpush1.bf16.msra.mxu0 %v2488_v38  ;;  %1796 = vmatprep.subr.bf16.mxu1 %v2499_v59  ;;  %v4052_v38 = vld [vmem:[#allocation75_spill] sm:$0xff]  ;;  %v4057_v59 = vmov %v4056_v23 }
 0x208   : > { %1837 = vmatprep.subr.bf16.mxu0 %v2495_v32  ;;  %v4053_v32 = vmov %v4052_v38  ;;  %v2511_v41 = vcombine.high %v4052_v38, %v4051_v20  ;;  %v4060_v38 = vld [vmem:[#allocation91_spill] sm:$0xff] }
 0x209   : > { %v4061_v2 = vmov %v4060_v38  ;;  %v2525_v4 = vcombine.high %v4062_v3, %v4060_v38  ;;  %v4071_v38 = vld [vmem:[#allocation93_spill] sm:$0xff] }
 0x20a   : > { %1797 = vmatpush1.bf16.msra.mxu1 %v2498_v1  ;;  %v4058_v1 = vld [vmem:[#allocation84_spill] sm:$0xff] }
 0x20b   : > { %1838 = vmatpush1.bf16.msra.mxu0 %v2494_v47  ;;  %1798 = vmatprep.subr.bf16.mxu1 %v2505_v13  ;;  %v4054_v47 = vld [vmem:[#allocation85_spill] sm:$0xff]  ;;  %v2517_v13 = vcombine.high %v4059_v0, %v4058_v1 }
 0x20c   : > { %1839 = vmatprep.subr.bf16.mxu0 %v2501_v12  ;;  %v4055_v12 = vmov %v4054_v47 }
 0x20e   : > { %1799 = vmatpush1.bf16.msra.mxu1 %v2504_v44  ;;  %v4063_v44 = vld [vmem:[#allocation90_spill] sm:$0xff] }
 0x20f   : > { %1840 = vmatpush1.bf16.msra.mxu0 %v2500_v53  ;;  %v2519_v53 = vcombine.high %v4056_v23, %v4054_v47  ;;  %1800 = vmatprep.subr.bf16.mxu1 %v2511_v41  ;;  %v4064_v5 = vmov %v4063_v44  ;;  %v4065_v47 = vld [vmem:[#allocation87_spill] sm:$0xff]  ;;  %v4067_v23 = vld [vmem:[#allocation97_spill] sm:$0xff] }
 0x210   : > { %1841 = vmatprep.subr.bf16.mxu0 %v2507_v10  ;;  %v2510_v10 = vcombine.low %v4053_v32, %v4051_v20  ;;  %v4066_v6 = vmov %v4065_v47  ;;  %v2523_v41 = vcombine.high %v4065_v47, %v4063_v44  ;;  %v4068_v7 = vmov %v4067_v23  ;;  %v4074_v44 = vld [vmem:[#allocation99_spill] sm:$0xff] }
 0x211   : > { %v2531_v11 = vcombine.high %v4069_v8, %v4067_v23  ;;  %v4077_v23 = vld [vmem:[#allocation100_spill] sm:$0xff] }
 0x212   : > { %1801 = vmatpush1.bf16.msra.mxu1 %v2510_v10  ;;  %v4070_v10 = vld [vmem:[#allocation96_spill] sm:$0xff] }
 0x213   : > { %1842 = vmatpush1.bf16.msra.mxu0 %v2506_v9  ;;  %v2518_v9 = vcombine.low %v4057_v59, %v4055_v12  ;;  %1802 = vmatprep.subr.bf16.mxu1 %v2517_v13  ;;  %v2529_v13 = vcombine.high %v4071_v38, %v4070_v10  ;;  %v2264_v59 = vld [vmem:[#allocation13] sm:$0xff] (%p289_p8) }
 0x214   : > { %1843 = vmatprep.subr.bf16.mxu0 %v2513_v26  ;;  %v2516_v26 = vcombine.low %v4059_v0, %v4058_v1  ;;  %v4072_v0 = vmov %v4071_v38  ;;  %v4075_v1 = vmov %v4074_v44 }
 0x216   : > { %1803 = vmatpush1.bf16.msra.mxu1 %v2516_v26  ;;  %v4073_v26 = vld [vmem:[#allocation102_spill] sm:$0xff] }
 0x217   : > { %1844 = vmatpush1.bf16.msra.mxu0 %v2512_v35  ;;  %v2524_v35 = vcombine.low %v4062_v3, %v4061_v2  ;;  %1804 = vmatprep.subr.bf16.mxu1 %v2523_v41  ;;  %v2535_v47 = vcombine.high %v4074_v44, %v4073_v26  ;;  %v2534_v41 = vcombine.low %v4075_v1, %v4073_v26 }
 0x218   : > { %1845 = vmatprep.subr.bf16.mxu0 %v2519_v53  ;;  %v2522_v53 = vcombine.low %v4066_v6, %v4064_v5  ;;  %v4078_v2 = vmov %v4077_v23 }
 0x21a   : > { %1805 = vmatpush1.bf16.msra.mxu1 %v2522_v53  ;;  %v4079_v53 = vld [vmem:[#allocation40_spill] sm:$0xff] }
 0x21b   : > { %1846 = vmatpush1.bf16.msra.mxu0 %v2518_v9  ;;  %v2528_v9 = vcombine.low %v4072_v0, %v4070_v10  ;;  %1806 = vmatprep.subr.bf16.mxu1 %v2529_v13  ;;  %v4080_v13 = vld [vmem:[#allocation37_spill] sm:$0xff]  ;;  %v4087_v10 = vld [vmem:[#allocation46_spill] sm:$0xff] }
 0x21c   : > { %1847 = vmatprep.subr.bf16.mxu0 %v2525_v4  ;;  %v2530_v4 = vcombine.low %v4069_v8, %v4068_v7  ;;  %v4086_v8 = vld [vmem:[#allocation47_spill] sm:$0xff] }
 0x21d   : > { %v2467_v12 = vcombine.high %v4087_v10, %v4086_v8 }
 0x21e   : > { %1807 = vmatpush1.bf16.msra.mxu1 %v2528_v9  ;;  %v2449_v9 = vcombine.high %v4080_v13, %v4079_v53 }
 0x21f   : > { %1848 = vmatpush1.bf16.msra.mxu0 %v2524_v35  ;;  %v4076_v35 = vld [vmem:[#allocation103_spill] sm:$0xff]  ;;  %1808 = vmatprep.subr.bf16.mxu1 %v2535_v47  ;;  %v2448_v47 = vcombine.low %v4080_v13, %v4079_v53 }
 0x220   : > { %1849 = vmatprep.subr.bf16.mxu0 %v2531_v11  ;;  %v2537_v38 = vcombine.high %v4077_v23, %v4076_v35  ;;  %v2536_v11 = vcombine.low %v4078_v2, %v4076_v35  ;;  %v2263_v53 = vld [vmem:[#allocation10 + $0x6] ss:$0 sm:$0xff] (%p289_p8) }
 0x222   : > { %1809 = vmatpush1.bf16.msra.mxu1 %v2534_v41  ;;  %v4081_v41 = vld [vmem:[#allocation43_spill] sm:$0xff] }
 0x223   : > { %1850 = vmatpush1.bf16.msra.mxu0 %v2530_v4  ;;  %1864 = vmatprep.subr.bf16.mxu1 %v2449_v9 }
 0x224   : > { %1851 = vmatprep.subr.bf16.mxu0 %v2537_v38  ;;  %v4082_v38 = vld [vmem:[#allocation42_spill] sm:$0xff] }
 0x225   : > { %v2455_v6 = vcombine.high %v4082_v38, %v4081_v41 }
 0x227   : > { %1852 = vmatpush1.bf16.msra.mxu0 %v2536_v11  ;;  %v4083_v11 = vmov %v4082_v38 }
 0x295   : > { %v3670_v5 = vpop.f32.mrb[4].mxu1 }
 0x296   : > { %v3674_v2 = vpop.f32.mrb[5].mxu1 }
 0x297   : > { %v3678_v7 = vpop.f32.mrb[6].mxu1 }
 0x298   : > { %v3680_v9 = vpop.f32.mrb[7].mxu1 }
 0x2bd   : > { %v1287_v4 = vpop.f32.mrb[8].mxu0 }
 0x2be   : > { %v1289_v0 = vpop.f32.mrb[9].mxu0 }
 0x2bf   : > { %v1291_v44 = vpop.f32.mrb[10].mxu0 }
 0x2c0   : > { %v3668_v3 = vpack.c.bf16 %v1291_v44, %v1287_v4  ;;  %v1293_v1 = vpop.f32.mrb[11].mxu0  ;;  %v4085_v4 = vld [vmem:[#allocation44_spill] sm:$0xff] }
 0x2c1   : > { %v1297_v23 = vpack.c.bf16 %v1293_v1, %v1289_v0  ;;  %v2454_v0 = vcombine.low %v4083_v11, %v4081_v41  ;;  %v4084_v1 = vld [vmem:[#allocation45_spill] sm:$0xff] }
 0x2c2   : > { %v2461_v44 = vcombine.high %v4085_v4, %v4084_v1  ;;  %v2460_v38 = vcombine.low %v4085_v4, %v4084_v1 }
 0x2c3   : > { %1810 = vmatprep.mubr.bf16.mxu1 %v1297_v23  ;;  %1853 = vmatprep.mubr.bf16.mxu0 %v1297_v23 }
 0x2c4   : > { %1811 = vmatmul.mubr.bf16.vlgmr.msra.gmra.mrb[0].mxu1 %v3668_v3  ;;  %1854 = vmatmul.mubr.bf16.vlgmr.msra.gmra.mrb[4].mxu0 %v3668_v3 }
 0x2c5   : > { %1865 = vmatpush1.bf16.msra.mxu1 %v2448_v47  ;;  %1896 = vmatprep.mubr.bf16.mxu1 %v1297_v23  ;;  %v2466_v47 = vcombine.low %v4087_v10, %v4086_v8  ;;  %v4088_v23 = vld [vmem:[#allocation49_spill] sm:$0xff] }
 0x2c6   : > { %1866 = vmatprep.subr.bf16.mxu1 %v2455_v6  ;;  %v4089_v13 = vmov %v4088_v23  ;;  %v2473_v11 = vcombine.high %v4090_v14, %v4088_v23  ;;  %v4098_v23 = vld [vmem:[#allocation54_spill] sm:$0xff] }
 0x2c7   : > { %v2472_v6 = vcombine.low %v4090_v14, %v4089_v13  ;;  %v4099_v17 = vmov %v4098_v23  ;;  %v4101_v14 = vld [vmem:[#allocation59_spill] sm:$0xff] }
 0x2c9   : > { %1867 = vmatpush1.bf16.msra.mxu1 %v2454_v0  ;;  %v4091_v0 = vld [vmem:[#allocation51_spill] sm:$0xff] }
 0x2ca   : > { %1868 = vmatprep.subr.bf16.mxu1 %v2461_v44  ;;  %v2479_v1 = vcombine.high %v4092_v15, %v4091_v0  ;;  %v2478_v44 = vcombine.low %v4092_v15, %v4091_v0 }
 0x2cd   : > { %1869 = vmatpush1.bf16.msra.mxu1 %v2460_v38  ;;  %v4093_v38 = vld [vmem:[#allocation53_spill] sm:$0xff] }
 0x2ce   : > { %1870 = vmatprep.subr.bf16.mxu1 %v2467_v12  ;;  %v4094_v4 = vmov %v4093_v38  ;;  %v2485_v8 = vcombine.high %v4095_v16, %v4093_v38  ;;  %v4104_v38 = vld [vmem:[#allocation65_spill] sm:$0xff] }
 0x2cf   : > { %v2484_v12 = vcombine.low %v4095_v16, %v4094_v4  ;;  %v4105_v18 = vmov %v4104_v38 }
 0x2d1   : > { %1871 = vmatpush1.bf16.msra.mxu1 %v2466_v47  ;;  %v4096_v47 = vld [vmem:[#allocation56_spill] sm:$0xff] }
 0x2d2   : > { %1872 = vmatprep.subr.bf16.mxu1 %v2473_v11  ;;  %v4097_v10 = vmov %v4096_v47  ;;  %v2491_v13 = vcombine.high %v4098_v23, %v4096_v47  ;;  %v4107_v47 = vld [vmem:[#allocation71_spill] sm:$0xff] }
 0x2d3   : > { %v2490_v11 = vcombine.low %v4099_v17, %v4097_v10  ;;  %v4108_v16 = vmov %v4107_v47  ;;  %v4110_v10 = vld [vmem:[#allocation77_spill] sm:$0xff] }
 0x2d4   : > { %v4124_v17 = vld [vmem:[#allocation29_spill] sm:$0xff] }
 0x2d5   : > { %1873 = vmatpush1.bf16.msra.mxu1 %v2472_v6  ;;  %v4100_v6 = vld [vmem:[#allocation62_spill] sm:$0xff] }
 0x2d6   : > { %1874 = vmatprep.subr.bf16.mxu1 %v2479_v1  ;;  %v2497_v0 = vcombine.high %v4101_v14, %v4100_v6  ;;  %v2496_v1 = vcombine.low %v4101_v14, %v4100_v6 }
 0x2d9   : > { %1875 = vmatpush1.bf16.msra.mxu1 %v2478_v44  ;;  %v4102_v44 = vld [vmem:[#allocation68_spill] sm:$0xff] }
 0x2da   : > { %1876 = vmatprep.subr.bf16.mxu1 %v2485_v8  ;;  %v4103_v15 = vmov %v4102_v44  ;;  %v2503_v4 = vcombine.high %v4104_v38, %v4102_v44  ;;  %v4112_v44 = vld [vmem:[#allocation83_spill] sm:$0xff] }
 0x2db   : > { %v2502_v8 = vcombine.low %v4105_v18, %v4103_v15  ;;  %v4113_v14 = vmov %v4112_v44 }
 0x2dd   : > { %1877 = vmatpush1.bf16.msra.mxu1 %v2484_v12  ;;  %v4106_v12 = vld [vmem:[#allocation74_spill] sm:$0xff] }
 0x2de   : > { %1878 = vmatprep.subr.bf16.mxu1 %v2491_v13  ;;  %v2509_v23 = vcombine.high %v4107_v47, %v4106_v12  ;;  %v2508_v13 = vcombine.low %v4108_v16, %v4106_v12  ;;  %v4115_v47 = vld [vmem:[#allocation89_spill] sm:$0xff]  ;;  %v4118_v16 = vld [vmem:[#allocation95_spill] sm:$0xff] }
 0x2df   : > { %v4116_v15 = vmov %v4115_v47 }
 0x2e1   : > { %1879 = vmatpush1.bf16.msra.mxu1 %v2490_v11  ;;  %v4109_v11 = vld [vmem:[#allocation80_spill] sm:$0xff] }
 0x2e2   : > { %1880 = vmatprep.subr.bf16.mxu1 %v2497_v0  ;;  %v2515_v6 = vcombine.high %v4110_v10, %v4109_v11  ;;  %v2514_v0 = vcombine.low %v4110_v10, %v4109_v11 }
 0x2e5   : > { %1881 = vmatpush1.bf16.msra.mxu1 %v2496_v1  ;;  %v4111_v1 = vld [vmem:[#allocation86_spill] sm:$0xff] }
 0x2e6   : > { %1882 = vmatprep.subr.bf16.mxu1 %v2503_v4  ;;  %v2521_v38 = vcombine.high %v4112_v44, %v4111_v1  ;;  %v2520_v4 = vcombine.low %v4113_v14, %v4111_v1  ;;  %v4120_v44 = vld [vmem:[#allocation101_spill] sm:$0xff] }
 0x2e7   : > { %v4121_v11 = vmov %v4120_v44 }
 0x2e9   : > { %1883 = vmatpush1.bf16.msra.mxu1 %v2502_v8  ;;  %v4114_v8 = vld [vmem:[#allocation92_spill] sm:$0xff] }
 0x2ea   : > { %1884 = vmatprep.subr.bf16.mxu1 %v2509_v23  ;;  %v2527_v12 = vcombine.high %v4115_v47, %v4114_v8  ;;  %v2526_v23 = vcombine.low %v4116_v15, %v4114_v8  ;;  %v4122_v47 = vld [vmem:[#allocation28_spill] sm:$0xff] }
 0x2eb   : > { %v4123_v8 = vmov %v4122_v47 }
 0x2ed   : > { %1885 = vmatpush1.bf16.msra.mxu1 %v2508_v13  ;;  %v4117_v13 = vld [vmem:[#allocation98_spill] sm:$0xff] }
 0x2ee   : > { %1886 = vmatprep.subr.bf16.mxu1 %v2515_v6  ;;  %v2533_v10 = vcombine.high %v4118_v16, %v4117_v13  ;;  %v2532_v6 = vcombine.low %v4118_v16, %v4117_v13 }
 0x2f1   : > { %1887 = vmatpush1.bf16.msra.mxu1 %v2514_v0  ;;  %v4119_v0 = vld [vmem:[#allocation104_spill] sm:$0xff] }
 0x2f2   : > { %1888 = vmatprep.subr.bf16.mxu1 %v2521_v38  ;;  %v2539_v1 = vcombine.high %v4120_v44, %v4119_v0  ;;  %v2538_v38 = vcombine.low %v4121_v11, %v4119_v0 }
 0x2f5   : > { %1889 = vmatpush1.bf16.msra.mxu1 %v2520_v4 }
 0x2f6   : > { %1890 = vmatprep.subr.bf16.mxu1 %v2527_v12 }
 0x2f9   : > { %1891 = vmatpush1.bf16.msra.mxu1 %v2526_v23 }
 0x2fa   : > { %1892 = vmatprep.subr.bf16.mxu1 %v2533_v10 }
 0x2fd   : > { %1893 = vmatpush1.bf16.msra.mxu1 %v2532_v6 }
 0x2fe   : > { %1894 = vmatprep.subr.bf16.mxu1 %v2539_v1 }
 0x301   : > { %1895 = vmatpush1.bf16.msra.mxu1 %v2538_v38 }
 0x304   : > { %1897 = vmatmul.mubr.bf16.vlgmr.msra.gmra.mrb[8].mxu1 %v3668_v3 }
 0x397   : > { %v1812_v12 = vpop.f32.mrb[0].mxu1  ;;  %v1855_v4 = vpop.f32.mrb[4].mxu0 }
 0x398   : > { %v1911_v14 = vadd.f32 %v1812_v12, %v4122_v47  ;;  %v1814_v23 = vpop.f32.mrb[1].mxu1  ;;  %v1857_v15 = vpop.f32.mrb[5].mxu0 }
 0x399   : > { %v1912_v13 = vadd.f32 %v1814_v23, %v4124_v17  ;;  %v1816_v10 = vpop.f32.mrb[2].mxu1  ;;  %v1859_v16 = vpop.f32.mrb[6].mxu0 }
 0x39a   : > { %v2540_v18 = vmul.f32 -1.442695, %v1911_v14  ;;  %v1913_v6 = vadd.f32 %v1816_v10, %v4123_v8  ;;  %v1818_v44 = vpop.f32.mrb[3].mxu1  ;;  %v1861_v19 = vpop.f32.mrb[7].mxu0 }
 0x39b   : > { %v2541_v0 = vmul.f32 -1.442695, %v1912_v13  ;;  %v1914_v1 = vadd.f32 %v1818_v44, %v4124_v17  ;;  %v4125_v13 = vld [vmem:[#allocation34_spill] sm:$0xff] }
 0x39c   : > { %2656 = vpow2.f32 %v2540_v18  ;;  %v2542_v3 = vmul.f32 -1.442695, %v1913_v6  ;;  %v1975_v18 = vadd.f32 %v3670_v5, %v4125_v13  ;;  %v4128_v5 = vld [vmem:[#allocation31_spill] sm:$0xff] }
 0x39d   : > { %2658 = vpow2.f32 %v2541_v0  ;;  %v2543_v38 = vmul.f32 -1.442695, %v1914_v1  ;;  %v4126_v0 = vld [vmem:[#allocation35_spill] sm:$0xff]  ;;  %v1944_v17 = vadd.f32 %v1857_v15, %v4128_v5 }
 0x39e   : > { %2660 = vpow2.f32 %v2542_v3  ;;  %v1976_v44 = vadd.f32 %v3674_v2, %v4126_v0  ;;  %v1946_v2 = vadd.f32 %v1861_v19, %v4128_v5  ;;  %v4134_v5 = vld [vmem:[#allocation105_spill] sm:$0xff] }
 0x39f   : > { %2662 = vpow2.f32 %v2543_v38  ;;  %v1977_v38 = vadd.f32 %v3678_v7, %v4125_v13 }
 0x3a0   : > { %v2547_v7 = vmul.f32 -1.442695, %v1946_v2 }
 0x3a6   : > { %v2657_v12 = vpop.eup %2656 }
 0x3a7   : > { %v1927_v47 = vadd.f32 1.0, %v2657_v12  ;;  %v2659_v11 = vpop.eup %2658 }
 0x3a8   : > { %v1928_v23 = vadd.f32 1.0, %v2659_v11  ;;  %v2661_v20 = vpop.eup %2660 }
 0x3a9   : > { %2664 = vrcp.f32 %v1927_v47  ;;  %v1929_v14 = vadd.f32 1.0, %v2661_v20  ;;  %v2663_v10 = vpop.eup %2662  ;;  %v1978_v20 = vadd.f32 %v3680_v9, %v4126_v0 }
 0x3aa   : > { %2666 = vrcp.f32 %v1928_v23  ;;  %v1930_v8 = vadd.f32 1.0, %v2663_v10 }
 0x3ab   : > { %2668 = vrcp.f32 %v1929_v14  ;;  %v4127_v14 = vld [vmem:[#allocation30_spill] sm:$0xff] }
 0x3ac   : > { %2670 = vrcp.f32 %v1930_v8  ;;  %v1943_v10 = vadd.f32 %v1855_v4, %v4127_v14  ;;  %v1945_v21 = vadd.f32 %v1859_v16, %v4127_v14  ;;  %v4129_v16 = vld [vmem:[#allocation32_spill] sm:$0xff] }
 0x3ae   : > { %v2546_v22 = vmul.f32 -1.442695, %v1945_v21  ;;  %v4130_v21 = vld [vmem:[#allocation33_spill] sm:$0xff] }
 0x3b3   : > { %v2665_v6 = vpop.eup %2664 }
 0x3b4   : > { %v1979_v1 = vmul.f32 %v2665_v6, %v1975_v18  ;;  %v2667_v3 = vpop.eup %2666  ;;  %v2544_v18 = vmul.f32 -1.442695, %v1943_v10  ;;  %v2545_v6 = vmul.f32 -1.442695, %v1944_v17 }
 0x3b5   : > { %v1980_v11 = vmul.f32 %v2667_v3, %v1976_v44  ;;  %v2669_v12 = vpop.eup %2668 }
 0x3b6   : > { %v1981_v47 = vmul.f32 %v2669_v12, %v1977_v38  ;;  %v2671_v23 = vpop.eup %2670  ;;  %2672 = vpow2.f32 %v2544_v18 }
 0x3b7   : > { %v1982_v8 = vmul.f32 %v2671_v23, %v1978_v20  ;;  %2674 = vpow2.f32 %v2545_v6 }
 0x3b8   : > { %2676 = vpow2.f32 %v2546_v22 }
 0x3b9   : > { %2678 = vpow2.f32 %v2547_v7 }
 0x3c0   : > { %v2673_v9 = vpop.eup %2672 }
 0x3c1   : > { %v2675_v44 = vpop.eup %2674  ;;  %v1959_v12 = vadd.f32 1.0, %v2673_v9 }
 0x3c2   : > { %v2677_v3 = vpop.eup %2676  ;;  %v1960_v4 = vadd.f32 1.0, %v2675_v44 }
 0x3c3   : > { %v2679_v38 = vpop.eup %2678  ;;  %v1961_v20 = vadd.f32 1.0, %v2677_v3  ;;  %2680 = vrcp.f32 %v1959_v12 }
 0x3c4   : > { %v1962_v15 = vadd.f32 1.0, %v2679_v38  ;;  %2682 = vrcp.f32 %v1960_v4 }
 0x3c5   : > { %2684 = vrcp.f32 %v1961_v20 }
 0x3c6   : > { %2686 = vrcp.f32 %v1962_v15 }
 0x3cd   : > { %v2681_v38 = vpop.eup %2680 }
 0x3ce   : > { %v2683_v12 = vpop.eup %2682 }
 0x3cf   : > { %v2685_v4 = vpop.eup %2684 }
 0x3d0   : > { %v1993_v15 = vsub.f32 1.0, %v2685_v4 }
 0x3d7   : > { %v1898_v23 = vpop.f32.mrb[8].mxu1 }
 0x3d8   : > { %v1971_v19 = vadd.f32 %v1898_v23, %v4129_v16  ;;  %v1900_v10 = vpop.f32.mrb[9].mxu1  ;;  %v2687_v23 = vpop.eup %2686 }
 0x3d9   : > { %v1972_v17 = vadd.f32 %v1900_v10, %v4130_v21  ;;  %v1902_v2 = vpop.f32.mrb[10].mxu1  ;;  %v1991_v10 = vsub.f32 1.0, %v2681_v38  ;;  %v2002_v13 = vmul.f32 %v4134_v5, %v2687_v23  ;;  %v2025_v5 = vld [vmem:[#allocation10 + $0x5] ss:$8 sm:$0x3] (%p289_p8) }
 0x3da   : > { %v1983_v22 = vadd.f32 %v1979_v1, %v1971_v19  ;;  %v1973_v18 = vadd.f32 %v1902_v2, %v4129_v16  ;;  %v1904_v6 = vpop.f32.mrb[11].mxu1  ;;  %v1992_v1 = vsub.f32 1.0, %v2683_v12  ;;  %v4131_v2 = vld [vmem:[#allocation108_spill] sm:$0xff] }
 0x3db   : > { %v1984_v7 = vadd.f32 %v1980_v11, %v1972_v17  ;;  %v1974_v9 = vadd.f32 %v1904_v6, %v4130_v21  ;;  %v1999_v0 = vmul.f32 %v4131_v2, %v2681_v38  ;;  %v4132_v6 = vld [vmem:[#allocation107_spill] sm:$0xff] }
 0x3dc   : > { %2688 = vtanh.f32 %v1983_v22  ;;  %v1985_v44 = vadd.f32 %v1981_v47, %v1973_v18  ;;  %v2000_v22 = vmul.f32 %v4132_v6, %v2683_v12  ;;  %v1994_v47 = vsub.f32 1.0, %v2687_v23  ;;  %v4139_v12 = vld [vmem:[#allocation24_spill] sm:$0xff] (%p289_p8)  ;;  %v2697_v6 = vld [vmem:[#allocation14] sm:$0xff] (%p289_p8)  }
 0x3dd   : > { %2690 = vtanh.f32 %v1984_v7  ;;  %v1986_v3 = vadd.f32 %v1982_v8, %v1974_v9  ;;  %v4133_v7 = vld [vmem:[#allocation106_spill] sm:$0xff] }
 0x3de   : > { %2692 = vtanh.f32 %v1985_v44  ;;  %v2001_v9 = vmul.f32 %v4133_v7, %v2685_v4 }
 0x3df   : > { %2694 = vtanh.f32 %v1986_v3 }
 0x3e6   : > { %v2689_v20 = vpop.eup %2688 }
 0x3e7   : > { %v2691_v19 = vpop.eup %2690  ;;  %v1995_v11 = vmul.f32 %v2689_v20, %v1991_v10 }
 0x3e8   : > { %v2693_v17 = vpop.eup %2692  ;;  %v1996_v18 = vmul.f32 %v2691_v19, %v1992_v1  ;;  %291 = sbr.rel (!%p289_p8) target bundleno = 195 (0xc3), region = 97  ;;  %v2696_v1 = vld [vmem:[#allocation14 + $0x40] sm:$0xff] (%p289_p8)  }
 0x3e9   : > { %v2695_v8 = vpop.eup %2694  ;;  %v2003_v3 = vadd.f32 %v1999_v0, %v1995_v11   ;;  %v1997_v44 = vmul.f32 %v2693_v17, %v1993_v15  ;;  %v2008_v0 = vld [vmem:[#allocation10 + $0x4] ss:$8 sm:$0x3] (%p289_p8)  ;;  %v2983_v17 = vmov (%p289_p8), 0   ;;  %2567 = vmatprep.subr.bf16.mxu1 (%p289_p8), %v2696_v1 }
 0x3ea   : > { %v2004_v14 = vadd.f32 %v2000_v22, %v1996_v18   ;;  %v1998_v16 = vmul.f32 %v2695_v8, %v1994_v47  ;;  %v2017_v4 = vrot.slane (%p289_p8), %v2008_v0, %v4139_v12  ;;  %2084 = vmatprep.mubr.bf16.mxu0 (%p289_p8), %v2983_v17  ;;  %v2698_v22 = vld [vmem:[#allocation14 + $0x48] sm:$0xff] (%p289_p8)   ;;  %2568 = vmatpush3.bf16.msra.mxu1 (%p289_p8), %v2697_v6 }
 0x3eb   : > { %v2005_v21 = vadd.f32 %v2001_v9, %v1997_v44   ;;  %v4138_v47 = vmov %v2003_v3  ;;  %2569 = vmatprep.subr.bf16.mxu1 (%p289_p8), %v2698_v22 }
 0x3ec   : > { %v2006_v24 = vadd.f32 %v2002_v13, %v1998_v16   ;;  %v4137_v23 = vmov %v2004_v14  ;;  %v2034_v13 = vrot.slane (%p289_p8), %v2025_v5, %v4139_v12  ;;  %v4140_v16 = vld [vmem:[#allocation23_spill] sm:$0xff] (%p289_p8)  ;;  %v2021_v19 = vmul.f32 (%p289_p8), %v2017_v4, %v2004_v14 }
 0x3ed   : > { %v4136_v38 = vmov %v2005_v21  ;;  %v2013_v10 = vrot.slane (%p289_p8), %v2008_v0, %v4140_v16  ;;  %v2030_v20 = vrot.slane (%p289_p8), %v2025_v5, %v4140_v16 }
 0x3ee   : > { %v4135_v44 = vmov %v2006_v24  ;;  %v2023_v2 = vmul.f32 (%p289_p8), %v2017_v4, %v2006_v24  ;;  %v2038_v25 = vadd.f32 (%p289_p8), %v2034_v13, %v2021_v19  ;;  %2570 = vmatpush3.bf16.msra.mxu1 (%p289_p8), %v2699_v31 }
 0x3ef   :  { %v2020_v15 = vmul.f32 %v2013_v10, %v2003_v3  ;;  %v2022_v11 = vmul.f32 %v2013_v10, %v2005_v21  ;;  %2571 = vmatprep.subr.bf16.mxu1 %v2700_v33 }
 0x3f0   :  { %v2040_v27 = vadd.f32 %v2034_v13, %v2023_v2  ;;  %v2042_v34 = vmax.f32 %v2038_v25, 0.0 }
 0x3f1   :  { %v2037_v28 = vadd.f32 %v2030_v20, %v2020_v15  ;;  %v2039_v30 = vadd.f32 %v2030_v20, %v2022_v11 }
 0x3f2   :  { %v2044_v36 = vmax.f32 %v2040_v27, 0.0  ;;  %2572 = vmatpush3.bf16.msra.mxu1 %v2701_v42 }
 0x3f3   :  { %v2041_v37 = vmax.f32 %v2037_v28, 0.0  ;;  %v2043_v39 = vmax.f32 %v2039_v30, 0.0  ;;  %2573 = vmatprep.subr.bf16.mxu1 %v2702_v43 }
 0x3f4   :  { %v2047_v24 = vpack.c.bf16 %v2044_v36, %v2042_v34 }
 0x3f5   :  { %v2046_v40 = vpack.c.bf16 %v2043_v39, %v2041_v37 }
 0x3f6   :  { %2052 = vmatprep.subr.bf16.mxu0 %v2047_v24  ;;  %2574 = vmatpush3.bf16.msra.mxu1 %v2703_v46 }
 0x3f7   :  { %2053 = vmatpush1.bf16.msra.mxu0 %v2046_v40  ;;  %2575 = vmatprep.subr.bf16.mxu1 %v2704_v48 }
 0x3fa   :  { %2548 = vmatmul.mubr.msk.bf16.vlgmr.msra.gmra.mrb[0].mxu0 %vm1249_vm0, %v2045_v45  ;;  %2576 = vmatpush3.bf16.msra.mxu1 %v2705_v49 }
 0x3fb   :  { %2577 = vmatprep.subr.bf16.mxu1 %v2706_v51 }
 0x3fe   :  { %2578 = vmatpush3.bf16.msra.mxu1 %v2707_v52 }
 0x3ff   :  { %2579 = vmatprep.subr.bf16.mxu1 %v2708_v54 }
 0x402   :  { %2580 = vmatpush3.bf16.msra.mxu1 %v2709_v55 }
 0x403   :  { %2581 = vmatprep.subr.bf16.mxu1 %v2710_v57 }
 0x406   :  { %2582 = vmatpush3.bf16.msra.mxu1 %v2711_v58 }
 0x4cd   :  { %v2086_v60 = vpop.f32.mrb[0].mxu0 }
 0x4ce   :  { %v2088_v61 = vpop.f32.mrb[1].mxu0  ;;  %v2093_v56 = vpack.c.bf16 %v2086_v60, %v2086_v60 }
 0x4cf   :  { %v2090_v63 = vpop.f32.mrb[2].mxu0  ;;  %v2094_v50 = vpack.c.bf16 %v2088_v61, %v2088_v61 }
 0x4d0   :  { %v2091_v29 = vpop.f32.mrb[3].mxu0 }
 0x4d1   :  { %2255 = vmatprep.mubr.bf16.mxu1 %v2094_v50 }
 0x4d2   :  { %2256 = vmatmul.mubr.bf16.vlgmr.msra.gmra.mrb[0].mxu1 %v2093_v56 }
 0x5a5   :  { %v2583_v62 = vpop.f32.mrb[0].mxu1 }
 0x5a6   :  { %v2584_v32 = vpop.f32.mrb[1].mxu1 }
 0x5a7   :  { %v2585_v26 = vadd.f32 %v2584_v32, %v2583_v62  ;;  %v2586_v35 = vpop.f32.mrb[2].mxu1 }
 0x5a8   :  { %v2587_v41 = vpop.f32.mrb[3].mxu1 }
 0x5a9   :  { %v2265_v14 = vmul.f32 %v2585_v26, %v2264_v59 }
 0x5ab   :  { %v2266_v21 = vadd.f32 %v2265_v14, %v2263_v53 }
 0x5ad   :  { %v2565_v38 = vmul.f32 -1.442695, %v2266_v21 }
 0x5af   :  { %2712 = vpow2.f32 %v2565_v38 }
 0x5b9   :  { %v2713_v23 = vpop.eup %2712 }
 0x5ba   :  { %v2270_v47 = vadd.f32 1.0, %v2713_v23 }
 0x5bc   :  { %2714 = vrcp.f32 %v2270_v47 }
 0x5c6   :  { %v2715_v18 = vpop.eup %2714 }
 0x5c7   :  { %2273 = vst [vmem:[#allocation16] sm:$0xff] %v2715_v18 }
 0x5c8   :  { %2903 = shalt.err (!%p2900_p13)
}
 0x5c9   :  { %s2904_s19 = scalar_lea.hbm %s3803_s8, 128 }
 0x5ca   :  { %p2905_p0 = scmp.ne.s32.totalorder %s3803_s8, %s2904_s19  ;;  %p2908_p1 = scmp.lt.u32.totalorder %s2904_s19, %s3803_s8 }
 0x5cc   :  { %p2910_p2 = pnand %p2908_p1, %p2905_p0 }
 0x5ce   :  { %2913 = shalt.err (!%p2910_p2)
}
 0x5cf   :  { %2283 = dma.vmem_to_hbm [thread:$0]  %s2281_s14, 128, %s3803_s8, [#allocation4]  }
 0x5d0   :  { %2944 = dma.done.wait [#allocation4], 128  }
 0x5d1   :  { %2945 = vsyncadd [#allocation4], 4294967168 }
 0x5d2   :  { %2287 = vsyncpa [#allocation3], 1 }
 0x5d3   :  { %2288 = vsyncpa [#allocation6], 1 }
 0x5d4   :  { %2289 = vsyncpa [#allocation9], 1 }
 0x5d5   :  { %2290 = vsyncpa [#allocation12], 1 }
 0x5d6   :  { %2291 = vsyncpa [#allocation15], 1 }
 0x5d7   :  { %2292 = vsyncpa [#allocation4], 1 }

</bundles_post_ra>
